<compile_context>
chip_gen: v5e
topology: v5e:2x2
jax: 0.10.0
libtpu: 0.0.40
codegen_flags: <defaults>
</compile_context>

<pallas_src>
import jax
import jax.numpy as jnp
from jax.experimental import pallas as pl
from jax.experimental.pallas import tpu as pltpu


# -----------------------------------------------------------------------------
# In-kernel stage: Conv2d(valid, stride 1) + bias + ReLU + MaxPool2d((2,3),(2,3),pad 1)
# -----------------------------------------------------------------------------
def _conv_relu_pool_rows(rows, w_ref, b_ref, KH, KW, sel):
    """rows: list of (Cin, Win) f32 slabs (one per input H row, in vregs).

    w_ref : (KH, Cout, KW*Cin) weights, layout [kh, cout, kw*Cin + cin].
    b_ref : (Cout, 1) bias.
    sel   : (3*Wo, Wo) 0/1 matrix selecting every 3rd lane (exact f32 matmul gather).
    Returns a list of Ho slabs of shape (Cout, Wo).
    """
    Hin = len(rows)
    Cin, Win = rows[0].shape
    Cout = b_ref.shape[0]
    Hc, Wc = Hin - KH + 1, Win - KW + 1            # valid conv output
    Ho, Wo = Hc // 2 + 1, (Wc - 1) // 3 + 1        # pool (2,3)/(2,3), pad 1 (floor mode)
    assert sel.shape == (3 * Wo, Wo)
    use_mxu = Cin > 1                              # Cin==1 stages stay on the VPU

    bias = b_ref[...]                              # (Cout, 1), loaded once per stage

    # ---- Conv + bias + ReLU ------------------------------------------------
    conv_rows = []
    for i in range(Hc):
        acc = None
        for kh in range(KH):
            slab = rows[i + kh]                    # (Cin, Win)
            wk = w_ref[kh]                         # (Cout, KW*Cin)
            if use_mxu:
                patch = jnp.concatenate(
                    [slab[:, kw:kw + Wc] for kw in range(KW)], axis=0)   # (KW*Cin, Wc)
                part = jnp.dot(wk, patch, preferred_element_type=jnp.float32)
            else:  # Cin == 1: broadcast multiply on the VPU
                part = None
                for kw in range(KW):
                    t = wk[:, kw:kw + 1] * slab[:, kw:kw + Wc]           # (Cout, Wc)
                    part = t if part is None else part + t
            acc = part if acc is None else acc + part
        conv_rows.append(jnp.maximum(acc + bias, 0.0))                   # (Cout, Wc)

    # ---- MaxPool2d((2,3), stride (2,3), padding=1) --------------------------
    # Zero padding == torch's -inf padding here (inputs >= 0 post-ReLU and every
    # window has >= 1 real element).
    zero_row = jnp.zeros((Cout, Wc), jnp.float32)
    Lp = 3 * Wo
    pad_w = Lp + 2 - (Wc + 1)                      # always in {1, 2, 3}
    out_rows = []
    for a in range(Ho):
        r_hi = conv_rows[2 * a - 1] if 2 * a - 1 >= 0 else zero_row
        r_lo = conv_rows[2 * a] if 2 * a < Hc else zero_row
        m = jnp.maximum(r_hi, r_lo)                # max over the 2 H taps
        pieces = [jnp.zeros((Cout, 1), jnp.float32), m]
        if pad_w > 0:
            pieces.append(jnp.zeros((Cout, pad_w), jnp.float32))
        mp = jnp.concatenate(pieces, axis=-1)      # (Cout, Lp + 2), left pad col + right pad
        # max over the 3 W taps; window b's max lands at lane 3*b
        pre = jnp.maximum(jnp.maximum(mp[:, 0:Lp], mp[:, 1:Lp + 1]), mp[:, 2:Lp + 2])
        # lane downsample by 3 via exact 0/1 selection matmul (MXU)
        out_rows.append(jnp.dot(pre, sel, preferred_element_type=jnp.float32))
    return out_rows


# -----------------------------------------------------------------------------
# Fused backbone kernel (one grid step == one batch element).
# -----------------------------------------------------------------------------
def _make_backbone_kernel(Cin, S, W, pad_at):
    def kernel(x_ref, wu_ref, bu_ref, wl_ref, bl_ref, ws_ref, bs_ref,
               sel1_ref, sel2_ref, o_ref):
        sel1 = sel1_ref[...]
        sel2 = sel2_ref[...]

        # Input rows of this batch element (channels on sublanes, time on lanes).
        x_rows = [x_ref[0, :, r, :] for r in range(S)]
        zero_in = jnp.zeros((Cin, W), jnp.float32)

        # ZeroPadder2D(pad_at, padding_size=2) + upper/lower slicing, fused:
        # the two inserted zero rows become explicit zero slabs.
        upper_in = x_rows[:pad_at] + [zero_in, zero_in]
        lower_in = [zero_in, zero_in] + x_rows[pad_at:]

        upper = _conv_relu_pool_rows(upper_in, wu_ref, bu_ref, 3, 3, sel1)
        lower = _conv_relu_pool_rows(lower_in, wl_ref, bl_ref, 3, 3, sel1)

        # torch.cat([upper, zeros_1], dim=2), torch.cat([zeros_2, lower], dim=2)
        # and the channel concat — all on in-register row slabs, no HBM traffic.
        C1, Wo1 = upper[0].shape
        zero_c1 = jnp.zeros((C1, Wo1), jnp.float32)
        upper_p = upper + [zero_c1, zero_c1]
        lower_p = [zero_c1, zero_c1] + lower
        cat_rows = [jnp.concatenate([u, l], axis=0) for u, l in zip(upper_p, lower_p)]

        shared = _conv_relu_pool_rows(cat_rows, ws_ref, bs_ref, 3, 5, sel2)

        # Single store of the whole result, in torch flatten(start_dim=2) order.
        o_ref[0, :, :] = jnp.concatenate(shared, axis=-1)
    return kernel


# -----------------------------------------------------------------------------
# Host-side wrapper.
# -----------------------------------------------------------------------------
def _prep_weight(w):
    """(Cout, Cin, KH, KW) -> (KH, Cout, KW*Cin), contraction order (kw, cin)."""
    Cout, Cin, KH, KW = w.shape
    return jnp.transpose(w, (2, 0, 3, 1)).reshape(KH, Cout, KW * Cin).astype(jnp.float32)


def _sel_matrix(Wo):
    """(3*Wo, Wo) 0/1 matrix selecting every 3rd lane."""
    return (jnp.arange(3 * Wo)[:, None] == 3 * jnp.arange(Wo)[None, :]).astype(jnp.float32)


def cnn_pf_backbone_forward(x, params, pad_at=3, permute=False, flatten=False):
    """CNN_PF_Backbone forward (include_middle=False) as one Pallas TPU kernel."""
    # TODO(synk): include_middle=True branch (third middle conv path) not implemented.
    if permute:
        x = jnp.transpose(x, (0, 2, 1))
    unsqueezed = False
    if x.ndim == 3:
        x = x[:, None, :, :]
        unsqueezed = True
    x = x.astype(jnp.float32)
    B, Cin, S, W = x.shape

    (wu, bu), (wl, bl), (ws, bs) = params["upper"], params["lower"], params["shared"]
    C1, C2 = wu.shape[0], ws.shape[0]
    assert ws.shape[1] == 2 * C1, "shared conv expects 2*out_channels input channels"

    # Static output geometry of the three conv+pool stages.
    hc_up, hc_lo, wc1 = pad_at, S - pad_at, W - 2
    ho_up, ho_lo = hc_up // 2 + 1, hc_lo // 2 + 1
    if ho_up != ho_lo:
        raise ValueError("upper/lower pooled heights differ (torch.cat would also fail)")
    ho1, wo1 = ho_up, (wc1 - 1) // 3 + 1
    hc2, wc2 = ho1, wo1 - 4
    ho2, wo2 = hc2 // 2 + 1, (wc2 - 1) // 3 + 1

    wu_m, wl_m, ws_m = _prep_weight(wu), _prep_weight(wl), _prep_weight(ws)
    bu_m = bu.reshape(C1, 1).astype(jnp.float32)
    bl_m = bl.reshape(C1, 1).astype(jnp.float32)
    bs_m = bs.reshape(C2, 1).astype(jnp.float32)
    sel1, sel2 = _sel_matrix(wo1), _sel_matrix(wo2)

    kernel = _make_backbone_kernel(Cin, S, W, pad_at)
    out = pl.pallas_call(
        kernel,
        out_shape=jax.ShapeDtypeStruct((B, C2, ho2 * wo2), jnp.float32),
        grid=(B,),
        in_specs=[
            pl.BlockSpec((1, Cin, S, W), lambda b: (b, 0, 0, 0)),
            pl.BlockSpec(wu_m.shape, lambda b: (0, 0, 0)),
            pl.BlockSpec(bu_m.shape, lambda b: (0, 0)),
            pl.BlockSpec(wl_m.shape, lambda b: (0, 0, 0)),
            pl.BlockSpec(bl_m.shape, lambda b: (0, 0)),
            pl.BlockSpec(ws_m.shape, lambda b: (0, 0, 0)),
            pl.BlockSpec(bs_m.shape, lambda b: (0, 0)),
            pl.BlockSpec(sel1.shape, lambda b: (0, 0)),
            pl.BlockSpec(sel2.shape, lambda b: (0, 0)),
        ],
        out_specs=pl.BlockSpec((1, C2, ho2 * wo2), lambda b: (b, 0, 0)),
        compiler_params=pltpu.CompilerParams(dimension_semantics=("parallel",)),
    )(x, wu_m, bu_m, wl_m, bl_m, ws_m, bs_m, sel1, sel2)

    if not unsqueezed:
        out = out.reshape(B, C2, ho2, wo2)
    if flatten:
        out = out.reshape(B, -1)
    return out


# -----------------------------------------------------------------------------
# Pure-JAX reference (mirrors the PyTorch forward exactly), for the runtime check.
# -----------------------------------------------------------------------------
def cnn_pf_backbone_ref(x, params, pad_at=3, permute=False, flatten=False):
    if permute:
        x = jnp.transpose(x, (0, 2, 1))
    unsqueezed = False
    if x.ndim == 3:
        x = x[:, None, :, :]
        unsqueezed = True
    x = x.astype(jnp.float32)
    B, C, _, W = x.shape

    def block(z, w, b):
        y = jax.lax.conv_general_dilated(
            z, w, (1, 1), "VALID", dimension_numbers=("NCHW", "OIHW", "NCHW"),
            precision=jax.lax.Precision.HIGHEST)
        y = jnp.maximum(y + b[None, :, None, None], 0.0)
        return jax.lax.reduce_window(
            y, -jnp.inf, jax.lax.max, (1, 1, 2, 3), (1, 1, 2, 3),
            ((0, 0), (0, 0), (1, 1), (1, 1)))

    zeros = jnp.zeros((B, C, 2, W), x.dtype)
    xp = jnp.concatenate([x[:, :, :pad_at], zeros, x[:, :, pad_at:]], axis=2)
    up = block(xp[:, :, :pad_at + 2], *params["upper"])
    up = jnp.concatenate(
        [up, jnp.zeros((B, up.shape[1], 2, up.shape[3]), up.dtype)], axis=2)
    lo = block(xp[:, :, pad_at:], *params["lower"])
    lo = jnp.concatenate(
        [jnp.zeros((B, lo.shape[1], 2, lo.shape[3]), lo.dtype), lo], axis=2)
    out = block(jnp.concatenate([up, lo], axis=1), *params["shared"])
    if unsqueezed:
        out = out.reshape(out.shape[0], out.shape[1], -1)
    if flatten:
        out = out.reshape(out.shape[0], -1)
    return out


def init_conv(key, cout, cin, kh, kw):
    """PyTorch Conv2d default init: U(-1/sqrt(fan_in), 1/sqrt(fan_in))."""
    k_w, k_b = jax.random.split(key)
    fan_in = cin * kh * kw
    bound = 1.0 / (fan_in ** 0.5)
    w = jax.random.uniform(k_w, (cout, cin, kh, kw), jnp.float32, -bound, bound)
    b = jax.random.uniform(k_b, (cout,), jnp.float32, -bound, bound)
    return w, b


if __name__ == "__main__":
    key = jax.random.PRNGKey(0)
    kx, k_up, k_lo, k_sh = jax.random.split(key, 4)

    # Small HAR-style input: (batch=2, sensors=6, time=60) -> 3-D path (unsqueeze).
    B, S, T = 2, 6, 60
    x = jax.random.normal(kx, (B, S, T), jnp.float32)

    out_channels = 16
    params = {
        "upper": init_conv(k_up, out_channels, 1, 3, 3),
        "lower": init_conv(k_lo, out_channels, 1, 3, 3),
        "shared": init_conv(k_sh, 64, out_channels * 2, 3, 5),
    }

    out = jax.block_until_ready(cnn_pf_backbone_forward(x, params))
    ref = cnn_pf_backbone_ref(x, params)

    assert out.shape == ref.shape == (B, 64, 12), (out.shape, ref.shape)
    if not bool(jnp.allclose(out, ref, atol=1e-4, rtol=1e-4)):
        raise AssertionError("Pallas output does not match JAX reference")

    print("KERNEL_OK")
</pallas_src>

<mosaic_0001>
module attributes {stable_mosaic.version = 11 : i64} {
  func.func @kernel(%arg0: i32, %arg1: memref<1x1x6x60xf32, #tpu.memory_space<vmem>>, %arg2: memref<3x16x3xf32, #tpu.memory_space<vmem>>, %arg3: memref<16x1xf32, #tpu.memory_space<vmem>>, %arg4: memref<3x16x3xf32, #tpu.memory_space<vmem>>, %arg5: memref<16x1xf32, #tpu.memory_space<vmem>>, %arg6: memref<3x64x160xf32, #tpu.memory_space<vmem>>, %arg7: memref<64x1xf32, #tpu.memory_space<vmem>>, %arg8: memref<60x20xf32, #tpu.memory_space<vmem>>, %arg9: memref<18x6xf32, #tpu.memory_space<vmem>>, %arg10: memref<1x64x12xf32, #tpu.memory_space<vmem>>) attributes {dimension_semantics = [#tpu.dimension_semantics<parallel>], iteration_bounds = array<i64: 2>, scalar_prefetch = 0 : i64, scratch_operands = 0 : i64, tpu.core_type = #tpu.core_type<tc>, window_params = [{transform_indices = @transform_0, window_bounds = array<i64: 1, 1, 6, 60>}, {pipeline_mode = #tpu.pipeline_mode<synchronous>, transform_indices = @transform_1, window_bounds = array<i64: 3, 16, 3>}, {pipeline_mode = #tpu.pipeline_mode<synchronous>, transform_indices = @transform_2, window_bounds = array<i64: 16, 1>}, {pipeline_mode = #tpu.pipeline_mode<synchronous>, transform_indices = @transform_3, window_bounds = array<i64: 3, 16, 3>}, {pipeline_mode = #tpu.pipeline_mode<synchronous>, transform_indices = @transform_4, window_bounds = array<i64: 16, 1>}, {pipeline_mode = #tpu.pipeline_mode<synchronous>, transform_indices = @transform_5, window_bounds = array<i64: 3, 64, 160>}, {pipeline_mode = #tpu.pipeline_mode<synchronous>, transform_indices = @transform_6, window_bounds = array<i64: 64, 1>}, {pipeline_mode = #tpu.pipeline_mode<synchronous>, transform_indices = @transform_7, window_bounds = array<i64: 60, 20>}, {pipeline_mode = #tpu.pipeline_mode<synchronous>, transform_indices = @transform_8, window_bounds = array<i64: 18, 6>}, {transform_indices = @transform_9, window_bounds = array<i64: 1, 64, 12>}]} {
    %c0 = arith.constant 0 : index
    %c0_0 = arith.constant 0 : index
    %0 = vector.load %arg8[%c0, %c0_0] : memref<60x20xf32, #tpu.memory_space<vmem>>, vector<60x20xf32>
    %c0_1 = arith.constant 0 : index
    %c0_2 = arith.constant 0 : index
    %1 = vector.load %arg9[%c0_1, %c0_2] : memref<18x6xf32, #tpu.memory_space<vmem>>, vector<18x6xf32>
    %c0_3 = arith.constant 0 : index
    %c0_4 = arith.constant 0 : index
    %c0_5 = arith.constant 0 : index
    %c0_6 = arith.constant 0 : index
    %2 = vector.load %arg1[%c0_3, %c0_4, %c0_5, %c0_6] : memref<1x1x6x60xf32, #tpu.memory_space<vmem>>, vector<1x1x1x60xf32>
    %3 = vector.shape_cast %2 : vector<1x1x1x60xf32> to vector<1x60xf32>
    %c0_7 = arith.constant 0 : index
    %c0_8 = arith.constant 0 : index
    %c1 = arith.constant 1 : index
    %c0_9 = arith.constant 0 : index
    %4 = vector.load %arg1[%c0_7, %c0_8, %c1, %c0_9] : memref<1x1x6x60xf32, #tpu.memory_space<vmem>>, vector<1x1x1x60xf32>
    %5 = vector.shape_cast %4 : vector<1x1x1x60xf32> to vector<1x60xf32>
    %c0_10 = arith.constant 0 : index
    %c0_11 = arith.constant 0 : index
    %c2 = arith.constant 2 : index
    %c0_12 = arith.constant 0 : index
    %6 = vector.load %arg1[%c0_10, %c0_11, %c2, %c0_12] : memref<1x1x6x60xf32, #tpu.memory_space<vmem>>, vector<1x1x1x60xf32>
    %7 = vector.shape_cast %6 : vector<1x1x1x60xf32> to vector<1x60xf32>
    %c0_13 = arith.constant 0 : index
    %c0_14 = arith.constant 0 : index
    %c3 = arith.constant 3 : index
    %c0_15 = arith.constant 0 : index
    %8 = vector.load %arg1[%c0_13, %c0_14, %c3, %c0_15] : memref<1x1x6x60xf32, #tpu.memory_space<vmem>>, vector<1x1x1x60xf32>
    %9 = vector.shape_cast %8 : vector<1x1x1x60xf32> to vector<1x60xf32>
    %c0_16 = arith.constant 0 : index
    %c0_17 = arith.constant 0 : index
    %c4 = arith.constant 4 : index
    %c0_18 = arith.constant 0 : index
    %10 = vector.load %arg1[%c0_16, %c0_17, %c4, %c0_18] : memref<1x1x6x60xf32, #tpu.memory_space<vmem>>, vector<1x1x1x60xf32>
    %11 = vector.shape_cast %10 : vector<1x1x1x60xf32> to vector<1x60xf32>
    %c0_19 = arith.constant 0 : index
    %c0_20 = arith.constant 0 : index
    %c5 = arith.constant 5 : index
    %c0_21 = arith.constant 0 : index
    %12 = vector.load %arg1[%c0_19, %c0_20, %c5, %c0_21] : memref<1x1x6x60xf32, #tpu.memory_space<vmem>>, vector<1x1x1x60xf32>
    %13 = vector.shape_cast %12 : vector<1x1x1x60xf32> to vector<1x60xf32>
    %cst = arith.constant 0.000000e+00 : f32
    %14 = vector.broadcast %cst : f32 to vector<1x60xf32>
    %c0_22 = arith.constant 0 : index
    %c0_23 = arith.constant 0 : index
    %15 = vector.load %arg3[%c0_22, %c0_23] : memref<16x1xf32, #tpu.memory_space<vmem>>, vector<16x1xf32>
    %c0_24 = arith.constant 0 : index
    %c0_25 = arith.constant 0 : index
    %c0_26 = arith.constant 0 : index
    %16 = vector.load %arg2[%c0_24, %c0_25, %c0_26] : memref<3x16x3xf32, #tpu.memory_space<vmem>>, vector<1x16x3xf32>
    %17 = vector.shape_cast %16 : vector<1x16x3xf32> to vector<16x3xf32>
    %18 = vector.extract_strided_slice %17 {offsets = [0, 0], sizes = [16, 1], strides = [1, 1]} : vector<16x3xf32> to vector<16x1xf32>
    %19 = vector.extract_strided_slice %3 {offsets = [0, 0], sizes = [1, 58], strides = [1, 1]} : vector<1x60xf32> to vector<1x58xf32>
    %20 = vector.broadcast %18 : vector<16x1xf32> to vector<16x58xf32>
    %21 = vector.broadcast %19 : vector<1x58xf32> to vector<16x58xf32>
    %22 = arith.mulf %20, %21 : vector<16x58xf32>
    %23 = vector.extract_strided_slice %17 {offsets = [0, 1], sizes = [16, 1], strides = [1, 1]} : vector<16x3xf32> to vector<16x1xf32>
    %24 = vector.extract_strided_slice %3 {offsets = [0, 1], sizes = [1, 58], strides = [1, 1]} : vector<1x60xf32> to vector<1x58xf32>
    %25 = vector.broadcast %23 : vector<16x1xf32> to vector<16x58xf32>
    %26 = vector.broadcast %24 : vector<1x58xf32> to vector<16x58xf32>
    %27 = arith.mulf %25, %26 : vector<16x58xf32>
    %28 = arith.addf %22, %27 : vector<16x58xf32>
    %29 = vector.extract_strided_slice %17 {offsets = [0, 2], sizes = [16, 1], strides = [1, 1]} : vector<16x3xf32> to vector<16x1xf32>
    %30 = vector.extract_strided_slice %3 {offsets = [0, 2], sizes = [1, 58], strides = [1, 1]} : vector<1x60xf32> to vector<1x58xf32>
    %31 = vector.broadcast %29 : vector<16x1xf32> to vector<16x58xf32>
    %32 = vector.broadcast %30 : vector<1x58xf32> to vector<16x58xf32>
    %33 = arith.mulf %31, %32 : vector<16x58xf32>
    %34 = arith.addf %28, %33 : vector<16x58xf32>
    %c1_27 = arith.constant 1 : index
    %c0_28 = arith.constant 0 : index
    %c0_29 = arith.constant 0 : index
    %35 = vector.load %arg2[%c1_27, %c0_28, %c0_29] : memref<3x16x3xf32, #tpu.memory_space<vmem>>, vector<1x16x3xf32>
    %36 = vector.shape_cast %35 : vector<1x16x3xf32> to vector<16x3xf32>
    %37 = vector.extract_strided_slice %36 {offsets = [0, 0], sizes = [16, 1], strides = [1, 1]} : vector<16x3xf32> to vector<16x1xf32>
    %38 = vector.extract_strided_slice %5 {offsets = [0, 0], sizes = [1, 58], strides = [1, 1]} : vector<1x60xf32> to vector<1x58xf32>
    %39 = vector.broadcast %37 : vector<16x1xf32> to vector<16x58xf32>
    %40 = vector.broadcast %38 : vector<1x58xf32> to vector<16x58xf32>
    %41 = arith.mulf %39, %40 : vector<16x58xf32>
    %42 = vector.extract_strided_slice %36 {offsets = [0, 1], sizes = [16, 1], strides = [1, 1]} : vector<16x3xf32> to vector<16x1xf32>
    %43 = vector.extract_strided_slice %5 {offsets = [0, 1], sizes = [1, 58], strides = [1, 1]} : vector<1x60xf32> to vector<1x58xf32>
    %44 = vector.broadcast %42 : vector<16x1xf32> to vector<16x58xf32>
    %45 = vector.broadcast %43 : vector<1x58xf32> to vector<16x58xf32>
    %46 = arith.mulf %44, %45 : vector<16x58xf32>
    %47 = arith.addf %41, %46 : vector<16x58xf32>
    %48 = vector.extract_strided_slice %36 {offsets = [0, 2], sizes = [16, 1], strides = [1, 1]} : vector<16x3xf32> to vector<16x1xf32>
    %49 = vector.extract_strided_slice %5 {offsets = [0, 2], sizes = [1, 58], strides = [1, 1]} : vector<1x60xf32> to vector<1x58xf32>
    %50 = vector.broadcast %48 : vector<16x1xf32> to vector<16x58xf32>
    %51 = vector.broadcast %49 : vector<1x58xf32> to vector<16x58xf32>
    %52 = arith.mulf %50, %51 : vector<16x58xf32>
    %53 = arith.addf %47, %52 : vector<16x58xf32>
    %54 = arith.addf %34, %53 : vector<16x58xf32>
    %c2_30 = arith.constant 2 : index
    %c0_31 = arith.constant 0 : index
    %c0_32 = arith.constant 0 : index
    %55 = vector.load %arg2[%c2_30, %c0_31, %c0_32] : memref<3x16x3xf32, #tpu.memory_space<vmem>>, vector<1x16x3xf32>
    %56 = vector.shape_cast %55 : vector<1x16x3xf32> to vector<16x3xf32>
    %57 = vector.extract_strided_slice %56 {offsets = [0, 0], sizes = [16, 1], strides = [1, 1]} : vector<16x3xf32> to vector<16x1xf32>
    %58 = vector.extract_strided_slice %7 {offsets = [0, 0], sizes = [1, 58], strides = [1, 1]} : vector<1x60xf32> to vector<1x58xf32>
    %59 = vector.broadcast %57 : vector<16x1xf32> to vector<16x58xf32>
    %60 = vector.broadcast %58 : vector<1x58xf32> to vector<16x58xf32>
    %61 = arith.mulf %59, %60 : vector<16x58xf32>
    %62 = vector.extract_strided_slice %56 {offsets = [0, 1], sizes = [16, 1], strides = [1, 1]} : vector<16x3xf32> to vector<16x1xf32>
    %63 = vector.extract_strided_slice %7 {offsets = [0, 1], sizes = [1, 58], strides = [1, 1]} : vector<1x60xf32> to vector<1x58xf32>
    %64 = vector.broadcast %62 : vector<16x1xf32> to vector<16x58xf32>
    %65 = vector.broadcast %63 : vector<1x58xf32> to vector<16x58xf32>
    %66 = arith.mulf %64, %65 : vector<16x58xf32>
    %67 = arith.addf %61, %66 : vector<16x58xf32>
    %68 = vector.extract_strided_slice %56 {offsets = [0, 2], sizes = [16, 1], strides = [1, 1]} : vector<16x3xf32> to vector<16x1xf32>
    %69 = vector.extract_strided_slice %7 {offsets = [0, 2], sizes = [1, 58], strides = [1, 1]} : vector<1x60xf32> to vector<1x58xf32>
    %70 = vector.broadcast %68 : vector<16x1xf32> to vector<16x58xf32>
    %71 = vector.broadcast %69 : vector<1x58xf32> to vector<16x58xf32>
    %72 = arith.mulf %70, %71 : vector<16x58xf32>
    %73 = arith.addf %67, %72 : vector<16x58xf32>
    %74 = arith.addf %54, %73 : vector<16x58xf32>
    %75 = vector.broadcast %15 : vector<16x1xf32> to vector<16x58xf32>
    %76 = arith.addf %74, %75 : vector<16x58xf32>
    %cst_33 = arith.constant 0.000000e+00 : f32
    %77 = vector.broadcast %cst_33 : f32 to vector<16x58xf32>
    %78 = arith.maximumf %76, %77 : vector<16x58xf32>
    %c0_34 = arith.constant 0 : index
    %c0_35 = arith.constant 0 : index
    %c0_36 = arith.constant 0 : index
    %79 = vector.load %arg2[%c0_34, %c0_35, %c0_36] : memref<3x16x3xf32, #tpu.memory_space<vmem>>, vector<1x16x3xf32>
    %80 = vector.shape_cast %79 : vector<1x16x3xf32> to vector<16x3xf32>
    %81 = vector.extract_strided_slice %80 {offsets = [0, 0], sizes = [16, 1], strides = [1, 1]} : vector<16x3xf32> to vector<16x1xf32>
    %82 = vector.extract_strided_slice %5 {offsets = [0, 0], sizes = [1, 58], strides = [1, 1]} : vector<1x60xf32> to vector<1x58xf32>
    %83 = vector.broadcast %81 : vector<16x1xf32> to vector<16x58xf32>
    %84 = vector.broadcast %82 : vector<1x58xf32> to vector<16x58xf32>
    %85 = arith.mulf %83, %84 : vector<16x58xf32>
    %86 = vector.extract_strided_slice %80 {offsets = [0, 1], sizes = [16, 1], strides = [1, 1]} : vector<16x3xf32> to vector<16x1xf32>
    %87 = vector.extract_strided_slice %5 {offsets = [0, 1], sizes = [1, 58], strides = [1, 1]} : vector<1x60xf32> to vector<1x58xf32>
    %88 = vector.broadcast %86 : vector<16x1xf32> to vector<16x58xf32>
    %89 = vector.broadcast %87 : vector<1x58xf32> to vector<16x58xf32>
    %90 = arith.mulf %88, %89 : vector<16x58xf32>
    %91 = arith.addf %85, %90 : vector<16x58xf32>
    %92 = vector.extract_strided_slice %80 {offsets = [0, 2], sizes = [16, 1], strides = [1, 1]} : vector<16x3xf32> to vector<16x1xf32>
    %93 = vector.extract_strided_slice %5 {offsets = [0, 2], sizes = [1, 58], strides = [1, 1]} : vector<1x60xf32> to vector<1x58xf32>
    %94 = vector.broadcast %92 : vector<16x1xf32> to vector<16x58xf32>
    %95 = vector.broadcast %93 : vector<1x58xf32> to vector<16x58xf32>
    %96 = arith.mulf %94, %95 : vector<16x58xf32>
    %97 = arith.addf %91, %96 : vector<16x58xf32>
    %c1_37 = arith.constant 1 : index
    %c0_38 = arith.constant 0 : index
    %c0_39 = arith.constant 0 : index
    %98 = vector.load %arg2[%c1_37, %c0_38, %c0_39] : memref<3x16x3xf32, #tpu.memory_space<vmem>>, vector<1x16x3xf32>
    %99 = vector.shape_cast %98 : vector<1x16x3xf32> to vector<16x3xf32>
    %100 = vector.extract_strided_slice %99 {offsets = [0, 0], sizes = [16, 1], strides = [1, 1]} : vector<16x3xf32> to vector<16x1xf32>
    %101 = vector.extract_strided_slice %7 {offsets = [0, 0], sizes = [1, 58], strides = [1, 1]} : vector<1x60xf32> to vector<1x58xf32>
    %102 = vector.broadcast %100 : vector<16x1xf32> to vector<16x58xf32>
    %103 = vector.broadcast %101 : vector<1x58xf32> to vector<16x58xf32>
    %104 = arith.mulf %102, %103 : vector<16x58xf32>
    %105 = vector.extract_strided_slice %99 {offsets = [0, 1], sizes = [16, 1], strides = [1, 1]} : vector<16x3xf32> to vector<16x1xf32>
    %106 = vector.extract_strided_slice %7 {offsets = [0, 1], sizes = [1, 58], strides = [1, 1]} : vector<1x60xf32> to vector<1x58xf32>
    %107 = vector.broadcast %105 : vector<16x1xf32> to vector<16x58xf32>
    %108 = vector.broadcast %106 : vector<1x58xf32> to vector<16x58xf32>
    %109 = arith.mulf %107, %108 : vector<16x58xf32>
    %110 = arith.addf %104, %109 : vector<16x58xf32>
    %111 = vector.extract_strided_slice %99 {offsets = [0, 2], sizes = [16, 1], strides = [1, 1]} : vector<16x3xf32> to vector<16x1xf32>
    %112 = vector.extract_strided_slice %7 {offsets = [0, 2], sizes = [1, 58], strides = [1, 1]} : vector<1x60xf32> to vector<1x58xf32>
    %113 = vector.broadcast %111 : vector<16x1xf32> to vector<16x58xf32>
    %114 = vector.broadcast %112 : vector<1x58xf32> to vector<16x58xf32>
    %115 = arith.mulf %113, %114 : vector<16x58xf32>
    %116 = arith.addf %110, %115 : vector<16x58xf32>
    %117 = arith.addf %97, %116 : vector<16x58xf32>
    %c2_40 = arith.constant 2 : index
    %c0_41 = arith.constant 0 : index
    %c0_42 = arith.constant 0 : index
    %118 = vector.load %arg2[%c2_40, %c0_41, %c0_42] : memref<3x16x3xf32, #tpu.memory_space<vmem>>, vector<1x16x3xf32>
    %119 = vector.shape_cast %118 : vector<1x16x3xf32> to vector<16x3xf32>
    %120 = vector.extract_strided_slice %119 {offsets = [0, 0], sizes = [16, 1], strides = [1, 1]} : vector<16x3xf32> to vector<16x1xf32>
    %121 = vector.extract_strided_slice %14 {offsets = [0, 0], sizes = [1, 58], strides = [1, 1]} : vector<1x60xf32> to vector<1x58xf32>
    %122 = vector.broadcast %120 : vector<16x1xf32> to vector<16x58xf32>
    %123 = vector.broadcast %121 : vector<1x58xf32> to vector<16x58xf32>
    %124 = arith.mulf %122, %123 : vector<16x58xf32>
    %125 = vector.extract_strided_slice %119 {offsets = [0, 1], sizes = [16, 1], strides = [1, 1]} : vector<16x3xf32> to vector<16x1xf32>
    %126 = vector.extract_strided_slice %14 {offsets = [0, 1], sizes = [1, 58], strides = [1, 1]} : vector<1x60xf32> to vector<1x58xf32>
    %127 = vector.broadcast %125 : vector<16x1xf32> to vector<16x58xf32>
    %128 = vector.broadcast %126 : vector<1x58xf32> to vector<16x58xf32>
    %129 = arith.mulf %127, %128 : vector<16x58xf32>
    %130 = arith.addf %124, %129 : vector<16x58xf32>
    %131 = vector.extract_strided_slice %119 {offsets = [0, 2], sizes = [16, 1], strides = [1, 1]} : vector<16x3xf32> to vector<16x1xf32>
    %132 = vector.extract_strided_slice %14 {offsets = [0, 2], sizes = [1, 58], strides = [1, 1]} : vector<1x60xf32> to vector<1x58xf32>
    %133 = vector.broadcast %131 : vector<16x1xf32> to vector<16x58xf32>
    %134 = vector.broadcast %132 : vector<1x58xf32> to vector<16x58xf32>
    %135 = arith.mulf %133, %134 : vector<16x58xf32>
    %136 = arith.addf %130, %135 : vector<16x58xf32>
    %137 = arith.addf %117, %136 : vector<16x58xf32>
    %138 = vector.broadcast %15 : vector<16x1xf32> to vector<16x58xf32>
    %139 = arith.addf %137, %138 : vector<16x58xf32>
    %cst_43 = arith.constant 0.000000e+00 : f32
    %140 = vector.broadcast %cst_43 : f32 to vector<16x58xf32>
    %141 = arith.maximumf %139, %140 : vector<16x58xf32>
    %c0_44 = arith.constant 0 : index
    %c0_45 = arith.constant 0 : index
    %c0_46 = arith.constant 0 : index
    %142 = vector.load %arg2[%c0_44, %c0_45, %c0_46] : memref<3x16x3xf32, #tpu.memory_space<vmem>>, vector<1x16x3xf32>
    %143 = vector.shape_cast %142 : vector<1x16x3xf32> to vector<16x3xf32>
    %144 = vector.extract_strided_slice %143 {offsets = [0, 0], sizes = [16, 1], strides = [1, 1]} : vector<16x3xf32> to vector<16x1xf32>
    %145 = vector.extract_strided_slice %7 {offsets = [0, 0], sizes = [1, 58], strides = [1, 1]} : vector<1x60xf32> to vector<1x58xf32>
    %146 = vector.broadcast %144 : vector<16x1xf32> to vector<16x58xf32>
    %147 = vector.broadcast %145 : vector<1x58xf32> to vector<16x58xf32>
    %148 = arith.mulf %146, %147 : vector<16x58xf32>
    %149 = vector.extract_strided_slice %143 {offsets = [0, 1], sizes = [16, 1], strides = [1, 1]} : vector<16x3xf32> to vector<16x1xf32>
    %150 = vector.extract_strided_slice %7 {offsets = [0, 1], sizes = [1, 58], strides = [1, 1]} : vector<1x60xf32> to vector<1x58xf32>
    %151 = vector.broadcast %149 : vector<16x1xf32> to vector<16x58xf32>
    %152 = vector.broadcast %150 : vector<1x58xf32> to vector<16x58xf32>
    %153 = arith.mulf %151, %152 : vector<16x58xf32>
    %154 = arith.addf %148, %153 : vector<16x58xf32>
    %155 = vector.extract_strided_slice %143 {offsets = [0, 2], sizes = [16, 1], strides = [1, 1]} : vector<16x3xf32> to vector<16x1xf32>
    %156 = vector.extract_strided_slice %7 {offsets = [0, 2], sizes = [1, 58], strides = [1, 1]} : vector<1x60xf32> to vector<1x58xf32>
    %157 = vector.broadcast %155 : vector<16x1xf32> to vector<16x58xf32>
    %158 = vector.broadcast %156 : vector<1x58xf32> to vector<16x58xf32>
    %159 = arith.mulf %157, %158 : vector<16x58xf32>
    %160 = arith.addf %154, %159 : vector<16x58xf32>
    %c1_47 = arith.constant 1 : index
    %c0_48 = arith.constant 0 : index
    %c0_49 = arith.constant 0 : index
    %161 = vector.load %arg2[%c1_47, %c0_48, %c0_49] : memref<3x16x3xf32, #tpu.memory_space<vmem>>, vector<1x16x3xf32>
    %162 = vector.shape_cast %161 : vector<1x16x3xf32> to vector<16x3xf32>
    %163 = vector.extract_strided_slice %162 {offsets = [0, 0], sizes = [16, 1], strides = [1, 1]} : vector<16x3xf32> to vector<16x1xf32>
    %164 = vector.extract_strided_slice %14 {offsets = [0, 0], sizes = [1, 58], strides = [1, 1]} : vector<1x60xf32> to vector<1x58xf32>
    %165 = vector.broadcast %163 : vector<16x1xf32> to vector<16x58xf32>
    %166 = vector.broadcast %164 : vector<1x58xf32> to vector<16x58xf32>
    %167 = arith.mulf %165, %166 : vector<16x58xf32>
    %168 = vector.extract_strided_slice %162 {offsets = [0, 1], sizes = [16, 1], strides = [1, 1]} : vector<16x3xf32> to vector<16x1xf32>
    %169 = vector.extract_strided_slice %14 {offsets = [0, 1], sizes = [1, 58], strides = [1, 1]} : vector<1x60xf32> to vector<1x58xf32>
    %170 = vector.broadcast %168 : vector<16x1xf32> to vector<16x58xf32>
    %171 = vector.broadcast %169 : vector<1x58xf32> to vector<16x58xf32>
    %172 = arith.mulf %170, %171 : vector<16x58xf32>
    %173 = arith.addf %167, %172 : vector<16x58xf32>
    %174 = vector.extract_strided_slice %162 {offsets = [0, 2], sizes = [16, 1], strides = [1, 1]} : vector<16x3xf32> to vector<16x1xf32>
    %175 = vector.extract_strided_slice %14 {offsets = [0, 2], sizes = [1, 58], strides = [1, 1]} : vector<1x60xf32> to vector<1x58xf32>
    %176 = vector.broadcast %174 : vector<16x1xf32> to vector<16x58xf32>
    %177 = vector.broadcast %175 : vector<1x58xf32> to vector<16x58xf32>
    %178 = arith.mulf %176, %177 : vector<16x58xf32>
    %179 = arith.addf %173, %178 : vector<16x58xf32>
    %180 = arith.addf %160, %179 : vector<16x58xf32>
    %c2_50 = arith.constant 2 : index
    %c0_51 = arith.constant 0 : index
    %c0_52 = arith.constant 0 : index
    %181 = vector.load %arg2[%c2_50, %c0_51, %c0_52] : memref<3x16x3xf32, #tpu.memory_space<vmem>>, vector<1x16x3xf32>
    %182 = vector.shape_cast %181 : vector<1x16x3xf32> to vector<16x3xf32>
    %183 = vector.extract_strided_slice %182 {offsets = [0, 0], sizes = [16, 1], strides = [1, 1]} : vector<16x3xf32> to vector<16x1xf32>
    %184 = vector.extract_strided_slice %14 {offsets = [0, 0], sizes = [1, 58], strides = [1, 1]} : vector<1x60xf32> to vector<1x58xf32>
    %185 = vector.broadcast %183 : vector<16x1xf32> to vector<16x58xf32>
    %186 = vector.broadcast %184 : vector<1x58xf32> to vector<16x58xf32>
    %187 = arith.mulf %185, %186 : vector<16x58xf32>
    %188 = vector.extract_strided_slice %182 {offsets = [0, 1], sizes = [16, 1], strides = [1, 1]} : vector<16x3xf32> to vector<16x1xf32>
    %189 = vector.extract_strided_slice %14 {offsets = [0, 1], sizes = [1, 58], strides = [1, 1]} : vector<1x60xf32> to vector<1x58xf32>
    %190 = vector.broadcast %188 : vector<16x1xf32> to vector<16x58xf32>
    %191 = vector.broadcast %189 : vector<1x58xf32> to vector<16x58xf32>
    %192 = arith.mulf %190, %191 : vector<16x58xf32>
    %193 = arith.addf %187, %192 : vector<16x58xf32>
    %194 = vector.extract_strided_slice %182 {offsets = [0, 2], sizes = [16, 1], strides = [1, 1]} : vector<16x3xf32> to vector<16x1xf32>
    %195 = vector.extract_strided_slice %14 {offsets = [0, 2], sizes = [1, 58], strides = [1, 1]} : vector<1x60xf32> to vector<1x58xf32>
    %196 = vector.broadcast %194 : vector<16x1xf32> to vector<16x58xf32>
    %197 = vector.broadcast %195 : vector<1x58xf32> to vector<16x58xf32>
    %198 = arith.mulf %196, %197 : vector<16x58xf32>
    %199 = arith.addf %193, %198 : vector<16x58xf32>
    %200 = arith.addf %180, %199 : vector<16x58xf32>
    %201 = vector.broadcast %15 : vector<16x1xf32> to vector<16x58xf32>
    %202 = arith.addf %200, %201 : vector<16x58xf32>
    %cst_53 = arith.constant 0.000000e+00 : f32
    %203 = vector.broadcast %cst_53 : f32 to vector<16x58xf32>
    %204 = arith.maximumf %202, %203 : vector<16x58xf32>
    %cst_54 = arith.constant 0.000000e+00 : f32
    %205 = vector.broadcast %cst_54 : f32 to vector<16x58xf32>
    %206 = arith.maximumf %205, %78 : vector<16x58xf32>
    %cst_55 = arith.constant 0.000000e+00 : f32
    %207 = vector.broadcast %cst_55 : f32 to vector<16x1xf32>
    %cst_56 = arith.constant 0.000000e+00 : f32
    %208 = vector.broadcast %cst_56 : f32 to vector<16x3xf32>
    %209 = tpu.concatenate %207, %206, %208 in 1 : vector<16x1xf32>, vector<16x58xf32>, vector<16x3xf32> -> vector<16x62xf32>
    %210 = vector.extract_strided_slice %209 {offsets = [0, 0], sizes = [16, 60], strides = [1, 1]} : vector<16x62xf32> to vector<16x60xf32>
    %211 = vector.extract_strided_slice %209 {offsets = [0, 1], sizes = [16, 60], strides = [1, 1]} : vector<16x62xf32> to vector<16x60xf32>
    %212 = arith.maximumf %210, %211 : vector<16x60xf32>
    %213 = vector.extract_strided_slice %209 {offsets = [0, 2], sizes = [16, 60], strides = [1, 1]} : vector<16x62xf32> to vector<16x60xf32>
    %214 = arith.maximumf %212, %213 : vector<16x60xf32>
    %cst_57 = arith.constant dense<0.000000e+00> : vector<16x20xf32>
    %215 = tpu.matmul %214, %0, %cst_57 {dimension_numbers = #tpu.dot_dimension_numbers<[1], [0], [0], [1], [0, 0, 1, 1], [], []>} : vector<16x60xf32>, vector<60x20xf32>, vector<16x20xf32> -> vector<16x20xf32>
    %216 = arith.maximumf %141, %204 : vector<16x58xf32>
    %cst_58 = arith.constant 0.000000e+00 : f32
    %217 = vector.broadcast %cst_58 : f32 to vector<16x1xf32>
    %cst_59 = arith.constant 0.000000e+00 : f32
    %218 = vector.broadcast %cst_59 : f32 to vector<16x3xf32>
    %219 = tpu.concatenate %217, %216, %218 in 1 : vector<16x1xf32>, vector<16x58xf32>, vector<16x3xf32> -> vector<16x62xf32>
    %220 = vector.extract_strided_slice %219 {offsets = [0, 0], sizes = [16, 60], strides = [1, 1]} : vector<16x62xf32> to vector<16x60xf32>
    %221 = vector.extract_strided_slice %219 {offsets = [0, 1], sizes = [16, 60], strides = [1, 1]} : vector<16x62xf32> to vector<16x60xf32>
    %222 = arith.maximumf %220, %221 : vector<16x60xf32>
    %223 = vector.extract_strided_slice %219 {offsets = [0, 2], sizes = [16, 60], strides = [1, 1]} : vector<16x62xf32> to vector<16x60xf32>
    %224 = arith.maximumf %222, %223 : vector<16x60xf32>
    %cst_60 = arith.constant dense<0.000000e+00> : vector<16x20xf32>
    %225 = tpu.matmul %224, %0, %cst_60 {dimension_numbers = #tpu.dot_dimension_numbers<[1], [0], [0], [1], [0, 0, 1, 1], [], []>} : vector<16x60xf32>, vector<60x20xf32>, vector<16x20xf32> -> vector<16x20xf32>
    %c0_61 = arith.constant 0 : index
    %c0_62 = arith.constant 0 : index
    %226 = vector.load %arg5[%c0_61, %c0_62] : memref<16x1xf32, #tpu.memory_space<vmem>>, vector<16x1xf32>
    %c0_63 = arith.constant 0 : index
    %c0_64 = arith.constant 0 : index
    %c0_65 = arith.constant 0 : index
    %227 = vector.load %arg4[%c0_63, %c0_64, %c0_65] : memref<3x16x3xf32, #tpu.memory_space<vmem>>, vector<1x16x3xf32>
    %228 = vector.shape_cast %227 : vector<1x16x3xf32> to vector<16x3xf32>
    %229 = vector.extract_strided_slice %228 {offsets = [0, 0], sizes = [16, 1], strides = [1, 1]} : vector<16x3xf32> to vector<16x1xf32>
    %230 = vector.extract_strided_slice %14 {offsets = [0, 0], sizes = [1, 58], strides = [1, 1]} : vector<1x60xf32> to vector<1x58xf32>
    %231 = vector.broadcast %229 : vector<16x1xf32> to vector<16x58xf32>
    %232 = vector.broadcast %230 : vector<1x58xf32> to vector<16x58xf32>
    %233 = arith.mulf %231, %232 : vector<16x58xf32>
    %234 = vector.extract_strided_slice %228 {offsets = [0, 1], sizes = [16, 1], strides = [1, 1]} : vector<16x3xf32> to vector<16x1xf32>
    %235 = vector.extract_strided_slice %14 {offsets = [0, 1], sizes = [1, 58], strides = [1, 1]} : vector<1x60xf32> to vector<1x58xf32>
    %236 = vector.broadcast %234 : vector<16x1xf32> to vector<16x58xf32>
    %237 = vector.broadcast %235 : vector<1x58xf32> to vector<16x58xf32>
    %238 = arith.mulf %236, %237 : vector<16x58xf32>
    %239 = arith.addf %233, %238 : vector<16x58xf32>
    %240 = vector.extract_strided_slice %228 {offsets = [0, 2], sizes = [16, 1], strides = [1, 1]} : vector<16x3xf32> to vector<16x1xf32>
    %241 = vector.extract_strided_slice %14 {offsets = [0, 2], sizes = [1, 58], strides = [1, 1]} : vector<1x60xf32> to vector<1x58xf32>
    %242 = vector.broadcast %240 : vector<16x1xf32> to vector<16x58xf32>
    %243 = vector.broadcast %241 : vector<1x58xf32> to vector<16x58xf32>
    %244 = arith.mulf %242, %243 : vector<16x58xf32>
    %245 = arith.addf %239, %244 : vector<16x58xf32>
    %c1_66 = arith.constant 1 : index
    %c0_67 = arith.constant 0 : index
    %c0_68 = arith.constant 0 : index
    %246 = vector.load %arg4[%c1_66, %c0_67, %c0_68] : memref<3x16x3xf32, #tpu.memory_space<vmem>>, vector<1x16x3xf32>
    %247 = vector.shape_cast %246 : vector<1x16x3xf32> to vector<16x3xf32>
    %248 = vector.extract_strided_slice %247 {offsets = [0, 0], sizes = [16, 1], strides = [1, 1]} : vector<16x3xf32> to vector<16x1xf32>
    %249 = vector.extract_strided_slice %14 {offsets = [0, 0], sizes = [1, 58], strides = [1, 1]} : vector<1x60xf32> to vector<1x58xf32>
    %250 = vector.broadcast %248 : vector<16x1xf32> to vector<16x58xf32>
    %251 = vector.broadcast %249 : vector<1x58xf32> to vector<16x58xf32>
    %252 = arith.mulf %250, %251 : vector<16x58xf32>
    %253 = vector.extract_strided_slice %247 {offsets = [0, 1], sizes = [16, 1], strides = [1, 1]} : vector<16x3xf32> to vector<16x1xf32>
    %254 = vector.extract_strided_slice %14 {offsets = [0, 1], sizes = [1, 58], strides = [1, 1]} : vector<1x60xf32> to vector<1x58xf32>
    %255 = vector.broadcast %253 : vector<16x1xf32> to vector<16x58xf32>
    %256 = vector.broadcast %254 : vector<1x58xf32> to vector<16x58xf32>
    %257 = arith.mulf %255, %256 : vector<16x58xf32>
    %258 = arith.addf %252, %257 : vector<16x58xf32>
    %259 = vector.extract_strided_slice %247 {offsets = [0, 2], sizes = [16, 1], strides = [1, 1]} : vector<16x3xf32> to vector<16x1xf32>
    %260 = vector.extract_strided_slice %14 {offsets = [0, 2], sizes = [1, 58], strides = [1, 1]} : vector<1x60xf32> to vector<1x58xf32>
    %261 = vector.broadcast %259 : vector<16x1xf32> to vector<16x58xf32>
    %262 = vector.broadcast %260 : vector<1x58xf32> to vector<16x58xf32>
    %263 = arith.mulf %261, %262 : vector<16x58xf32>
    %264 = arith.addf %258, %263 : vector<16x58xf32>
    %265 = arith.addf %245, %264 : vector<16x58xf32>
    %c2_69 = arith.constant 2 : index
    %c0_70 = arith.constant 0 : index
    %c0_71 = arith.constant 0 : index
    %266 = vector.load %arg4[%c2_69, %c0_70, %c0_71] : memref<3x16x3xf32, #tpu.memory_space<vmem>>, vector<1x16x3xf32>
    %267 = vector.shape_cast %266 : vector<1x16x3xf32> to vector<16x3xf32>
    %268 = vector.extract_strided_slice %267 {offsets = [0, 0], sizes = [16, 1], strides = [1, 1]} : vector<16x3xf32> to vector<16x1xf32>
    %269 = vector.extract_strided_slice %9 {offsets = [0, 0], sizes = [1, 58], strides = [1, 1]} : vector<1x60xf32> to vector<1x58xf32>
    %270 = vector.broadcast %268 : vector<16x1xf32> to vector<16x58xf32>
    %271 = vector.broadcast %269 : vector<1x58xf32> to vector<16x58xf32>
    %272 = arith.mulf %270, %271 : vector<16x58xf32>
    %273 = vector.extract_strided_slice %267 {offsets = [0, 1], sizes = [16, 1], strides = [1, 1]} : vector<16x3xf32> to vector<16x1xf32>
    %274 = vector.extract_strided_slice %9 {offsets = [0, 1], sizes = [1, 58], strides = [1, 1]} : vector<1x60xf32> to vector<1x58xf32>
    %275 = vector.broadcast %273 : vector<16x1xf32> to vector<16x58xf32>
    %276 = vector.broadcast %274 : vector<1x58xf32> to vector<16x58xf32>
    %277 = arith.mulf %275, %276 : vector<16x58xf32>
    %278 = arith.addf %272, %277 : vector<16x58xf32>
    %279 = vector.extract_strided_slice %267 {offsets = [0, 2], sizes = [16, 1], strides = [1, 1]} : vector<16x3xf32> to vector<16x1xf32>
    %280 = vector.extract_strided_slice %9 {offsets = [0, 2], sizes = [1, 58], strides = [1, 1]} : vector<1x60xf32> to vector<1x58xf32>
    %281 = vector.broadcast %279 : vector<16x1xf32> to vector<16x58xf32>
    %282 = vector.broadcast %280 : vector<1x58xf32> to vector<16x58xf32>
    %283 = arith.mulf %281, %282 : vector<16x58xf32>
    %284 = arith.addf %278, %283 : vector<16x58xf32>
    %285 = arith.addf %265, %284 : vector<16x58xf32>
    %286 = vector.broadcast %226 : vector<16x1xf32> to vector<16x58xf32>
    %287 = arith.addf %285, %286 : vector<16x58xf32>
    %cst_72 = arith.constant 0.000000e+00 : f32
    %288 = vector.broadcast %cst_72 : f32 to vector<16x58xf32>
    %289 = arith.maximumf %287, %288 : vector<16x58xf32>
    %c0_73 = arith.constant 0 : index
    %c0_74 = arith.constant 0 : index
    %c0_75 = arith.constant 0 : index
    %290 = vector.load %arg4[%c0_73, %c0_74, %c0_75] : memref<3x16x3xf32, #tpu.memory_space<vmem>>, vector<1x16x3xf32>
    %291 = vector.shape_cast %290 : vector<1x16x3xf32> to vector<16x3xf32>
    %292 = vector.extract_strided_slice %291 {offsets = [0, 0], sizes = [16, 1], strides = [1, 1]} : vector<16x3xf32> to vector<16x1xf32>
    %293 = vector.extract_strided_slice %14 {offsets = [0, 0], sizes = [1, 58], strides = [1, 1]} : vector<1x60xf32> to vector<1x58xf32>
    %294 = vector.broadcast %292 : vector<16x1xf32> to vector<16x58xf32>
    %295 = vector.broadcast %293 : vector<1x58xf32> to vector<16x58xf32>
    %296 = arith.mulf %294, %295 : vector<16x58xf32>
    %297 = vector.extract_strided_slice %291 {offsets = [0, 1], sizes = [16, 1], strides = [1, 1]} : vector<16x3xf32> to vector<16x1xf32>
    %298 = vector.extract_strided_slice %14 {offsets = [0, 1], sizes = [1, 58], strides = [1, 1]} : vector<1x60xf32> to vector<1x58xf32>
    %299 = vector.broadcast %297 : vector<16x1xf32> to vector<16x58xf32>
    %300 = vector.broadcast %298 : vector<1x58xf32> to vector<16x58xf32>
    %301 = arith.mulf %299, %300 : vector<16x58xf32>
    %302 = arith.addf %296, %301 : vector<16x58xf32>
    %303 = vector.extract_strided_slice %291 {offsets = [0, 2], sizes = [16, 1], strides = [1, 1]} : vector<16x3xf32> to vector<16x1xf32>
    %304 = vector.extract_strided_slice %14 {offsets = [0, 2], sizes = [1, 58], strides = [1, 1]} : vector<1x60xf32> to vector<1x58xf32>
    %305 = vector.broadcast %303 : vector<16x1xf32> to vector<16x58xf32>
    %306 = vector.broadcast %304 : vector<1x58xf32> to vector<16x58xf32>
    %307 = arith.mulf %305, %306 : vector<16x58xf32>
    %308 = arith.addf %302, %307 : vector<16x58xf32>
    %c1_76 = arith.constant 1 : index
    %c0_77 = arith.constant 0 : index
    %c0_78 = arith.constant 0 : index
    %309 = vector.load %arg4[%c1_76, %c0_77, %c0_78] : memref<3x16x3xf32, #tpu.memory_space<vmem>>, vector<1x16x3xf32>
    %310 = vector.shape_cast %309 : vector<1x16x3xf32> to vector<16x3xf32>
    %311 = vector.extract_strided_slice %310 {offsets = [0, 0], sizes = [16, 1], strides = [1, 1]} : vector<16x3xf32> to vector<16x1xf32>
    %312 = vector.extract_strided_slice %9 {offsets = [0, 0], sizes = [1, 58], strides = [1, 1]} : vector<1x60xf32> to vector<1x58xf32>
    %313 = vector.broadcast %311 : vector<16x1xf32> to vector<16x58xf32>
    %314 = vector.broadcast %312 : vector<1x58xf32> to vector<16x58xf32>
    %315 = arith.mulf %313, %314 : vector<16x58xf32>
    %316 = vector.extract_strided_slice %310 {offsets = [0, 1], sizes = [16, 1], strides = [1, 1]} : vector<16x3xf32> to vector<16x1xf32>
    %317 = vector.extract_strided_slice %9 {offsets = [0, 1], sizes = [1, 58], strides = [1, 1]} : vector<1x60xf32> to vector<1x58xf32>
    %318 = vector.broadcast %316 : vector<16x1xf32> to vector<16x58xf32>
    %319 = vector.broadcast %317 : vector<1x58xf32> to vector<16x58xf32>
    %320 = arith.mulf %318, %319 : vector<16x58xf32>
    %321 = arith.addf %315, %320 : vector<16x58xf32>
    %322 = vector.extract_strided_slice %310 {offsets = [0, 2], sizes = [16, 1], strides = [1, 1]} : vector<16x3xf32> to vector<16x1xf32>
    %323 = vector.extract_strided_slice %9 {offsets = [0, 2], sizes = [1, 58], strides = [1, 1]} : vector<1x60xf32> to vector<1x58xf32>
    %324 = vector.broadcast %322 : vector<16x1xf32> to vector<16x58xf32>
    %325 = vector.broadcast %323 : vector<1x58xf32> to vector<16x58xf32>
    %326 = arith.mulf %324, %325 : vector<16x58xf32>
    %327 = arith.addf %321, %326 : vector<16x58xf32>
    %328 = arith.addf %308, %327 : vector<16x58xf32>
    %c2_79 = arith.constant 2 : index
    %c0_80 = arith.constant 0 : index
    %c0_81 = arith.constant 0 : index
    %329 = vector.load %arg4[%c2_79, %c0_80, %c0_81] : memref<3x16x3xf32, #tpu.memory_space<vmem>>, vector<1x16x3xf32>
    %330 = vector.shape_cast %329 : vector<1x16x3xf32> to vector<16x3xf32>
    %331 = vector.extract_strided_slice %330 {offsets = [0, 0], sizes = [16, 1], strides = [1, 1]} : vector<16x3xf32> to vector<16x1xf32>
    %332 = vector.extract_strided_slice %11 {offsets = [0, 0], sizes = [1, 58], strides = [1, 1]} : vector<1x60xf32> to vector<1x58xf32>
    %333 = vector.broadcast %331 : vector<16x1xf32> to vector<16x58xf32>
    %334 = vector.broadcast %332 : vector<1x58xf32> to vector<16x58xf32>
    %335 = arith.mulf %333, %334 : vector<16x58xf32>
    %336 = vector.extract_strided_slice %330 {offsets = [0, 1], sizes = [16, 1], strides = [1, 1]} : vector<16x3xf32> to vector<16x1xf32>
    %337 = vector.extract_strided_slice %11 {offsets = [0, 1], sizes = [1, 58], strides = [1, 1]} : vector<1x60xf32> to vector<1x58xf32>
    %338 = vector.broadcast %336 : vector<16x1xf32> to vector<16x58xf32>
    %339 = vector.broadcast %337 : vector<1x58xf32> to vector<16x58xf32>
    %340 = arith.mulf %338, %339 : vector<16x58xf32>
    %341 = arith.addf %335, %340 : vector<16x58xf32>
    %342 = vector.extract_strided_slice %330 {offsets = [0, 2], sizes = [16, 1], strides = [1, 1]} : vector<16x3xf32> to vector<16x1xf32>
    %343 = vector.extract_strided_slice %11 {offsets = [0, 2], sizes = [1, 58], strides = [1, 1]} : vector<1x60xf32> to vector<1x58xf32>
    %344 = vector.broadcast %342 : vector<16x1xf32> to vector<16x58xf32>
    %345 = vector.broadcast %343 : vector<1x58xf32> to vector<16x58xf32>
    %346 = arith.mulf %344, %345 : vector<16x58xf32>
    %347 = arith.addf %341, %346 : vector<16x58xf32>
    %348 = arith.addf %328, %347 : vector<16x58xf32>
    %349 = vector.broadcast %226 : vector<16x1xf32> to vector<16x58xf32>
    %350 = arith.addf %348, %349 : vector<16x58xf32>
    %cst_82 = arith.constant 0.000000e+00 : f32
    %351 = vector.broadcast %cst_82 : f32 to vector<16x58xf32>
    %352 = arith.maximumf %350, %351 : vector<16x58xf32>
    %c0_83 = arith.constant 0 : index
    %c0_84 = arith.constant 0 : index
    %c0_85 = arith.constant 0 : index
    %353 = vector.load %arg4[%c0_83, %c0_84, %c0_85] : memref<3x16x3xf32, #tpu.memory_space<vmem>>, vector<1x16x3xf32>
    %354 = vector.shape_cast %353 : vector<1x16x3xf32> to vector<16x3xf32>
    %355 = vector.extract_strided_slice %354 {offsets = [0, 0], sizes = [16, 1], strides = [1, 1]} : vector<16x3xf32> to vector<16x1xf32>
    %356 = vector.extract_strided_slice %9 {offsets = [0, 0], sizes = [1, 58], strides = [1, 1]} : vector<1x60xf32> to vector<1x58xf32>
    %357 = vector.broadcast %355 : vector<16x1xf32> to vector<16x58xf32>
    %358 = vector.broadcast %356 : vector<1x58xf32> to vector<16x58xf32>
    %359 = arith.mulf %357, %358 : vector<16x58xf32>
    %360 = vector.extract_strided_slice %354 {offsets = [0, 1], sizes = [16, 1], strides = [1, 1]} : vector<16x3xf32> to vector<16x1xf32>
    %361 = vector.extract_strided_slice %9 {offsets = [0, 1], sizes = [1, 58], strides = [1, 1]} : vector<1x60xf32> to vector<1x58xf32>
    %362 = vector.broadcast %360 : vector<16x1xf32> to vector<16x58xf32>
    %363 = vector.broadcast %361 : vector<1x58xf32> to vector<16x58xf32>
    %364 = arith.mulf %362, %363 : vector<16x58xf32>
    %365 = arith.addf %359, %364 : vector<16x58xf32>
    %366 = vector.extract_strided_slice %354 {offsets = [0, 2], sizes = [16, 1], strides = [1, 1]} : vector<16x3xf32> to vector<16x1xf32>
    %367 = vector.extract_strided_slice %9 {offsets = [0, 2], sizes = [1, 58], strides = [1, 1]} : vector<1x60xf32> to vector<1x58xf32>
    %368 = vector.broadcast %366 : vector<16x1xf32> to vector<16x58xf32>
    %369 = vector.broadcast %367 : vector<1x58xf32> to vector<16x58xf32>
    %370 = arith.mulf %368, %369 : vector<16x58xf32>
    %371 = arith.addf %365, %370 : vector<16x58xf32>
    %c1_86 = arith.constant 1 : index
    %c0_87 = arith.constant 0 : index
    %c0_88 = arith.constant 0 : index
    %372 = vector.load %arg4[%c1_86, %c0_87, %c0_88] : memref<3x16x3xf32, #tpu.memory_space<vmem>>, vector<1x16x3xf32>
    %373 = vector.shape_cast %372 : vector<1x16x3xf32> to vector<16x3xf32>
    %374 = vector.extract_strided_slice %373 {offsets = [0, 0], sizes = [16, 1], strides = [1, 1]} : vector<16x3xf32> to vector<16x1xf32>
    %375 = vector.extract_strided_slice %11 {offsets = [0, 0], sizes = [1, 58], strides = [1, 1]} : vector<1x60xf32> to vector<1x58xf32>
    %376 = vector.broadcast %374 : vector<16x1xf32> to vector<16x58xf32>
    %377 = vector.broadcast %375 : vector<1x58xf32> to vector<16x58xf32>
    %378 = arith.mulf %376, %377 : vector<16x58xf32>
    %379 = vector.extract_strided_slice %373 {offsets = [0, 1], sizes = [16, 1], strides = [1, 1]} : vector<16x3xf32> to vector<16x1xf32>
    %380 = vector.extract_strided_slice %11 {offsets = [0, 1], sizes = [1, 58], strides = [1, 1]} : vector<1x60xf32> to vector<1x58xf32>
    %381 = vector.broadcast %379 : vector<16x1xf32> to vector<16x58xf32>
    %382 = vector.broadcast %380 : vector<1x58xf32> to vector<16x58xf32>
    %383 = arith.mulf %381, %382 : vector<16x58xf32>
    %384 = arith.addf %378, %383 : vector<16x58xf32>
    %385 = vector.extract_strided_slice %373 {offsets = [0, 2], sizes = [16, 1], strides = [1, 1]} : vector<16x3xf32> to vector<16x1xf32>
    %386 = vector.extract_strided_slice %11 {offsets = [0, 2], sizes = [1, 58], strides = [1, 1]} : vector<1x60xf32> to vector<1x58xf32>
    %387 = vector.broadcast %385 : vector<16x1xf32> to vector<16x58xf32>
    %388 = vector.broadcast %386 : vector<1x58xf32> to vector<16x58xf32>
    %389 = arith.mulf %387, %388 : vector<16x58xf32>
    %390 = arith.addf %384, %389 : vector<16x58xf32>
    %391 = arith.addf %371, %390 : vector<16x58xf32>
    %c2_89 = arith.constant 2 : index
    %c0_90 = arith.constant 0 : index
    %c0_91 = arith.constant 0 : index
    %392 = vector.load %arg4[%c2_89, %c0_90, %c0_91] : memref<3x16x3xf32, #tpu.memory_space<vmem>>, vector<1x16x3xf32>
    %393 = vector.shape_cast %392 : vector<1x16x3xf32> to vector<16x3xf32>
    %394 = vector.extract_strided_slice %393 {offsets = [0, 0], sizes = [16, 1], strides = [1, 1]} : vector<16x3xf32> to vector<16x1xf32>
    %395 = vector.extract_strided_slice %13 {offsets = [0, 0], sizes = [1, 58], strides = [1, 1]} : vector<1x60xf32> to vector<1x58xf32>
    %396 = vector.broadcast %394 : vector<16x1xf32> to vector<16x58xf32>
    %397 = vector.broadcast %395 : vector<1x58xf32> to vector<16x58xf32>
    %398 = arith.mulf %396, %397 : vector<16x58xf32>
    %399 = vector.extract_strided_slice %393 {offsets = [0, 1], sizes = [16, 1], strides = [1, 1]} : vector<16x3xf32> to vector<16x1xf32>
    %400 = vector.extract_strided_slice %13 {offsets = [0, 1], sizes = [1, 58], strides = [1, 1]} : vector<1x60xf32> to vector<1x58xf32>
    %401 = vector.broadcast %399 : vector<16x1xf32> to vector<16x58xf32>
    %402 = vector.broadcast %400 : vector<1x58xf32> to vector<16x58xf32>
    %403 = arith.mulf %401, %402 : vector<16x58xf32>
    %404 = arith.addf %398, %403 : vector<16x58xf32>
    %405 = vector.extract_strided_slice %393 {offsets = [0, 2], sizes = [16, 1], strides = [1, 1]} : vector<16x3xf32> to vector<16x1xf32>
    %406 = vector.extract_strided_slice %13 {offsets = [0, 2], sizes = [1, 58], strides = [1, 1]} : vector<1x60xf32> to vector<1x58xf32>
    %407 = vector.broadcast %405 : vector<16x1xf32> to vector<16x58xf32>
    %408 = vector.broadcast %406 : vector<1x58xf32> to vector<16x58xf32>
    %409 = arith.mulf %407, %408 : vector<16x58xf32>
    %410 = arith.addf %404, %409 : vector<16x58xf32>
    %411 = arith.addf %391, %410 : vector<16x58xf32>
    %412 = vector.broadcast %226 : vector<16x1xf32> to vector<16x58xf32>
    %413 = arith.addf %411, %412 : vector<16x58xf32>
    %cst_92 = arith.constant 0.000000e+00 : f32
    %414 = vector.broadcast %cst_92 : f32 to vector<16x58xf32>
    %415 = arith.maximumf %413, %414 : vector<16x58xf32>
    %cst_93 = arith.constant 0.000000e+00 : f32
    %416 = vector.broadcast %cst_93 : f32 to vector<16x58xf32>
    %417 = arith.maximumf %416, %289 : vector<16x58xf32>
    %cst_94 = arith.constant 0.000000e+00 : f32
    %418 = vector.broadcast %cst_94 : f32 to vector<16x1xf32>
    %cst_95 = arith.constant 0.000000e+00 : f32
    %419 = vector.broadcast %cst_95 : f32 to vector<16x3xf32>
    %420 = tpu.concatenate %418, %417, %419 in 1 : vector<16x1xf32>, vector<16x58xf32>, vector<16x3xf32> -> vector<16x62xf32>
    %421 = vector.extract_strided_slice %420 {offsets = [0, 0], sizes = [16, 60], strides = [1, 1]} : vector<16x62xf32> to vector<16x60xf32>
    %422 = vector.extract_strided_slice %420 {offsets = [0, 1], sizes = [16, 60], strides = [1, 1]} : vector<16x62xf32> to vector<16x60xf32>
    %423 = arith.maximumf %421, %422 : vector<16x60xf32>
    %424 = vector.extract_strided_slice %420 {offsets = [0, 2], sizes = [16, 60], strides = [1, 1]} : vector<16x62xf32> to vector<16x60xf32>
    %425 = arith.maximumf %423, %424 : vector<16x60xf32>
    %cst_96 = arith.constant dense<0.000000e+00> : vector<16x20xf32>
    %426 = tpu.matmul %425, %0, %cst_96 {dimension_numbers = #tpu.dot_dimension_numbers<[1], [0], [0], [1], [0, 0, 1, 1], [], []>} : vector<16x60xf32>, vector<60x20xf32>, vector<16x20xf32> -> vector<16x20xf32>
    %427 = arith.maximumf %352, %415 : vector<16x58xf32>
    %cst_97 = arith.constant 0.000000e+00 : f32
    %428 = vector.broadcast %cst_97 : f32 to vector<16x1xf32>
    %cst_98 = arith.constant 0.000000e+00 : f32
    %429 = vector.broadcast %cst_98 : f32 to vector<16x3xf32>
    %430 = tpu.concatenate %428, %427, %429 in 1 : vector<16x1xf32>, vector<16x58xf32>, vector<16x3xf32> -> vector<16x62xf32>
    %431 = vector.extract_strided_slice %430 {offsets = [0, 0], sizes = [16, 60], strides = [1, 1]} : vector<16x62xf32> to vector<16x60xf32>
    %432 = vector.extract_strided_slice %430 {offsets = [0, 1], sizes = [16, 60], strides = [1, 1]} : vector<16x62xf32> to vector<16x60xf32>
    %433 = arith.maximumf %431, %432 : vector<16x60xf32>
    %434 = vector.extract_strided_slice %430 {offsets = [0, 2], sizes = [16, 60], strides = [1, 1]} : vector<16x62xf32> to vector<16x60xf32>
    %435 = arith.maximumf %433, %434 : vector<16x60xf32>
    %cst_99 = arith.constant dense<0.000000e+00> : vector<16x20xf32>
    %436 = tpu.matmul %435, %0, %cst_99 {dimension_numbers = #tpu.dot_dimension_numbers<[1], [0], [0], [1], [0, 0, 1, 1], [], []>} : vector<16x60xf32>, vector<60x20xf32>, vector<16x20xf32> -> vector<16x20xf32>
    %cst_100 = arith.constant 0.000000e+00 : f32
    %437 = vector.broadcast %cst_100 : f32 to vector<16x20xf32>
    %438 = tpu.concatenate %215, %437 in 0 : vector<16x20xf32>, vector<16x20xf32> -> vector<32x20xf32>
    %439 = tpu.concatenate %225, %437 in 0 : vector<16x20xf32>, vector<16x20xf32> -> vector<32x20xf32>
    %440 = tpu.concatenate %437, %426 in 0 : vector<16x20xf32>, vector<16x20xf32> -> vector<32x20xf32>
    %441 = tpu.concatenate %437, %436 in 0 : vector<16x20xf32>, vector<16x20xf32> -> vector<32x20xf32>
    %c0_101 = arith.constant 0 : index
    %c0_102 = arith.constant 0 : index
    %442 = vector.load %arg7[%c0_101, %c0_102] : memref<64x1xf32, #tpu.memory_space<vmem>>, vector<64x1xf32>
    %c0_103 = arith.constant 0 : index
    %c0_104 = arith.constant 0 : index
    %c0_105 = arith.constant 0 : index
    %443 = vector.load %arg6[%c0_103, %c0_104, %c0_105] : memref<3x64x160xf32, #tpu.memory_space<vmem>>, vector<1x64x160xf32>
    %444 = vector.shape_cast %443 : vector<1x64x160xf32> to vector<64x160xf32>
    %445 = vector.extract_strided_slice %438 {offsets = [0, 0], sizes = [32, 16], strides = [1, 1]} : vector<32x20xf32> to vector<32x16xf32>
    %446 = vector.extract_strided_slice %438 {offsets = [0, 1], sizes = [32, 16], strides = [1, 1]} : vector<32x20xf32> to vector<32x16xf32>
    %447 = vector.extract_strided_slice %438 {offsets = [0, 2], sizes = [32, 16], strides = [1, 1]} : vector<32x20xf32> to vector<32x16xf32>
    %448 = vector.extract_strided_slice %438 {offsets = [0, 3], sizes = [32, 16], strides = [1, 1]} : vector<32x20xf32> to vector<32x16xf32>
    %449 = vector.extract_strided_slice %438 {offsets = [0, 4], sizes = [32, 16], strides = [1, 1]} : vector<32x20xf32> to vector<32x16xf32>
    %450 = tpu.concatenate %445, %446, %447, %448, %449 in 0 : vector<32x16xf32>, vector<32x16xf32>, vector<32x16xf32>, vector<32x16xf32>, vector<32x16xf32> -> vector<160x16xf32>
    %cst_106 = arith.constant dense<0.000000e+00> : vector<64x16xf32>
    %451 = tpu.matmul %444, %450, %cst_106 {dimension_numbers = #tpu.dot_dimension_numbers<[1], [0], [0], [1], [0, 0, 1, 1], [], []>} : vector<64x160xf32>, vector<160x16xf32>, vector<64x16xf32> -> vector<64x16xf32>
    %c1_107 = arith.constant 1 : index
    %c0_108 = arith.constant 0 : index
    %c0_109 = arith.constant 0 : index
    %452 = vector.load %arg6[%c1_107, %c0_108, %c0_109] : memref<3x64x160xf32, #tpu.memory_space<vmem>>, vector<1x64x160xf32>
    %453 = vector.shape_cast %452 : vector<1x64x160xf32> to vector<64x160xf32>
    %454 = vector.extract_strided_slice %439 {offsets = [0, 0], sizes = [32, 16], strides = [1, 1]} : vector<32x20xf32> to vector<32x16xf32>
    %455 = vector.extract_strided_slice %439 {offsets = [0, 1], sizes = [32, 16], strides = [1, 1]} : vector<32x20xf32> to vector<32x16xf32>
    %456 = vector.extract_strided_slice %439 {offsets = [0, 2], sizes = [32, 16], strides = [1, 1]} : vector<32x20xf32> to vector<32x16xf32>
    %457 = vector.extract_strided_slice %439 {offsets = [0, 3], sizes = [32, 16], strides = [1, 1]} : vector<32x20xf32> to vector<32x16xf32>
    %458 = vector.extract_strided_slice %439 {offsets = [0, 4], sizes = [32, 16], strides = [1, 1]} : vector<32x20xf32> to vector<32x16xf32>
    %459 = tpu.concatenate %454, %455, %456, %457, %458 in 0 : vector<32x16xf32>, vector<32x16xf32>, vector<32x16xf32>, vector<32x16xf32>, vector<32x16xf32> -> vector<160x16xf32>
    %cst_110 = arith.constant dense<0.000000e+00> : vector<64x16xf32>
    %460 = tpu.matmul %453, %459, %cst_110 {dimension_numbers = #tpu.dot_dimension_numbers<[1], [0], [0], [1], [0, 0, 1, 1], [], []>} : vector<64x160xf32>, vector<160x16xf32>, vector<64x16xf32> -> vector<64x16xf32>
    %461 = arith.addf %451, %460 : vector<64x16xf32>
    %c2_111 = arith.constant 2 : index
    %c0_112 = arith.constant 0 : index
    %c0_113 = arith.constant 0 : index
    %462 = vector.load %arg6[%c2_111, %c0_112, %c0_113] : memref<3x64x160xf32, #tpu.memory_space<vmem>>, vector<1x64x160xf32>
    %463 = vector.shape_cast %462 : vector<1x64x160xf32> to vector<64x160xf32>
    %464 = vector.extract_strided_slice %440 {offsets = [0, 0], sizes = [32, 16], strides = [1, 1]} : vector<32x20xf32> to vector<32x16xf32>
    %465 = vector.extract_strided_slice %440 {offsets = [0, 1], sizes = [32, 16], strides = [1, 1]} : vector<32x20xf32> to vector<32x16xf32>
    %466 = vector.extract_strided_slice %440 {offsets = [0, 2], sizes = [32, 16], strides = [1, 1]} : vector<32x20xf32> to vector<32x16xf32>
    %467 = vector.extract_strided_slice %440 {offsets = [0, 3], sizes = [32, 16], strides = [1, 1]} : vector<32x20xf32> to vector<32x16xf32>
    %468 = vector.extract_strided_slice %440 {offsets = [0, 4], sizes = [32, 16], strides = [1, 1]} : vector<32x20xf32> to vector<32x16xf32>
    %469 = tpu.concatenate %464, %465, %466, %467, %468 in 0 : vector<32x16xf32>, vector<32x16xf32>, vector<32x16xf32>, vector<32x16xf32>, vector<32x16xf32> -> vector<160x16xf32>
    %cst_114 = arith.constant dense<0.000000e+00> : vector<64x16xf32>
    %470 = tpu.matmul %463, %469, %cst_114 {dimension_numbers = #tpu.dot_dimension_numbers<[1], [0], [0], [1], [0, 0, 1, 1], [], []>} : vector<64x160xf32>, vector<160x16xf32>, vector<64x16xf32> -> vector<64x16xf32>
    %471 = arith.addf %461, %470 : vector<64x16xf32>
    %472 = vector.broadcast %442 : vector<64x1xf32> to vector<64x16xf32>
    %473 = arith.addf %471, %472 : vector<64x16xf32>
    %cst_115 = arith.constant 0.000000e+00 : f32
    %474 = vector.broadcast %cst_115 : f32 to vector<64x16xf32>
    %475 = arith.maximumf %473, %474 : vector<64x16xf32>
    %c0_116 = arith.constant 0 : index
    %c0_117 = arith.constant 0 : index
    %c0_118 = arith.constant 0 : index
    %476 = vector.load %arg6[%c0_116, %c0_117, %c0_118] : memref<3x64x160xf32, #tpu.memory_space<vmem>>, vector<1x64x160xf32>
    %477 = vector.shape_cast %476 : vector<1x64x160xf32> to vector<64x160xf32>
    %478 = vector.extract_strided_slice %439 {offsets = [0, 0], sizes = [32, 16], strides = [1, 1]} : vector<32x20xf32> to vector<32x16xf32>
    %479 = vector.extract_strided_slice %439 {offsets = [0, 1], sizes = [32, 16], strides = [1, 1]} : vector<32x20xf32> to vector<32x16xf32>
    %480 = vector.extract_strided_slice %439 {offsets = [0, 2], sizes = [32, 16], strides = [1, 1]} : vector<32x20xf32> to vector<32x16xf32>
    %481 = vector.extract_strided_slice %439 {offsets = [0, 3], sizes = [32, 16], strides = [1, 1]} : vector<32x20xf32> to vector<32x16xf32>
    %482 = vector.extract_strided_slice %439 {offsets = [0, 4], sizes = [32, 16], strides = [1, 1]} : vector<32x20xf32> to vector<32x16xf32>
    %483 = tpu.concatenate %478, %479, %480, %481, %482 in 0 : vector<32x16xf32>, vector<32x16xf32>, vector<32x16xf32>, vector<32x16xf32>, vector<32x16xf32> -> vector<160x16xf32>
    %cst_119 = arith.constant dense<0.000000e+00> : vector<64x16xf32>
    %484 = tpu.matmul %477, %483, %cst_119 {dimension_numbers = #tpu.dot_dimension_numbers<[1], [0], [0], [1], [0, 0, 1, 1], [], []>} : vector<64x160xf32>, vector<160x16xf32>, vector<64x16xf32> -> vector<64x16xf32>
    %c1_120 = arith.constant 1 : index
    %c0_121 = arith.constant 0 : index
    %c0_122 = arith.constant 0 : index
    %485 = vector.load %arg6[%c1_120, %c0_121, %c0_122] : memref<3x64x160xf32, #tpu.memory_space<vmem>>, vector<1x64x160xf32>
    %486 = vector.shape_cast %485 : vector<1x64x160xf32> to vector<64x160xf32>
    %487 = vector.extract_strided_slice %440 {offsets = [0, 0], sizes = [32, 16], strides = [1, 1]} : vector<32x20xf32> to vector<32x16xf32>
    %488 = vector.extract_strided_slice %440 {offsets = [0, 1], sizes = [32, 16], strides = [1, 1]} : vector<32x20xf32> to vector<32x16xf32>
    %489 = vector.extract_strided_slice %440 {offsets = [0, 2], sizes = [32, 16], strides = [1, 1]} : vector<32x20xf32> to vector<32x16xf32>
    %490 = vector.extract_strided_slice %440 {offsets = [0, 3], sizes = [32, 16], strides = [1, 1]} : vector<32x20xf32> to vector<32x16xf32>
    %491 = vector.extract_strided_slice %440 {offsets = [0, 4], sizes = [32, 16], strides = [1, 1]} : vector<32x20xf32> to vector<32x16xf32>
    %492 = tpu.concatenate %487, %488, %489, %490, %491 in 0 : vector<32x16xf32>, vector<32x16xf32>, vector<32x16xf32>, vector<32x16xf32>, vector<32x16xf32> -> vector<160x16xf32>
    %cst_123 = arith.constant dense<0.000000e+00> : vector<64x16xf32>
    %493 = tpu.matmul %486, %492, %cst_123 {dimension_numbers = #tpu.dot_dimension_numbers<[1], [0], [0], [1], [0, 0, 1, 1], [], []>} : vector<64x160xf32>, vector<160x16xf32>, vector<64x16xf32> -> vector<64x16xf32>
    %494 = arith.addf %484, %493 : vector<64x16xf32>
    %c2_124 = arith.constant 2 : index
    %c0_125 = arith.constant 0 : index
    %c0_126 = arith.constant 0 : index
    %495 = vector.load %arg6[%c2_124, %c0_125, %c0_126] : memref<3x64x160xf32, #tpu.memory_space<vmem>>, vector<1x64x160xf32>
    %496 = vector.shape_cast %495 : vector<1x64x160xf32> to vector<64x160xf32>
    %497 = vector.extract_strided_slice %441 {offsets = [0, 0], sizes = [32, 16], strides = [1, 1]} : vector<32x20xf32> to vector<32x16xf32>
    %498 = vector.extract_strided_slice %441 {offsets = [0, 1], sizes = [32, 16], strides = [1, 1]} : vector<32x20xf32> to vector<32x16xf32>
    %499 = vector.extract_strided_slice %441 {offsets = [0, 2], sizes = [32, 16], strides = [1, 1]} : vector<32x20xf32> to vector<32x16xf32>
    %500 = vector.extract_strided_slice %441 {offsets = [0, 3], sizes = [32, 16], strides = [1, 1]} : vector<32x20xf32> to vector<32x16xf32>
    %501 = vector.extract_strided_slice %441 {offsets = [0, 4], sizes = [32, 16], strides = [1, 1]} : vector<32x20xf32> to vector<32x16xf32>
    %502 = tpu.concatenate %497, %498, %499, %500, %501 in 0 : vector<32x16xf32>, vector<32x16xf32>, vector<32x16xf32>, vector<32x16xf32>, vector<32x16xf32> -> vector<160x16xf32>
    %cst_127 = arith.constant dense<0.000000e+00> : vector<64x16xf32>
    %503 = tpu.matmul %496, %502, %cst_127 {dimension_numbers = #tpu.dot_dimension_numbers<[1], [0], [0], [1], [0, 0, 1, 1], [], []>} : vector<64x160xf32>, vector<160x16xf32>, vector<64x16xf32> -> vector<64x16xf32>
    %504 = arith.addf %494, %503 : vector<64x16xf32>
    %505 = vector.broadcast %442 : vector<64x1xf32> to vector<64x16xf32>
    %506 = arith.addf %504, %505 : vector<64x16xf32>
    %cst_128 = arith.constant 0.000000e+00 : f32
    %507 = vector.broadcast %cst_128 : f32 to vector<64x16xf32>
    %508 = arith.maximumf %506, %507 : vector<64x16xf32>
    %cst_129 = arith.constant 0.000000e+00 : f32
    %509 = vector.broadcast %cst_129 : f32 to vector<64x16xf32>
    %510 = arith.maximumf %509, %475 : vector<64x16xf32>
    %cst_130 = arith.constant 0.000000e+00 : f32
    %511 = vector.broadcast %cst_130 : f32 to vector<64x1xf32>
    %cst_131 = arith.constant 0.000000e+00 : f32
    %512 = vector.broadcast %cst_131 : f32 to vector<64x3xf32>
    %513 = tpu.concatenate %511, %510, %512 in 1 : vector<64x1xf32>, vector<64x16xf32>, vector<64x3xf32> -> vector<64x20xf32>
    %514 = vector.extract_strided_slice %513 {offsets = [0, 0], sizes = [64, 18], strides = [1, 1]} : vector<64x20xf32> to vector<64x18xf32>
    %515 = vector.extract_strided_slice %513 {offsets = [0, 1], sizes = [64, 18], strides = [1, 1]} : vector<64x20xf32> to vector<64x18xf32>
    %516 = arith.maximumf %514, %515 : vector<64x18xf32>
    %517 = vector.extract_strided_slice %513 {offsets = [0, 2], sizes = [64, 18], strides = [1, 1]} : vector<64x20xf32> to vector<64x18xf32>
    %518 = arith.maximumf %516, %517 : vector<64x18xf32>
    %cst_132 = arith.constant dense<0.000000e+00> : vector<64x6xf32>
    %519 = tpu.matmul %518, %1, %cst_132 {dimension_numbers = #tpu.dot_dimension_numbers<[1], [0], [0], [1], [0, 0, 1, 1], [], []>} : vector<64x18xf32>, vector<18x6xf32>, vector<64x6xf32> -> vector<64x6xf32>
    %520 = arith.maximumf %508, %509 : vector<64x16xf32>
    %cst_133 = arith.constant 0.000000e+00 : f32
    %521 = vector.broadcast %cst_133 : f32 to vector<64x1xf32>
    %cst_134 = arith.constant 0.000000e+00 : f32
    %522 = vector.broadcast %cst_134 : f32 to vector<64x3xf32>
    %523 = tpu.concatenate %521, %520, %522 in 1 : vector<64x1xf32>, vector<64x16xf32>, vector<64x3xf32> -> vector<64x20xf32>
    %524 = vector.extract_strided_slice %523 {offsets = [0, 0], sizes = [64, 18], strides = [1, 1]} : vector<64x20xf32> to vector<64x18xf32>
    %525 = vector.extract_strided_slice %523 {offsets = [0, 1], sizes = [64, 18], strides = [1, 1]} : vector<64x20xf32> to vector<64x18xf32>
    %526 = arith.maximumf %524, %525 : vector<64x18xf32>
    %527 = vector.extract_strided_slice %523 {offsets = [0, 2], sizes = [64, 18], strides = [1, 1]} : vector<64x20xf32> to vector<64x18xf32>
    %528 = arith.maximumf %526, %527 : vector<64x18xf32>
    %cst_135 = arith.constant dense<0.000000e+00> : vector<64x6xf32>
    %529 = tpu.matmul %528, %1, %cst_135 {dimension_numbers = #tpu.dot_dimension_numbers<[1], [0], [0], [1], [0, 0, 1, 1], [], []>} : vector<64x18xf32>, vector<18x6xf32>, vector<64x6xf32> -> vector<64x6xf32>
    %530 = tpu.concatenate %519, %529 in 1 : vector<64x6xf32>, vector<64x6xf32> -> vector<64x12xf32>
    %c0_136 = arith.constant 0 : index
    %c0_137 = arith.constant 0 : index
    %c0_138 = arith.constant 0 : index
    %531 = vector.load %arg10[%c0_136, %c0_137, %c0_138] : memref<1x64x12xf32, #tpu.memory_space<vmem>>, vector<1x64x12xf32>
    %532 = vector.shape_cast %531 : vector<1x64x12xf32> to vector<64x12xf32>
    %533 = vector.shape_cast %530 : vector<64x12xf32> to vector<1x64x12xf32>
    tpu.vector_store %arg10[%c0_136, %c0_137, %c0_138], %533 {strides = array<i32>} : memref<1x64x12xf32, #tpu.memory_space<vmem>>, vector<1x64x12xf32>,
    return
  }
  func.func @transform_0(%arg0: i32) -> (i32, i32, i32, i32) {
    %c0_i32 = arith.constant 0 : i32
    %c0_i32_0 = arith.constant 0 : i32
    %c0_i32_1 = arith.constant 0 : i32
    %c0_i32_2 = arith.constant 0 : i32
    return %arg0, %c0_i32, %c0_i32_0, %c0_i32_1 : i32, i32, i32, i32
  }
  func.func @transform_1(%arg0: i32) -> (i32, i32, i32) {
    %c0_i32 = arith.constant 0 : i32
    %c0_i32_0 = arith.constant 0 : i32
    %c0_i32_1 = arith.constant 0 : i32
    %c0_i32_2 = arith.constant 0 : i32
    return %c0_i32, %c0_i32_0, %c0_i32_1 : i32, i32, i32
  }
  func.func @transform_2(%arg0: i32) -> (i32, i32) {
    %c0_i32 = arith.constant 0 : i32
    %c0_i32_0 = arith.constant 0 : i32
    %c0_i32_1 = arith.constant 0 : i32
    return %c0_i32, %c0_i32_0 : i32, i32
  }
  func.func @transform_3(%arg0: i32) -> (i32, i32, i32) {
    %c0_i32 = arith.constant 0 : i32
    %c0_i32_0 = arith.constant 0 : i32
    %c0_i32_1 = arith.constant 0 : i32
    %c0_i32_2 = arith.constant 0 : i32
    return %c0_i32, %c0_i32_0, %c0_i32_1 : i32, i32, i32
  }
  func.func @transform_4(%arg0: i32) -> (i32, i32) {
    %c0_i32 = arith.constant 0 : i32
    %c0_i32_0 = arith.constant 0 : i32
    %c0_i32_1 = arith.constant 0 : i32
    return %c0_i32, %c0_i32_0 : i32, i32
  }
  func.func @transform_5(%arg0: i32) -> (i32, i32, i32) {
    %c0_i32 = arith.constant 0 : i32
    %c0_i32_0 = arith.constant 0 : i32
    %c0_i32_1 = arith.constant 0 : i32
    %c0_i32_2 = arith.constant 0 : i32
    return %c0_i32, %c0_i32_0, %c0_i32_1 : i32, i32, i32
  }
  func.func @transform_6(%arg0: i32) -> (i32, i32) {
    %c0_i32 = arith.constant 0 : i32
    %c0_i32_0 = arith.constant 0 : i32
    %c0_i32_1 = arith.constant 0 : i32
    return %c0_i32, %c0_i32_0 : i32, i32
  }
  func.func @transform_7(%arg0: i32) -> (i32, i32) {
    %c0_i32 = arith.constant 0 : i32
    %c0_i32_0 = arith.constant 0 : i32
    %c0_i32_1 = arith.constant 0 : i32
    return %c0_i32, %c0_i32_0 : i32, i32
  }
  func.func @transform_8(%arg0: i32) -> (i32, i32) {
    %c0_i32 = arith.constant 0 : i32
    %c0_i32_0 = arith.constant 0 : i32
    %c0_i32_1 = arith.constant 0 : i32
    return %c0_i32, %c0_i32_0 : i32, i32
  }
  func.func @transform_9(%arg0: i32) -> (i32, i32, i32) {
    %c0_i32 = arith.constant 0 : i32
    %c0_i32_0 = arith.constant 0 : i32
    %c0_i32_1 = arith.constant 0 : i32
    return %arg0, %c0_i32, %c0_i32_0 : i32, i32, i32
  }
}

</mosaic_0001>

<bundles_post_ra>
// kernel: tpu_custom_call.1
= control target key start
LH: loop header
LB: loop body
LE: loop exit
PB: predicated region body
PF: predicated region fallthrough
CT: control target
= control target key end

     0   :  { %14 = vsyncpa [#allocation3], 0  ;;  %s2901_s30 = smov 0   ;;  %s4196_s0 = inlined_call_operand.vmem [shape: f32[2,1,6,60], index: 0, kind: input, shape index: {}]   ;;  %s4197_s1 = inlined_call_operand.vmem [shape: f32[3,16,3], index: 1, kind: input, shape index: {}]   ;;  %s4198_s2 = inlined_call_operand.vmem [shape: f32[16,1], index: 2, kind: input, shape index: {}]   ;;  %s4199_s3 = inlined_call_operand.vmem [shape: f32[3,16,3], index: 3, kind: input, shape index: {}]   ;;  %s4200_s4 = inlined_call_operand.vmem [shape: f32[16,1], index: 4, kind: input, shape index: {}]   ;;  %s4201_s5 = inlined_call_operand.hbm [shape: f32[3,64,160], index: 5, kind: input, shape index: {}]   ;;  %s4202_s6 = inlined_call_operand.vmem [shape: f32[64,1], index: 6, kind: input, shape index: {}]   ;;  %s4203_s7 = inlined_call_operand.vmem [shape: f32[60,20], index: 7, kind: input, shape index: {}]   ;;  %s4204_s8 = inlined_call_operand.vmem [shape: f32[18,6], index: 8, kind: input, shape index: {}]   ;;  %s4205_s9 = inlined_call_operand.vmem [shape: f32[2,64,12], index: 9, kind: output, shape index: {}]  }
   0x1 LB: > { %s268_s12 = sshll.u32 %s4201_s5, 4  ;;  %s2554_s13 = sadd.s32 4294967295, %s2836_s30   ;;  %s2836_s30 = sphi %s2901_s30, %s20_s30   ;;  %s269_s12 = int_to_ptr.hbm [resolvable:$true] %s268_s12 }
   0x2   : > { %p2556_p0 = scmp.ge.s32.totalorder %s2836_s30, 1  ;;  %p245_p1 = scmp.lt.s32.totalorder %s2836_s30, 3 }
   0x3   : > { %p2661_p2 = scmp.eq.s32.totalorder %s2554_s13, 0  ;;  %s2838_s14 = smov [#allocation2]  }
   0x4   : > { %p246_p3 = pnand %p2556_p0, %p245_p1  ;;  %s270_s15 = sshll.u32 %s2838_s14, 4  ;;  %s271_s15 = int_to_ptr.vmem [resolvable:$true] %s270_s15 }
   0x5   : > { %s2839_s16 = smov 256   ;;  %s2840_s17 = smov 16  }
   0x6   : > { %p2657_p4 = pneg %p246_p3  ;;  %302 = sbr.rel (%p246_p3) target bundleno = 1906 (0x772), region = 56 }
   0x8   : > { %p2658_p5 = pnand %p2661_p2, %p2657_p4 }
   0xa   : > { %2660 = dma.hbm_to_vmem [thread:$0]  (!%p2658_p5), %s269_s12, 6144, %s271_s15, [#allocation3], %s2839_s16, %s2839_s16, %s2840_s17  }
   0xb   : > { %2831 = dma.done.wait (%p2661_p2), [#allocation3], 6144  }
   0xc   : > { %2833 = vsyncadd (%p2661_p2), [#allocation3], 4294961152  ;;  %p338_p6 = scmp.lt.s32.totalorder %s2554_s13, 1  ;;  %v2841_v0 = vmov 2   ;;  %v2842_v1 = vmov 1   ;;  %v2566_v2 = vld [vmem:[%s4197_s1 + $0x20] sm:$0xff] }
   0xd   : > { %2688 = vset.pattern.permute.xlu0 %v2841_v0  ;;  %2685 = vset.pattern.permute.xlu2 %v2842_v1  ;;  %v2565_v3 = vld [vmem:[%s4197_s1 + $0x18] sm:$0xff]  ;;  %v366_v4 = vld [vmem:[%s4197_s1] sm:$0xff]  ;;  %v2564_v6 = vld [vmem:[%s4197_s1 + $0x10] sm:$0xff]  ;;  %v2843_v7 = vmov 0   ;;  %s2844_s21 = smov 127   ;;  %s2845_s22 = smov 126  }
   0xe   : > { %2684 = vset.pattern.permute.xlu1 %v2841_v0  ;;  %s4242_s13 = smov (!%p338_p6, %s2554_s13), 1  ;;  %496 = vperm.xlu2 %2685, %v2566_v2   ;;  %v364_v5 = vld [vmem:[%s4198_s2] sm:$0xff]  ;;  %v367_v8 = vld [vmem:[%s4197_s1 + $0x8] sm:$0xff]  ;;  %v2574_v53 = vld [vmem:[%s4199_s3 + $0x10] sm:$0xff]  ;;  %s2846_s17 = smov 1   ;;  %vm675_vm0 = vcmask 7168  }
   0xf   : > { %s2561_s18 = sshll.u32 %s4242_s13, 3  ;;  %462 = vperm.xlu0 %2688, %v2565_v3   ;;  %402 = vperm.xlu1 %2684, %v366_v4   ;;  %v365_v9 = vld [vmem:[%s4198_s2 + $0x8] sm:$0xff]  ;;  %v2958_v11 = vld [vmem:[%s4199_s3 + $0x20] sm:$0xff]  ;;  %vm678_vm1 = vcmask 482304   ;;  %vm706_vm2 = vcmask 1043456   ;;  %vm699_vm3 = vcmask 490496  }
  0x10   : > { %s2930_s27 = scalar_lea.vmem %s4196_s0, %s2561_s18  ;;  %v2567_v10 = vld [vmem:[%s4197_s1 + $0x28] sm:$0xff]  ;;  %v796_v47 = vld [vmem:[%s4199_s3] sm:$0xff]  ;;  %s2849_s20 = smov 124   ;;  %vm1323_vm4 = vcmask 261120   ;;  %vm2093_vm5 = vcmask 138240   ;;  %vm2199_vm6 = vcmask 1041408  }
  0x11   : > { %v2965_v12 = vld [vmem:[%s2930_s27 + $0x2] ss:$0 sm:$0xff]  ;;  %v2977_v17 = vld [vmem:[%s2930_s27 + $0x1] ss:$0 sm:$0xff]  ;;  %v2994_v24 = vld [vmem:[%s2930_s27] ss:$0 sm:$0xff] }
  0x12   : > { %v3070_v57 = vld [vmem:[%s4199_s3 + $0x28] sm:$0xff]  ;;  %v3084_v61 = vld [vmem:[%s2930_s27 + $0x3] ss:$0 sm:$0xff]  ;;  %vm2174_vm7 = vcmask 146432   ;;  %vm2469_vm8 = vcmask 48128   ;;  %vm2478_vm9 = vcmask 97280  }
  0x16   : > { %2686 = vset.pattern.permute.xlu2 %v2841_v0 }
  0x17   : > { %2691 = vset.pattern.permute.xlu0 %v2843_v7  ;;  %516 = vperm.xlu2 %2686, %v2566_v2  }
  0x18   : > { %539 = vperm.xlu0 %2691, %v364_v5   ;;  %458 = vperm.xlu1 %2684, %v2564_v6  }
  0x1f   : > { %406 = vperm.xlu2 %2686, %v367_v8  }
  0x20   : > { %544 = vperm.xlu0 %2691, %v365_v9   ;;  %2687 = vset.pattern.permute.xlu1 %v2842_v1 }
  0x21   : > { %442 = vperm.xlu1 %2687, %v2565_v3  }
  0x27   : > { %520 = vperm.xlu2 %2686, %v2567_v10  }
  0x28   : > { %2692 = vset.pattern.permute.xlu0 %v2842_v1 }
  0x29   : > { %382 = vperm.xlu0 %2692, %v366_v4   ;;  %500 = vperm.xlu1 %2687, %v2567_v10  }
  0x2f   : > { %2690 = vset.pattern.permute.xlu2 %v2843_v7 }
  0x30   : > { %426 = vperm.xlu2 %2690, %v2564_v6  }
  0x31   : > { %438 = vperm.xlu0 %2692, %v2564_v6   ;;  %2689 = vset.pattern.permute.xlu1 %v2843_v7  ;;  %v2575_v6 = vld [vmem:[%s4199_s3 + $0x18] sm:$0xff] }
  0x32   : > { %370 = vperm.xlu1 %2689, %v366_v4   ;;  %v797_v4 = vld [vmem:[%s4199_s3 + $0x8] sm:$0xff] }
  0x38   : > { %484 = vperm.xlu2 %2690, %v2566_v2  }
  0x39   : > { %386 = vperm.xlu0 %2692, %v367_v8  }
  0x3a   : > { %375 = vperm.xlu1 %2689, %v367_v8   ;;  %v794_v8 = vld [vmem:[%s4200_s4] sm:$0xff] }
  0x40   : > { %431 = vperm.xlu2 %2690, %v2565_v3  }
  0x42   : > { %2693 = vset.pattern.permute.xlu1 %v2842_v1 }
  0x43   : > { %892 = vperm.xlu1 %2693, %v2958_v11  }
  0x48   : > { %489 = vperm.xlu2 %2690, %v2567_v10  }
  0x4b   : > { %2695 = vset.pattern.permute.xlu1 %v2841_v0 }
  0x50   : > { %2694 = vset.pattern.permute.xlu2 %v2841_v0 }
  0x51   : > { %912 = vperm.xlu2 %2694, %v2958_v11  }
  0x59   : > { %2696 = vset.pattern.permute.xlu2 %v2843_v7 }
  0x68   : > { %v2967_v13 = vpop.permute.xlu2 %496 }
  0x69   : > { %v503_v14 = vmul.f32 %v2965_v12, %v2967_v13 }
  0x6b   : > { %507 = vrot.lane.b32.xlu2 %v503_v14, %s2844_s21 }
  0x71   : > { %v2972_v15 = vpop.permute.xlu2 %516 }
  0x72   : > { %v523_v33 = vmul.f32 %v2965_v12, %v2972_v15 }
  0x79   : > { %v2974_v16 = vpop.permute.xlu2 %406 }
  0x7a   : > { %v410_v42 = vmul.f32 %v2994_v24, %v2974_v16  ;;  %v636_v52 = vmul.f32 %v2965_v12, %v2974_v16  ;;  %v566_v60 = vmul.f32 %v2977_v17, %v2974_v16 }
  0x81   : > { %v2979_v18 = vpop.permute.xlu0 %462  ;;  %v2984_v20 = vpop.permute.xlu2 %520 }
  0x82   : > { %v466_v19 = vmul.f32 %v2977_v17, %v2979_v18  ;;  %v524_v21 = vmul.f32 %v2965_v12, %v2984_v20  ;;  %v403_v27 = vpop.permute.xlu1 %402  ;;  %v592_v41 = vmul.f32 %v2965_v12, %v2979_v18 }
  0x83   : > { %v409_v29 = vmul.f32 %v2994_v24, %v403_v27  ;;  %v635_v46 = vmul.f32 %v2965_v12, %v403_v27  ;;  %v565_v51 = vmul.f32 %v2977_v17, %v403_v27 }
  0x84   : > { %471 = vrot.lane.b32.xlu2 %v466_v19, %s2845_s22 }
  0x8a   : > { %v2988_v22 = vpop.permute.xlu0 %539  ;;  %v3007_v32 = vpop.permute.xlu1 %458 }
  0x8b   : > { %v591_v34 = vmul.f32 %v2965_v12, %v3007_v32  ;;  %v465_v35 = vmul.f32 %v2977_v17, %v3007_v32  ;;  %v3050_v50 = vpop.permute.xlu2 %426 }
  0x8c   : > { %529 = vrot.lane.b32.xlu2 %v524_v21, %s2845_s22 }
  0x92   : > { %v2991_v23 = vpop.permute.xlu0 %544 }
  0x93   : > { %v3019_v36 = vpop.permute.xlu1 %442  ;;  %v3064_v55 = vpop.permute.xlu2 %484 }
  0x94   : > { %v580_v38 = vmul.f32 %v2965_v12, %v3019_v36  ;;  %v446_v39 = vmul.f32 %v2977_v17, %v3019_v36  ;;  %v493_v21 = vmul.f32 %v2965_v12, %v3064_v55 }
  0x9b   : > { %v383_v25 = vpop.permute.xlu0 %382  ;;  %v3037_v44 = vpop.permute.xlu1 %500 }
  0x9c   : > { %v389_v26 = vmul.f32 %v2994_v24, %v383_v25  ;;  %v623_v43 = vmul.f32 %v2965_v12, %v383_v25  ;;  %v504_v45 = vmul.f32 %v2965_v12, %v3037_v44  ;;  %v553_v48 = vmul.f32 %v2977_v17, %v383_v25  ;;  %v3078_v59 = vpop.permute.xlu2 %431 }
  0x9e   : > { %393 = vrot.lane.b32.xlu0 %v389_v26, %s2844_s21  ;;  %v435_v26 = vmul.f32 %v2977_v17, %v3050_v50 }
  0xa3   : > { %v2998_v28 = vpop.permute.xlu0 %438 }
  0xa4   : > { %v579_v30 = vmul.f32 %v2965_v12, %v2998_v28  ;;  %v445_v31 = vmul.f32 %v2977_v17, %v2998_v28  ;;  %v3062_v54 = vpop.permute.xlu1 %370  ;;  %v3091_v2 = vpop.permute.xlu2 %489 }
  0xa5   : > { %v379_v25 = vmul.f32 %v2994_v24, %v3062_v54 }
  0xa6   : > { %583 = vrot.lane.b32.xlu2 %v579_v30, %s2844_s21  ;;  %449 = vrot.lane.b32.xlu1 %v445_v31, %s2844_s21 }
  0xa7   : > { %413 = vrot.lane.b32.xlu0 %v409_v29, %s2845_s22 }
  0xab   : > { %v387_v37 = vpop.permute.xlu0 %386 }
  0xac   : > { %v390_v40 = vmul.f32 %v2994_v24, %v387_v37  ;;  %v624_v49 = vmul.f32 %v2965_v12, %v387_v37  ;;  %v554_v56 = vmul.f32 %v2977_v17, %v387_v37  ;;  %v3076_v58 = vpop.permute.xlu1 %375  ;;  %v3096_v3 = vpop.permute.xlu2 %912 }
  0xad   : > { %4222 = vst [vmem:[#allocation5_spill] sm:$0xff] %v3096_v3  ;;  %v919_v5 = vmul.f32 %v3084_v61, %v3096_v3 }
  0xae   : > { %595 = vrot.lane.b32.xlu2 %v591_v34, %s2845_s22  ;;  %469 = vrot.lane.b32.xlu1 %v465_v35, %s2845_s22 }
  0xaf   : > { %527 = vrot.lane.b32.xlu0 %v523_v33, %s2845_s22 }
  0xb5   : > { %v3087_v62 = vpop.permute.xlu1 %892 }
  0xb6   : > { %585 = vrot.lane.b32.xlu2 %v580_v38, %s2844_s21  ;;  %451 = vrot.lane.b32.xlu1 %v446_v39, %s2844_s21  ;;  %v899_v63 = vmul.f32 %v3084_v61, %v3087_v62 }
  0xb7   : > { %395 = vrot.lane.b32.xlu0 %v390_v40, %s2844_s21 }
  0xbe   : > { %597 = vrot.lane.b32.xlu2 %v592_v41, %s2845_s22  ;;  %415 = vrot.lane.b32.xlu1 %v410_v42, %s2845_s22 }
  0xbf   : > { %627 = vrot.lane.b32.xlu0 %v623_v43, %s2844_s21 }
  0xc5   : > { %v508_v9 = vpop.permute.xlu2 %507 }
  0xc6   : > { %509 = vrot.lane.b32.xlu1 %v504_v45, %s2844_s21  ;;  %800 = vperm.xlu2 %2696, %v796_v47   ;;  %v513_v30 = vadd.f32 %v508_v9, %v493_v21 }
  0xc7   : > { %639 = vrot.lane.b32.xlu0 %v635_v46, %s2845_s22 }
  0xce   : > { %557 = vrot.lane.b32.xlu1 %v553_v48, %s2844_s21  ;;  %2698 = vset.pattern.permute.xlu2 %v2842_v1 }
  0xcf   : > { %629 = vrot.lane.b32.xlu0 %v624_v49, %s2844_s21  ;;  %850 = vperm.xlu2 %2698, %v2574_v53  }
  0xd6   : > { %569 = vrot.lane.b32.xlu1 %v565_v51, %s2845_s22 }
  0xd7   : > { %641 = vrot.lane.b32.xlu0 %v636_v52, %s2845_s22  ;;  %2701 = vset.pattern.permute.xlu2 %v2843_v7 }
  0xd8   : > { %880 = vperm.xlu2 %2701, %v2958_v11  }
  0xde   : > { %559 = vrot.lane.b32.xlu1 %v554_v56, %s2844_s21  ;;  %v3117_v11 = vpop.permute.xlu2 %471  ;;  %v795_v56 = vld [vmem:[%s4200_s4 + $0x8] sm:$0xff] }
  0xdf   : > { %896 = vperm.xlu0 %2692, %v3070_v57  }
  0xe0   : > { %2703 = vset.pattern.permute.xlu2 %v2842_v1 }
  0xe1   : > { %903 = vrot.lane.b32.xlu2 %v899_v63, %s2844_s21 }
  0xe6   : > { %571 = vrot.lane.b32.xlu1 %v566_v60, %s2845_s22  ;;  %v3120_v19 = vpop.permute.xlu2 %529 }
  0xe7   : > { %811 = vperm.xlu0 %2692, %v796_v47  }
  0xe9   : > { %815 = vperm.xlu2 %2703, %v797_v4  }
  0xee   : > { %916 = vperm.xlu1 %2695, %v3070_v57  }
  0xef   : > { %2699 = vset.pattern.permute.xlu0 %v2841_v0 }
  0xf0   : > { %823 = vperm.xlu0 %2699, %v796_v47  }
  0xf1   : > { %2706 = vset.pattern.permute.xlu2 %v2841_v0 }
  0xf2   : > { %827 = vperm.xlu2 %2706, %v797_v4  }
  0xf6   : > { %2697 = vset.pattern.permute.xlu1 %v2843_v7 }
  0xf7   : > { %839 = vperm.xlu1 %2697, %v2574_v53  }
  0xf8   : > { %923 = vrot.lane.b32.xlu0 %v919_v5, %s2845_s22 }
  0xf9   : > { %2704 = vset.pattern.permute.xlu0 %v2843_v7 }
  0xfa   : > { %2708 = vset.pattern.permute.xlu2 %v2843_v7 }
  0xff   : > { %2700 = vset.pattern.permute.xlu1 %v2841_v0 }
 0x100   : > { %844 = vperm.xlu0 %2704, %v2575_v6   ;;  %862 = vperm.xlu1 %2700, %v2574_v53   ;;  %v3129_v37 = vpop.permute.xlu2 %583 }
 0x108   : > { %935 = vperm.xlu0 %2704, %v794_v8   ;;  %2702 = vset.pattern.permute.xlu1 %v2843_v7  ;;  %v3133_v45 = vpop.permute.xlu2 %595 }
 0x109   : > { %805 = vperm.xlu1 %2702, %v797_v4  }
 0x110   : > { %v394_v10 = vpop.permute.xlu0 %393  ;;  %v3138_v48 = vpop.permute.xlu2 %585 }
 0x111   : > { %2705 = vset.pattern.permute.xlu1 %v2842_v1  ;;  %v399_v1 = vadd.f32 %v394_v10, %v379_v25 }
 0x112   : > { %854 = vperm.xlu1 %2705, %v2575_v6  }
 0x118   : > { %v450_v14 = vpop.permute.xlu1 %449  ;;  %v3144_v53 = vpop.permute.xlu2 %597 }
 0x119   : > { %v414_v16 = vpop.permute.xlu0 %413  ;;  %v455_v27 = vadd.f32 %v450_v14, %v435_v26 }
 0x11a   : > { %2707 = vset.pattern.permute.xlu1 %v2841_v0  ;;  %v419_v31 = vadd.f32 %v414_v16, %v399_v1 }
 0x11b   : > { %866 = vperm.xlu1 %2707, %v2575_v6  }
 0x120   : > { %v470_v29 = vpop.permute.xlu1 %469 }
 0x121   : > { %v475_v33 = vadd.f32 %v470_v29, %v455_v27  ;;  %v528_v34 = vpop.permute.xlu0 %527 }
 0x122   : > { %v533_v35 = vadd.f32 %v528_v34, %v513_v30 }
 0x123   : > { %v477_v0 = vadd.f32 %v475_v33, %v419_v31  ;;  %2709 = vset.pattern.permute.xlu1 %v2843_v7 }
 0x124   : > { %940 = vperm.xlu1 %2709, %v795_v56  }
 0x125   : > { %v535_v38 = vadd.f32 %v533_v35, %v477_v0  ;;  %v494_v0 = vmul.f32 %v2965_v12, %v3091_v2  ;;  %v436_v35 = vmul.f32 %v2977_v17, %v3078_v59 }
 0x127   : > { %v547_v39 = vadd.f32 %v2988_v22, %v535_v38  ;;  %v380_v38 = vmul.f32 %v2994_v24, %v3076_v58 }
 0x128   : > { %v452_v40 = vpop.permute.xlu1 %451 }
 0x129   : > { %v396_v41 = vpop.permute.xlu0 %395  ;;  %v549_v42 = vmax.f32 %v547_v39, 0.0  ;;  %v456_v56 = vadd.f32 %v452_v40, %v436_v35  ;;  %v647_v40 = vmul.f32 0.0, %v3050_v50 }
 0x12b   : > { %v665_v43 = vmax.f32 %v549_v42, 0.0 }
 0x12d   : > { %669 = vrot.lane.b32.xlu2 %v665_v43, %s2846_s17 }
 0x130   : > { %v416_v46 = vpop.permute.xlu1 %415 }
 0x131   : > { %v3135_v47 = vpop.permute.xlu0 %627 }
 0x135   : > { %885 = vperm.xlu2 %2708, %v3070_v57   ;;  %v3153_v57 = vpop.permute.xlu2 %800 }
 0x136   : > { %4223 = vst [vmem:[#allocation6_spill] sm:$0xff] %v3153_v57  ;;  %v808_v31 = vmul.f32 0.0, %v3153_v57 }
 0x138   : > { %v510_v7 = vpop.permute.xlu1 %509 }
 0x139   : > { %v3140_v49 = vpop.permute.xlu0 %639 }
 0x13d   : > { %v3162_v8 = vpop.permute.xlu2 %850 }
 0x13e   : > { %4225 = vst [vmem:[#allocation8_spill] sm:$0xff] %v3162_v8  ;;  %v949_v27 = vmul.f32 %v3084_v61, %v3162_v8  ;;  %v857_v39 = vmul.f32 0.0, %v3162_v8 }
 0x140   : > { %v558_v51 = vpop.permute.xlu1 %557 }
 0x141   : > { %v3142_v52 = vpop.permute.xlu0 %629 }
 0x145   : > { %v3168_v14 = vpop.permute.xlu2 %880 }
 0x146   : > { %4226 = vst [vmem:[#allocation9_spill] sm:$0xff] %v3168_v14  ;;  %v889_v30 = vmul.f32 %v3084_v61, %v3168_v14 }
 0x148   : > { %v3149_v60 = vpop.permute.xlu1 %569 }
 0x149   : > { %v3151_v63 = vpop.permute.xlu0 %641 }
 0x14d   : > { %v904_v26 = vpop.permute.xlu2 %903 }
 0x150   : > { %v3155_v4 = vpop.permute.xlu1 %559 }
 0x151   : > { %v3157_v5 = vpop.permute.xlu0 %896 }
 0x152   : > { %4224 = vst [vmem:[#allocation7_spill] sm:$0xff] %v3157_v5  ;;  %v900_v6 = vmul.f32 %v3084_v61, %v3157_v5 }
 0x154   : > { %905 = vrot.lane.b32.xlu2 %v900_v6, %s2844_s21  ;;  %v400_v6 = vadd.f32 %v396_v41, %v380_v38  ;;  %v649_v41 = vmul.f32 0.0, %v2998_v28  ;;  %v621_v28 = vmul.f32 %v2965_v12, %v3062_v54 }
 0x155   : > { %v3195_v43 = vpop.permute.xlu2 %815 }
 0x156   : > { %v420_v8 = vadd.f32 %v416_v46, %v400_v6  ;;  %v607_v46 = vmul.f32 0.0, %v2967_v13  ;;  %v651_v35 = vadd.f32 %v649_v41, %v647_v40  ;;  %v633_v13 = vadd.f32 %v3135_v47, %v621_v28 }
 0x157   : > { %v648_v6 = vmul.f32 0.0, %v3078_v59 }
 0x158   : > { %v3164_v9 = vpop.permute.xlu1 %571 }
 0x159   : > { %v3166_v10 = vpop.permute.xlu0 %811 }
 0x15a   : > { %v818_v33 = vmul.f32 0.0, %v3166_v10 }
 0x15d   : > { %v3229_v38 = vpop.permute.xlu2 %827 }
 0x160   : > { %v3170_v16 = vpop.permute.xlu1 %916 }
 0x161   : > { %4227 = vst [vmem:[#allocation10_spill] sm:$0xff] %v3170_v16  ;;  %v920_v21 = vmul.f32 %v3084_v61, %v3170_v16  ;;  %v820_v16 = vadd.f32 %v818_v33, %v808_v31 }
 0x162   : > { %v3174_v25 = vpop.permute.xlu0 %823 }
 0x163   : > { %4228 = vst [vmem:[#allocation11_spill] sm:$0xff] %v3174_v25  ;;  %925 = vrot.lane.b32.xlu0 %v920_v21, %s2845_s22  ;;  %v830_v42 = vmul.f32 0.0, %v3174_v25  ;;  %v514_v21 = vadd.f32 %v510_v7, %v494_v0  ;;  %v551_v7 = vmul.f32 %v2977_v17, %v3062_v54  ;;  %v611_v54 = vmul.f32 0.0, %v2972_v15 }
 0x164   : > { %v552_v15 = vmul.f32 %v2977_v17, %v3076_v58 }
 0x169   : > { %v3177_v1 = vpop.permute.xlu1 %839 }
 0x16a   : > { %4229 = vst [vmem:[#allocation12_spill] sm:$0xff] %v3177_v1  ;;  %v924_v29 = vpop.permute.xlu0 %923  ;;  %v847_v34 = vmul.f32 0.0, %v3177_v1  ;;  %v3204_v1 = vadd.f32 %v830_v42, %v820_v16 }
 0x16b   : > { %953 = vrot.lane.b32.xlu0 %v949_v27, %s2844_s21  ;;  %v909_v27 = vadd.f32 %v904_v26, %v889_v30  ;;  %v476_v26 = vadd.f32 %v3117_v11, %v456_v56  ;;  %v534_v30 = vadd.f32 %v3120_v19, %v514_v21  ;;  %v819_v19 = vmul.f32 0.0, %v3195_v43 }
 0x16c   : > { %v859_v5 = vadd.f32 %v857_v39, %v847_v34  ;;  %v563_v34 = vadd.f32 %v558_v51, %v551_v7  ;;  %v831_v39 = vmul.f32 0.0, %v3229_v38  ;;  %v645_v56 = vadd.f32 %v3140_v49, %v633_v13 }
 0x16d   : > { %v929_v31 = vadd.f32 %v924_v29, %v909_v27  ;;  %v478_v16 = vadd.f32 %v476_v26, %v420_v8  ;;  %v650_v21 = vmul.f32 0.0, %v3019_v36  ;;  %v606_v7 = vmul.f32 0.0, %v3091_v2 }
 0x16e   : > { %v578_v49 = vmul.f32 %v2965_v12, %v3078_v59 }
 0x170   : > { %v590_v17 = vadd.f32 %v3138_v48, %v578_v49 }
 0x172   : > { %v3197_v57 = vpop.permute.xlu0 %844  ;;  %v3199_v14 = vpop.permute.xlu1 %862 }
 0x173   : > { %v869_v3 = vmul.f32 0.0, %v3199_v14  ;;  %v961_v24 = vmul.f32 %v3084_v61, %v3199_v14 }
 0x175   : > { %v871_v25 = vadd.f32 %v869_v3, %v859_v5  ;;  %965 = vrot.lane.b32.xlu0 %v961_v24, %s2845_s22  ;;  %v605_v3 = vmul.f32 0.0, %v3064_v55  ;;  %v577_v5 = vmul.f32 %v2965_v12, %v3050_v50  ;;  %v575_v55 = vadd.f32 %v3149_v60, %v563_v34 }
 0x177   : > { %v873_v33 = vadd.f32 %v871_v25, %v3204_v1  ;;  %v589_v11 = vadd.f32 %v3129_v37, %v577_v5  ;;  %v536_v25 = vadd.f32 %v534_v30, %v478_v16  ;;  %v653_v37 = vmul.f32 0.0, %v3007_v32 }
 0x178   : > { %v609_v42 = vadd.f32 %v607_v46, %v605_v3  ;;  %v652_v46 = vadd.f32 %v650_v21, %v648_v6  ;;  %v654_v5 = vmul.f32 0.0, %v2979_v18  ;;  %v612_v16 = vmul.f32 0.0, %v2984_v20 }
 0x179   : > { %v931_v0 = vadd.f32 %v929_v31, %v873_v33  ;;  %v601_v47 = vadd.f32 %v3133_v45, %v589_v11  ;;  %v655_v27 = vadd.f32 %v653_v37, %v651_v35  ;;  %v548_v41 = vadd.f32 %v2991_v23, %v536_v25 }
 0x17a   : > { %v3222_v29 = vpop.permute.xlu0 %935  ;;  %v608_v45 = vmul.f32 0.0, %v3037_v44  ;;  %v613_v30 = vadd.f32 %v611_v54, %v609_v42  ;;  %v622_v31 = vmul.f32 %v2965_v12, %v3076_v58  ;;  %v564_v33 = vadd.f32 %v3155_v4, %v552_v15 }
 0x17b   : > { %v943_v50 = vadd.f32 %v3222_v29, %v931_v0  ;;  %v3227_v8 = vpop.permute.xlu1 %805  ;;  %v603_v40 = vadd.f32 %v601_v47, %v575_v55  ;;  %v657_v36 = vadd.f32 %v655_v27, %v645_v56  ;;  %v550_v59 = vmax.f32 %v548_v41, 0.0  ;;  %v3269_v55 = vld [vmem:[%s2930_s27 + $0x4] ss:$0 sm:$0xff] }
 0x17c   : > { %v809_v51 = vmul.f32 0.0, %v3227_v8  ;;  %v634_v2 = vadd.f32 %v3142_v52, %v622_v31  ;;  %v576_v3 = vadd.f32 %v3164_v9, %v564_v33  ;;  %v610_v28 = vadd.f32 %v608_v45, %v606_v7 }
 0x17d   : > { %v945_v60 = vmax.f32 %v943_v50, 0.0  ;;  %v615_v44 = vadd.f32 %v613_v30, %v603_v40  ;;  %v602_v12 = vadd.f32 %v3144_v53, %v590_v17  ;;  %v659_v58 = vadd.f32 %v657_v36, %v613_v30 }
 0x17e   : > { %v821_v24 = vadd.f32 %v819_v19, %v809_v51  ;;  %v646_v4 = vadd.f32 %v3151_v63, %v634_v2  ;;  %v656_v48 = vadd.f32 %v654_v5, %v652_v46  ;;  %v666_v0 = vmax.f32 %v550_v59, 0.0  ;;  %v4230_v46 = vld [vmem:[#allocation12_spill] sm:$0xff] }
 0x17f   : > { %v1095_v32 = vmax.f32 %v945_v60, 0.0  ;;  %v604_v34 = vadd.f32 %v602_v12, %v576_v3  ;;  %v617_v9 = vadd.f32 %v615_v44, %v2988_v22  ;;  %v614_v18 = vadd.f32 %v612_v16, %v610_v28  ;;  %v4231_v3 = vld [vmem:[#allocation8_spill] sm:$0xff]  ;;  %v4232_v12 = vld [vmem:[#allocation11_spill] sm:$0xff] }
 0x180   : > { %v3246_v26 = vadd.f32 %v831_v39, %v821_v24  ;;  %v658_v35 = vadd.f32 %v656_v48, %v646_v4  ;;  %v661_v53 = vadd.f32 %v659_v58, %v2988_v22  ;;  %v1048_v37 = vmul.f32 %v3269_v55, %v3199_v14 }
 0x181   : > { %1099 = vrot.lane.b32.xlu1 %v1095_v32, %s2846_s17  ;;  %v616_v63 = vadd.f32 %v614_v18, %v604_v34  ;;  %v619_v19 = vmax.f32 %v617_v9, 0.0  ;;  %v1010_v47 = vmul.f32 %v3084_v61, %v3166_v10  ;;  %v978_v56 = vmul.f32 %v3269_v55, %v3087_v62 }
 0x182   : > { %v660_v13 = vadd.f32 %v658_v35, %v614_v18  ;;  %v663_v25 = vmax.f32 %v661_v53, 0.0  ;;  %v848_v21 = vmul.f32 0.0, %v3197_v57  ;;  %v947_v2 = vmul.f32 %v3084_v61, %v4230_v46 }
 0x183   : > { %v618_v54 = vadd.f32 %v616_v63, %v2991_v23  ;;  %v1036_v59 = vmul.f32 %v3269_v55, %v4231_v3  ;;  %v1022_v58 = vmul.f32 %v3084_v61, %v4232_v12 }
 0x184   : > { %v733_v50 = vmax.f32 %v619_v19, %v663_v25  ;;  %v662_v51 = vadd.f32 %v660_v13, %v2991_v23  ;;  %v855_v14 = vpop.permute.xlu1 %854  ;;  %v4233_v13 = vld [vmem:[#allocation5_spill] sm:$0xff] }
 0x185   : > { %v620_v22 = vmax.f32 %v618_v54, 0.0  ;;  %v858_v6 = vmul.f32 0.0, %v855_v14  ;;  %v950_v19 = vmul.f32 %v3084_v61, %v855_v14 }
 0x186   : > { %v664_v39 = vmax.f32 %v662_v51, 0.0  ;;  %v354_v51 = vld [vmem:[%s4203_s7 + $0x38] sm:$0xf] }
 0x187   : > { %v670_v52 = vpop.permute.xlu2 %669  ;;  %v860_v24 = vadd.f32 %v858_v6, %v848_v21  ;;  %2568 = vmatpush.msk.msra.mxu0 %vm706_vm2, %v354_v51  ;;  %2578 = vmatpush.msk.msra.mxu2 %vm706_vm2, %v354_v51  ;;  %v4235_v6 = vld [vmem:[#allocation10_spill] sm:$0xff] }
 0x188   : > { %v676_v11 = vsel %vm675_vm0, 0.0, %v670_v52  ;;  %v734_v42 = vmax.f32 %v620_v22, %v664_v39  ;;  %v353_v22 = vld [vmem:[%s4203_s7 + $0x30] sm:$0xff] }
 0x189   : > { %v3262_v20 = vsel %vm678_vm1, %v676_v11, 0.0  ;;  %671 = vrot.lane.b32.xlu1 %v666_v0, %s2846_s17  ;;  %v3328_v11 = vld [vmem:[%s2930_s27 + $0x5] ss:$0 sm:$0xff]  ;;  %719 = vmatpush.msra.mxu0 %v353_v22  ;;  %s2848_s27 = smov 125  }
 0x18a   : > { %691 = vrot.lane.b32.xlu0 %v3262_v20, %s2845_s22  ;;  %v1065_v53 = vmul.f32 %v3328_v11, %v3087_v62  ;;  %v1077_v25 = vmul.f32 %v3328_v11, %v4233_v13  ;;  %v1037_v62 = vmul.f32 %v3269_v55, %v855_v14  ;;  %1142 = vmatpush.msra.mxu2 %v353_v22  ;;  %v351_v14 = vld [vmem:[%s4203_s7 + $0x20] sm:$0xff] }
 0x18b   : > { %v1078_v21 = vmul.f32 %v3328_v11, %v4235_v6 }
 0x18d   : > { %v3286_v23 = vpop.permute.xlu1 %866 }
 0x18e   : > { %v870_v27 = vmul.f32 0.0, %v3286_v23  ;;  %v962_v54 = vmul.f32 %v3084_v61, %v3286_v23  ;;  %v1049_v39 = vmul.f32 %v3269_v55, %v3286_v23  ;;  %v349_v23 = vld [vmem:[%s4203_s7 + $0x10] sm:$0xff] }
 0x18f   : > { %v3284_v60 = vpop.permute.xlu2 %885 }
 0x190   : > { %v890_v10 = vmul.f32 %v3084_v61, %v3284_v60  ;;  %v872_v15 = vadd.f32 %v870_v27, %v860_v24  ;;  %v991_v27 = vmul.f32 %v3269_v55, %v4235_v6  ;;  %v348_v24 = vld [vmem:[%s4203_s7 + $0x8] sm:$0xff] }
 0x191   : > { %737 = vrot.lane.b32.xlu1 %v733_v50, %s2846_s17  ;;  %v990_v50 = vmul.f32 %v3269_v55, %v4233_v13 }
 0x192   : > { %1052 = vrot.lane.b32.xlu0 %v1048_v37, %s2845_s22  ;;  %v874_v7 = vadd.f32 %v872_v15, %v3246_v26  ;;  %v1011_v37 = vmul.f32 %v3084_v61, %v3195_v43  ;;  %v1023_v43 = vmul.f32 %v3084_v61, %v3229_v38  ;;  %v350_v38 = vld [vmem:[%s4203_s7 + $0x18] sm:$0xff] }
 0x196   : > { %v3293_v49 = vpop.permute.xlu1 %940 }
 0x199   : > { %739 = vrot.lane.b32.xlu1 %v734_v42, %s2846_s17  ;;  %v352_v42 = vld [vmem:[%s4203_s7 + $0x28] sm:$0xff] }
 0x19a   : > { %720 = vmatpush.msra.mxu0 %v352_v42  ;;  %1143 = vmatpush.msra.mxu2 %v352_v42 }
 0x19c   : > { %721 = vmatpush.msra.mxu0 %v351_v14  ;;  %1144 = vmatpush.msra.mxu2 %v351_v14 }
 0x19e   : > { %722 = vmatpush.msra.mxu0 %v350_v38  ;;  %1145 = vmatpush.msra.mxu2 %v350_v38 }
 0x1a0   : > { %723 = vmatpush.msra.mxu0 %v349_v23  ;;  %1146 = vmatpush.msra.mxu2 %v349_v23 }
 0x1a1   : > { %1014 = vrot.lane.b32.xlu1 %v1010_v47, %s2844_s21  ;;  %v4234_v47 = vld [vmem:[#allocation7_spill] sm:$0xff] }
 0x1a2   : > { %724 = vmatpush.msra.mxu0 %v348_v24  ;;  %1147 = vmatpush.msra.mxu2 %v348_v24 }
 0x1a9   : > { %982 = vrot.lane.b32.xlu1 %v978_v56, %s2844_s21  ;;  %v979_v56 = vmul.f32 %v3269_v55, %v4234_v47 }
 0x1ae   : > { %v906_v40 = vpop.permute.xlu2 %905 }
 0x1af   : > { %v910_v32 = vadd.f32 %v906_v40, %v890_v10  ;;  %v1066_v10 = vmul.f32 %v3328_v11, %v4234_v47  ;;  %v347_v40 = vld [vmem:[%s4203_s7] sm:$0xff] }
 0x1b0   : > { %725 = vmatpush.msra.mxu0 %v347_v40  ;;  %1148 = vmatpush.msra.mxu2 %v347_v40 }
 0x1b2   : > { %2571 = vmatpush.msk.msrb.mxu0 %vm706_vm2, %v354_v51  ;;  %2581 = vmatpush.msk.msrb.mxu2 %vm706_vm2, %v354_v51 }
 0x1b4   : > { %780 = vmatpush.msrb.mxu0 %v353_v22  ;;  %1203 = vmatpush.msrb.mxu2 %v353_v22 }
 0x1b6   : > { %781 = vmatpush.msrb.mxu0 %v352_v42  ;;  %1204 = vmatpush.msrb.mxu2 %v352_v42 }
 0x1b8   : > { %782 = vmatpush.msrb.mxu0 %v351_v14  ;;  %1205 = vmatpush.msrb.mxu2 %v351_v14 }
 0x1ba   : > { %783 = vmatpush.msrb.mxu0 %v350_v38  ;;  %1206 = vmatpush.msrb.mxu2 %v350_v38 }
 0x1bc   : > { %784 = vmatpush.msrb.mxu0 %v349_v23  ;;  %1207 = vmatpush.msrb.mxu2 %v349_v23 }
 0x1be   : > { %785 = vmatpush.msrb.mxu0 %v348_v24  ;;  %1208 = vmatpush.msrb.mxu2 %v348_v24 }
 0x1c0   : > { %786 = vmatpush.msrb.mxu0 %v347_v40  ;;  %1209 = vmatpush.msrb.mxu2 %v347_v40 }
 0x1d5   : > { %v926_v41 = vpop.permute.xlu0 %925 }
 0x1d6   : > { %v930_v45 = vadd.f32 %v926_v41, %v910_v32 }
 0x1d8   : > { %v932_v30 = vadd.f32 %v930_v45, %v874_v7 }
 0x1da   : > { %v944_v36 = vadd.f32 %v3293_v49, %v932_v30 }
 0x1dc   : > { %v946_v31 = vmax.f32 %v944_v36, 0.0 }
 0x1dd   : > { %v954_v17 = vpop.permute.xlu0 %953 }
 0x1de   : > { %v1096_v33 = vmax.f32 %v946_v31, 0.0  ;;  %v959_v44 = vadd.f32 %v954_v17, %v947_v2 }
 0x1e0   : > { %1101 = vrot.lane.b32.xlu2 %v1096_v33, %s2846_s17 }
 0x1e7   : > { %v966_v5 = vpop.permute.xlu0 %965 }
 0x1e8   : > { %v3301_v16 = vadd.f32 %v966_v5, %v959_v44  ;;  %1040 = vrot.lane.b32.xlu2 %v1036_v59, %s2844_s21 }
 0x1f0   : > { %683 = vrot.lane.b32.xlu2 %v3262_v20, %s2844_s21 }
 0x1f3   : > { %v3306_v28 = vpop.permute.xlu1 %1099 }
 0x1f4   : > { %v1105_v15 = vsel %vm675_vm0, 0.0, %v3306_v28  ;;  %v4236_v28 = vld [vmem:[#allocation9_spill] sm:$0xff] }
 0x1f5   : > { %v3406_v32 = vsel %vm678_vm1, %v1105_v15, 0.0  ;;  %v976_v12 = vmul.f32 %v3269_v55, %v4236_v28 }
 0x1f8   : > { %1026 = vrot.lane.b32.xlu2 %v1022_v58, %s2845_s22 }
 0x1fb   : > { %v672_v4 = vpop.permute.xlu1 %671 }
 0x1fc   : > { %v677_v48 = vsel %vm675_vm0, 0.0, %v672_v4  ;;  %v692_v33 = vpop.permute.xlu0 %691 }
 0x1fd   : > { %v3313_v34 = vsel %vm678_vm1, %v677_v48, 0.0 }
 0x1fe   : > { %685 = vrot.lane.b32.xlu1 %v3313_v34, %s2844_s21 }
 0x200   : > { %693 = vrot.lane.b32.xlu2 %v3313_v34, %s2845_s22 }
 0x203   : > { %v738_v52 = vpop.permute.xlu1 %737 }
 0x204   : > { %v743_v0 = vsel %vm675_vm0, 0.0, %v738_v52  ;;  %v1053_v58 = vpop.permute.xlu0 %1052 }
 0x205   : > { %v3321_v9 = vsel %vm678_vm1, %v743_v0, 0.0 }
 0x206   : > { %757 = vrot.lane.b32.xlu1 %v3321_v9, %s2845_s22  ;;  %749 = vrot.lane.b32.xlu0 %v3321_v9, %s2844_s21 }
 0x20b   : > { %v740_v18 = vpop.permute.xlu1 %739 }
 0x20c   : > { %v744_v35 = vsel %vm675_vm0, 0.0, %v740_v18 }
 0x20d   : > { %v3334_v63 = vsel %vm678_vm1, %v744_v35, 0.0 }
 0x20e   : > { %1069 = vrot.lane.b32.xlu1 %v1065_v53, %s2844_s21  ;;  %759 = vrot.lane.b32.xlu0 %v3334_v63, %s2845_s22 }
 0x20f   : > { %751 = vrot.lane.b32.xlu2 %v3334_v63, %s2844_s21 }
 0x213   : > { %v1015_v44 = vpop.permute.xlu1 %1014 }
 0x216   : > { %955 = vrot.lane.b32.xlu1 %v950_v19, %s2844_s21  ;;  %1081 = vrot.lane.b32.xlu0 %v1077_v25, %s2845_s22 }
 0x217   : > { %994 = vrot.lane.b32.xlu2 %v990_v50, %s2845_s22 }
 0x21b   : > { %v983_v59 = vpop.permute.xlu1 %982 }
 0x21c   : > { %v988_v4 = vadd.f32 %v983_v59, %v976_v12 }
 0x21e   : > { %967 = vrot.lane.b32.xlu1 %v962_v54, %s2845_s22  ;;  %1042 = vrot.lane.b32.xlu0 %v1037_v62, %s2844_s21 }
 0x21f   : > { %1016 = vrot.lane.b32.xlu2 %v1011_v37, %s2844_s21  ;;  %v4237_v37 = vld [vmem:[#allocation6_spill] sm:$0xff] }
 0x226   : > { %1054 = vrot.lane.b32.xlu1 %v1049_v39, %s2845_s22  ;;  %1028 = vrot.lane.b32.xlu0 %v1023_v43, %s2845_s22 }
 0x227   : > { %984 = vrot.lane.b32.xlu2 %v979_v56, %s2844_s21 }
 0x22e   : > { %1083 = vrot.lane.b32.xlu1 %v1078_v21, %s2845_s22  ;;  %996 = vrot.lane.b32.xlu0 %v991_v27, %s2845_s22 }
 0x22f   : > { %1071 = vrot.lane.b32.xlu2 %v1066_v10, %s2844_s21 }
 0x236   : > { %1119 = vrot.lane.b32.xlu0 %v3406_v32, %s2845_s22 }
 0x237   : > { %1111 = vrot.lane.b32.xlu2 %v3406_v32, %s2844_s21 }
 0x23a   : > { %v1102_v41 = vpop.permute.xlu2 %1101 }
 0x23b   : > { %v1106_v7 = vsel %vm675_vm0, 0.0, %v1102_v41 }
 0x23c   : > { %v3414_v45 = vsel %vm678_vm1, %v1106_v7, 0.0  ;;  %v1009_v7 = vmul.f32 %v3084_v61, %v3227_v8  ;;  %v1064_v8 = vmul.f32 %v3328_v11, %v3284_v60 }
 0x23d   : > { %1113 = vrot.lane.b32.xlu1 %v3414_v45, %s2844_s21 }
 0x23f   : > { %1121 = vrot.lane.b32.xlu2 %v3414_v45, %s2845_s22 }
 0x242   : > { %v1041_v30 = vpop.permute.xlu2 %1040 }
 0x24a   : > { %v684_v36 = vpop.permute.xlu2 %683 }
 0x24b   : > { %v689_v31 = vmax.f32 %v3262_v20, %v684_v36  ;;  %v973_v20 = vadd.f32 %v3301_v16, %v3204_v1  ;;  %v1034_v1 = vmul.f32 %v3269_v55, %v4230_v46 }
 0x24d   : > { %v697_v17 = vmax.f32 %v689_v31, %v692_v33  ;;  %v1046_v22 = vadd.f32 %v1041_v30, %v1034_v1  ;;  %v1035_v30 = vmul.f32 %v3269_v55, %v3197_v57 }
 0x24f   : > { %2569 = vmatmul.msk.f32.vlgmr.msra.gmra.mxu0 %vm699_vm3, %v697_v17  ;;  %v1058_v47 = vadd.f32 %v1053_v58, %v1046_v22 }
 0x252   : > { %v1027_v2 = vpop.permute.xlu2 %1026 }
 0x25a   : > { %v694_v3 = vpop.permute.xlu2 %693 }
 0x269   : > { %v752_v5 = vpop.permute.xlu2 %751 }
 0x26a   : > { %v756_v16 = vmax.f32 %v3334_v63, %v752_v5 }
 0x270   : > { %v686_v48 = vpop.permute.xlu1 %685 }
 0x271   : > { %v690_v52 = vmax.f32 %v3313_v34, %v686_v48  ;;  %v995_v0 = vpop.permute.xlu2 %994  ;;  %v1008_v34 = vmul.f32 %v3084_v61, %v4237_v37 }
 0x272   : > { %v1000_v18 = vadd.f32 %v995_v0, %v988_v4 }
 0x273   : > { %v698_v35 = vmax.f32 %v690_v52, %v694_v3  ;;  %v1020_v51 = vadd.f32 %v1015_v44, %v1008_v34 }
 0x274   : > { %v1002_v53 = vadd.f32 %v1000_v18, %v973_v20 }
 0x275   : > { %2570 = vmatmul.msk.f32.gmra.mxu0 %vm699_vm3, %v698_v35  ;;  %v1032_v39 = vadd.f32 %v1027_v2, %v1020_v51  ;;  %v4219_v51 = vmov 0.0  }
 0x276   : > { %v1004_v46 = vadd.f32 %v1002_v53, %v3222_v29 }
 0x277   : > { %v1060_v23 = vadd.f32 %v1058_v47, %v1032_v39 }
 0x278   : > { %v758_v19 = vpop.permute.xlu1 %757  ;;  %v750_v13 = vpop.permute.xlu0 %749  ;;  %v1006_v27 = vmax.f32 %v1004_v46, 0.0 }
 0x279   : > { %v755_v25 = vmax.f32 %v3321_v9, %v750_v13  ;;  %v1017_v42 = vpop.permute.xlu2 %1016  ;;  %v1063_v9 = vmul.f32 %v3328_v11, %v4236_v28  ;;  %v977_v28 = vmul.f32 %v3269_v55, %v3284_v60 }
 0x27a   : > { %v1021_v36 = vadd.f32 %v1017_v42, %v1009_v7 }
 0x27b   : > { %v763_v50 = vmax.f32 %v755_v25, %v758_v19 }
 0x27d   : > { %2572 = vmatmul.msk.f32.vlgmr.msrb.gmra.mxu0 %vm699_vm3, %v763_v50 }
 0x280   : > { %v1070_v62 = vpop.permute.xlu1 %1069  ;;  %v760_v54 = vpop.permute.xlu0 %759 }
 0x281   : > { %v764_v43 = vmax.f32 %v756_v16, %v760_v54  ;;  %v1075_v56 = vadd.f32 %v1070_v62, %v1063_v9  ;;  %v985_v24 = vpop.permute.xlu2 %984 }
 0x282   : > { %v989_v58 = vadd.f32 %v985_v24, %v977_v28 }
 0x285   : > { %2573 = vmatmul.msk.f32.gmra.mxu0 %vm699_vm3, %v764_v43 }
 0x288   : > { %v956_v14 = vpop.permute.xlu1 %955  ;;  %v1082_v38 = vpop.permute.xlu0 %1081 }
 0x289   : > { %v1087_v6 = vadd.f32 %v1082_v38, %v1075_v56  ;;  %v1072_v3 = vpop.permute.xlu2 %1071 }
 0x28a   : > { %v1076_v4 = vadd.f32 %v1072_v3, %v1064_v8 }
 0x28b   : > { %v1089_v21 = vadd.f32 %v1087_v6, %v1060_v23 }
 0x28d   : > { %v1091_v63 = vadd.f32 %v1089_v21, %v3222_v29  ;;  %v948_v29 = vmul.f32 %v3084_v61, %v3197_v57 }
 0x28f   : > { %v1093_v10 = vmax.f32 %v1091_v63, 0.0  ;;  %v960_v59 = vadd.f32 %v956_v14, %v948_v29 }
 0x290   : > { %v968_v40 = vpop.permute.xlu1 %967  ;;  %v1043_v15 = vpop.permute.xlu0 %1042 }
 0x291   : > { %v1156_v41 = vmax.f32 %v1006_v27, %v1093_v10  ;;  %v1047_v31 = vadd.f32 %v1043_v15, %v1035_v30  ;;  %v972_v12 = vadd.f32 %v968_v40, %v960_v59  ;;  %v1112_v35 = vpop.permute.xlu2 %1111 }
 0x292   : > { %v1117_v55 = vmax.f32 %v3406_v32, %v1112_v35 }
 0x293   : > { %1160 = vrot.lane.b32.xlu0 %v1156_v41, %s2846_s17  ;;  %v974_v0 = vadd.f32 %v972_v12, %v3246_v26 }
 0x298   : > { %v1055_v33 = vpop.permute.xlu1 %1054  ;;  %v1029_v17 = vpop.permute.xlu0 %1028 }
 0x299   : > { %v1059_v2 = vadd.f32 %v1055_v33, %v1047_v31  ;;  %v1033_v44 = vadd.f32 %v1029_v17, %v1021_v36  ;;  %v1122_v54 = vpop.permute.xlu2 %1121 }
 0x29b   : > { %v1061_v5 = vadd.f32 %v1059_v2, %v1033_v44 }
 0x2a0   : > { %v1084_v48 = vpop.permute.xlu1 %1083  ;;  %v997_v52 = vpop.permute.xlu0 %996 }
 0x2a1   : > { %v1088_v20 = vadd.f32 %v1084_v48, %v1076_v4  ;;  %v1001_v61 = vadd.f32 %v997_v52, %v989_v58 }
 0x2a3   : > { %v1090_v57 = vadd.f32 %v1088_v20, %v1061_v5  ;;  %v1003_v18 = vadd.f32 %v1001_v61, %v974_v0 }
 0x2a5   : > { %v1092_v53 = vadd.f32 %v1090_v57, %v3293_v49  ;;  %v1005_v19 = vadd.f32 %v1003_v18, %v3293_v49 }
 0x2a7   : > { %v1094_v13 = vmax.f32 %v1092_v53, 0.0  ;;  %v1007_v60 = vmax.f32 %v1005_v19, 0.0  ;;  %v3563_v19 = vld [vmem:[#allocation2 + $0x8] sm:$0xff] }
 0x2a8   : > { %v1120_v11 = vpop.permute.xlu0 %1119 }
 0x2a9   : > { %v1125_v25 = vmax.f32 %v1117_v55, %v1120_v11  ;;  %v1157_v50 = vmax.f32 %v1007_v60, %v1094_v13 }
 0x2ab   : > { %1162 = vrot.lane.b32.xlu1 %v1157_v50, %s2846_s17  ;;  %2579 = vmatmul.msk.f32.vlgmr.msra.gmra.mxu2 %vm699_vm3, %v1125_v25  ;;  %v3570_v50 = vld [vmem:[#allocation2 + $0x88] sm:$0xff] }
 0x2af   : > { %v1114_v26 = vpop.permute.xlu1 %1113 }
 0x2b0   : > { %v1118_v62 = vmax.f32 %v3414_v45, %v1114_v26 }
 0x2b2   : > { %v1126_v37 = vmax.f32 %v1118_v62, %v1122_v54  ;;  %v3576_v62 = vld [vmem:[#allocation2 + $0x18] sm:$0xff] }
 0x2b4   : > { %2580 = vmatmul.msk.f32.gmra.mxu2 %vm699_vm3, %v1126_v37 }
 0x2cc   : > { %v3459_v34 = vpop.f32.mrf.mxu0 }
 0x2f2   : > { %v3465_v16 = vpop.f32.mrf.mxu0 }
 0x2f3   : > { %v2710_v45 = vpack.i.bf16 %v3465_v16, %v4219_v51 }
 0x2fa   : > { %v3470_v22 = vpop.f32.mrf.mxu0 }
 0x302   : > { %v3480_v9 = vpop.f32.mrf.mxu0 }
 0x303   : > { %v2730_v47 = vpack.i.bf16 %v3480_v9, %v3459_v34 }
 0x305   : > { %v1161_v49 = vpop.permute.xlu0 %1160 }
 0x306   : > { %v1166_v32 = vsel %vm675_vm0, 0.0, %v1161_v49 }
 0x307   : > { %v1168_v1 = vsel %vm678_vm1, %v1166_v32, 0.0  ;;  %v3592_v32 = vld [vmem:[#allocation2 + $0x28] sm:$0xff] }
 0x308   : > { %1180 = vrot.lane.b32.xlu0 %v1168_v1, %s2845_s22  ;;  %1172 = vrot.lane.b32.xlu2 %v1168_v1, %s2844_s21 }
 0x310   : > { %2711 = vrot.lane.b32.xlu0 %v2710_v45, %s2848_s27 }
 0x318   : > { %1311 = vrot.lane.b32.xlu0 %v3470_v22, %s2848_s27 }
 0x31d   : > { %v1163_v43 = vpop.permute.xlu1 %1162 }
 0x31e   : > { %v1167_v39 = vsel %vm675_vm0, 0.0, %v1163_v43  ;;  %v3604_v43 = vld [vmem:[#allocation2 + $0x38] sm:$0xff] }
 0x31f   : > { %v1169_v42 = vsel %vm678_vm1, %v1167_v39, 0.0  ;;  %v3613_v39 = vld [vmem:[#allocation2 + $0xb8] sm:$0xff] }
 0x320   : > { %1182 = vrot.lane.b32.xlu2 %v1169_v42, %s2845_s22  ;;  %1174 = vrot.lane.b32.xlu1 %v1169_v42, %s2844_s21 }
 0x321   : > { %1305 = vrot.lane.b32.xlu0 %v3470_v22, %s2845_s22 }
 0x328   : > { %2716 = vrot.lane.b32.xlu2 %v2710_v45, %s2845_s22  ;;  %2731 = vrot.lane.b32.xlu1 %v2730_v47, %s2848_s27 }
 0x329   : > { %1299 = vrot.lane.b32.xlu0 %v3470_v22, %s2844_s21 }
 0x32e   : > { %v3488_v56 = vpop.f32.mrf.mxu2 }
 0x330   : > { %2721 = vrot.lane.b32.xlu2 %v2710_v45, %s2844_s21  ;;  %2736 = vrot.lane.b32.xlu1 %v2730_v47, %s2845_s22 }
 0x337   : > { %v3492_v14 = vpop.f32.mrf.mxu2 }
 0x338   : > { %2726 = vrot.lane.b32.xlu2 %v2710_v45, %s2849_s20  ;;  %2741 = vrot.lane.b32.xlu1 %v2730_v47, %s2844_s21  ;;  %v2750_v38 = vpack.i.bf16 %v3488_v56, %v3492_v14  ;;  %v3600_v45 = vld [vmem:[#allocation2 + $0xa8] sm:$0xff] }
 0x33a   : > { %2751 = vrot.lane.b32.xlu0 %v2750_v38, %s2848_s27 }
 0x340   : > { %1317 = vrot.lane.b32.xlu2 %v3470_v22, %s2849_s20  ;;  %2746 = vrot.lane.b32.xlu1 %v2730_v47, %s2849_s20  ;;  %v3623_v47 = vld [vmem:[#allocation2] sm:$0xff] }
 0x342   : > { %2766 = vrot.lane.b32.xlu0 %v2750_v38, %s2849_s20 }
 0x348   : > { %2761 = vrot.lane.b32.xlu2 %v2750_v38, %s2844_s21  ;;  %2756 = vrot.lane.b32.xlu1 %v2750_v38, %s2845_s22  ;;  %v3638_v38 = vld [vmem:[#allocation2 + $0x10] sm:$0xff] }
 0x362   : > { %v1173_v23 = vpop.permute.xlu2 %1172 }
 0x363   : > { %v1178_v6 = vmax.f32 %v1168_v1, %v1173_v23  ;;  %v3642_v23 = vld [vmem:[#allocation2 + $0x58] sm:$0xff] }
 0x37a   : > { %v1181_v46 = vpop.permute.xlu0 %1180  ;;  %v1183_v21 = vpop.permute.xlu2 %1182 }
 0x37b   : > { %v1186_v63 = vmax.f32 %v1178_v6, %v1181_v46  ;;  %v3650_v6 = vld [vmem:[#allocation2 + $0x90] sm:$0xff]  ;;  %v3655_v46 = vld [vmem:[#allocation2 + $0xd8] sm:$0xff] }
 0x37d   : > { %2582 = vmatmul.msk.f32.vlgmr.msrb.gmra.mxu2 %vm699_vm3, %v1186_v63  ;;  %v3661_v63 = vld [vmem:[#allocation2 + $0x68] sm:$0xff] }
 0x382   : > { %v2717_v27 = vpop.permute.xlu2 %2716  ;;  %v2712_v24 = vpop.permute.xlu0 %2711 }
 0x383   : > { %v3506_v10 = vunpack.i.l.bf16 %v2712_v24  ;;  %v2714_v40 = vunpack.i.h.bf16 %v2712_v24  ;;  %v3527_v59 = vunpack.i.l.bf16 %v2717_v27  ;;  %v2719_v5 = vunpack.i.h.bf16 %v2717_v27  ;;  %v3669_v27 = vld [vmem:[#allocation2 + $0xa0] sm:$0xff]  ;;  %v3674_v24 = vld [vmem:[#allocation2 + $0xe8] sm:$0xff] }
 0x385   : > { %1348 = vmatpush.msra.mxu0 %v3506_v10  ;;  %1454 = vmatpush.msra.mxu2 %v3506_v10 }
 0x387   : > { %1349 = vmatpush.msra.mxu0 %v3506_v10  ;;  %1455 = vmatpush.msra.mxu2 %v3506_v10 }
 0x389   : > { %1456 = vmatpush.msra.mxu2 %v2714_v40  ;;  %v3676_v40 = vld [vmem:[#allocation2 + $0x30] sm:$0xff] }
 0x38a   : > { %v2722_v15 = vpop.permute.xlu2 %2721  ;;  %v3512_v41 = vpop.permute.xlu0 %1311 }
 0x38b   : > { %v3542_v4 = vunpack.i.l.bf16 %v2722_v15  ;;  %v2724_v48 = vunpack.i.h.bf16 %v2722_v15  ;;  %v3680_v15 = vld [vmem:[#allocation2 + $0x78] sm:$0xff] }
 0x392   : > { %v1175_v7 = vpop.permute.xlu1 %1174  ;;  %v2727_v30 = vpop.permute.xlu2 %2726 }
 0x393   : > { %v1179_v36 = vmax.f32 %v1169_v42, %v1175_v7  ;;  %v3514_v31 = vunpack.i.l.bf16 %v2727_v30  ;;  %v2729_v17 = vunpack.i.h.bf16 %v2727_v30  ;;  %v3521_v29 = vpop.permute.xlu0 %1305  ;;  %v3620_v42 = vld [vmem:[#allocation2 + $0x48] sm:$0xff]  ;;  %v3693_v7 = vld [vmem:[#allocation2 + $0xf8] sm:$0xff]  ;;  %v3695_v30 = vld [vmem:[#allocation2 + $0x40] sm:$0xff] }
 0x395   : > { %v1187_v33 = vmax.f32 %v1179_v36, %v1183_v21  ;;  %1401 = vmatpush.msra.mxu1 %v3514_v31  ;;  %1507 = vmatpush.msra.mxu3 %v3514_v31  ;;  %v3657_v21 = vld [vmem:[#allocation2 + $0x20] sm:$0xff]  ;;  %v3698_v36 = vld [vmem:[#allocation2 + $0x108] sm:$0xff] }
 0x397   : > { %2583 = vmatmul.msk.f32.gmra.mxu2 %vm699_vm3, %v1187_v33  ;;  %1402 = vmatpush.msra.mxu1 %v3514_v31  ;;  %v3706_v33 = vld [vmem:[#allocation2 + $0xc0] sm:$0xff] }
 0x398   : > { %1508 = vmatpush.msra.mxu3 %v3514_v31 }
 0x39a   : > { %1509 = vmatpush.msra.mxu3 %v2729_v17  ;;  %v3523_v2 = vpop.permute.xlu1 %2731  ;;  %v1318_v13 = vpop.permute.xlu2 %1317  ;;  %v3709_v17 = vld [vmem:[#allocation2 + $0x100] sm:$0xff] }
 0x39b   : > { %v2734_v44 = vunpack.i.h.bf16 %v3523_v2  ;;  %v2733_v3 = vunpack.i.l.bf16 %v3523_v2  ;;  %v3540_v58 = vpop.permute.xlu0 %1299  ;;  %v3722_v2 = vld [vmem:[#allocation2 + $0x110] sm:$0xff] }
 0x39d   : > { %1350 = vmatpush.msra.mxu0 %v2734_v44  ;;  %1457 = vmatpush.msra.mxu2 %v2733_v3  ;;  %v3726_v3 = vld [vmem:[#allocation2 + $0x128] sm:$0xff] }
 0x39f   : > { %1351 = vmatpush.msra.mxu0 %v3512_v41  ;;  %1458 = vmatpush.msra.mxu2 %v3527_v59 }
 0x3a1   : > { %1352 = vmatpush.msra.mxu0 %v3527_v59  ;;  %1459 = vmatpush.msra.mxu2 %v3527_v59 }
 0x3a2   : > { %v3535_v28 = vpop.permute.xlu1 %2736  ;;  %v2762_v49 = vpop.permute.xlu2 %2761 }
 0x3a3   : > { %v2739_v8 = vunpack.i.h.bf16 %v3535_v28  ;;  %v2738_v12 = vunpack.i.l.bf16 %v3535_v28  ;;  %1353 = vmatpush.msra.mxu0 %v3527_v59  ;;  %1460 = vmatpush.msra.mxu2 %v2719_v5  ;;  %v2763_v1 = vunpack.i.l.bf16 %v2762_v49  ;;  %v3732_v5 = vld [vmem:[#allocation2 + $0xe0] sm:$0xff] }
 0x3a4   : > { %v3735_v28 = vld [vmem:[#allocation2 + $0x120] sm:$0xff] }
 0x3a5   : > { %1354 = vmatpush.msra.mxu0 %v2739_v8  ;;  %1461 = vmatpush.msra.mxu2 %v2738_v12 }
 0x3a7   : > { %1355 = vmatpush.msra.mxu0 %v3521_v29  ;;  %1462 = vmatpush.msra.mxu2 %v3542_v4 }
 0x3a9   : > { %1356 = vmatpush.msra.mxu0 %v3542_v4  ;;  %1463 = vmatpush.msra.mxu2 %v3542_v4 }
 0x3aa   : > { %v3550_v52 = vpop.permute.xlu1 %2741 }
 0x3ab   : > { %v2744_v0 = vunpack.i.h.bf16 %v3550_v52  ;;  %v2743_v20 = vunpack.i.l.bf16 %v3550_v52  ;;  %1357 = vmatpush.msra.mxu0 %v3542_v4  ;;  %1464 = vmatpush.msra.mxu2 %v2724_v48  ;;  %v3746_v48 = vld [vmem:[#allocation2 + $0x148] sm:$0xff] }
 0x3ac   : > { %v2752_v61 = vpop.permute.xlu0 %2751 }
 0x3ad   : > { %1358 = vmatpush.msra.mxu0 %v2744_v0  ;;  %1465 = vmatpush.msra.mxu2 %v2743_v20  ;;  %v2753_v60 = vunpack.i.l.bf16 %v2752_v61  ;;  %v2754_v25 = vunpack.i.h.bf16 %v2752_v61  ;;  %v3755_v20 = vld [vmem:[#allocation2 + $0x140] sm:$0xff]  ;;  %v3760_v61 = vld [vmem:[#allocation2 + $0x158] sm:$0xff] }
 0x3af   : > { %1359 = vmatpush.msra.mxu0 %v3540_v58  ;;  %1466 = vmatpush.msra.mxu2 %v4219_v51 }
 0x3b1   : > { %1360 = vmatpush.msra.mxu0 %v4219_v51  ;;  %1467 = vmatpush.msra.mxu2 %v4219_v51 }
 0x3b2   : > { %v2747_v57 = vpop.permute.xlu1 %2746 }
 0x3b3   : > { %1361 = vmatpush.msra.mxu0 %v4219_v51  ;;  %1468 = vmatpush.msra.mxu2 %v3465_v16  ;;  %v2749_v18 = vunpack.i.h.bf16 %v2747_v57  ;;  %v2748_v35 = vunpack.i.l.bf16 %v2747_v57  ;;  %v2764_v16 = vunpack.i.h.bf16 %v2762_v49  ;;  %v1217_v57 = vld [vmem:[%s4202_s6] sm:$0xff] }
 0x3b4   : > { %v2767_v53 = vpop.permute.xlu0 %2766 }
 0x3b5   : > { %1362 = vmatpush.msra.mxu0 %v3480_v9  ;;  %1403 = vmatpush.msra.mxu1 %v2749_v18  ;;  %v2768_v55 = vunpack.i.l.bf16 %v2767_v53  ;;  %v2769_v11 = vunpack.i.h.bf16 %v2767_v53  ;;  %v3774_v53 = vld [vmem:[#allocation2 + $0x168] sm:$0xff] }
 0x3b6   : > { %1469 = vmatpush.msra.mxu2 %v3459_v34  ;;  %1510 = vmatpush.msra.mxu3 %v2748_v35  ;;  %v3588_v34 = vld [vmem:[#allocation2 + $0x98] sm:$0xff]  ;;  %v3771_v35 = vld [vmem:[#allocation2 + $0x150] sm:$0xff] }
 0x3b7   : > { %2592 = vmatmul.msk.f32.vlgmr.msra.gmra.mxu3 %vm1323_vm4, %v3563_v19  ;;  %1363 = vmatpush.msra.mxu0 %v3470_v22 }
 0x3b8   : > { %1404 = vmatpush.msra.mxu1 %v1318_v13  ;;  %1656 = vmatpush.msrb.mxu3 %v2768_v55 }
 0x3b9   : > { %1802 = vmatpush.msrb.mxu2 %v2768_v55  ;;  %1749 = vmatpush.msrb.mxu0 %v2753_v60  ;;  %v1220_v55 = vld [vmem:[%s4202_s6 + $0x18] sm:$0xff] }
 0x3ba   : > { %1603 = vmatpush.msrb.mxu1 %v2753_v60  ;;  %1657 = vmatpush.msrb.mxu3 %v2769_v11  ;;  %v2757_v26 = vpop.permute.xlu1 %2756  ;;  %v1219_v60 = vld [vmem:[%s4202_s6 + $0x10] sm:$0xff] }
 0x3bb   : > { %1803 = vmatpush.msrb.mxu2 %v2769_v11  ;;  %1750 = vmatpush.msrb.mxu0 %v2754_v25  ;;  %v2758_v54 = vunpack.i.l.bf16 %v2757_v26  ;;  %v2759_v37 = vunpack.i.h.bf16 %v2757_v26  ;;  %v3788_v11 = vld [vmem:[#allocation2 + $0x160] sm:$0xff]  ;;  %v1222_v26 = vld [vmem:[%s4202_s6 + $0x28] sm:$0xff] }
 0x3bc   : > { %1604 = vmatpush.msrb.mxu1 %v2754_v25  ;;  %1658 = vmatpush.msrb.mxu3 %v3514_v31  ;;  %v1223_v25 = vld [vmem:[%s4202_s6 + $0x30] sm:$0xff] }
 0x3bd   : > { %1804 = vmatpush.msrb.mxu2 %v3514_v31  ;;  %2584 = vmatmul.msk.f32.vlgmr.msra.gmra.mxu1 %vm1323_vm4, %v3570_v50 }
 0x3be   : > { %1605 = vmatpush.msrb.mxu1 %v3506_v10  ;;  %1751 = vmatpush.msrb.mxu0 %v3506_v10 }
 0x3bf   : > { %1659 = vmatpush.msrb.mxu3 %v3514_v31  ;;  %1805 = vmatpush.msrb.mxu2 %v3514_v31 }
 0x3c0   : > { %2593 = vmatmul.msk.f32.gmra.mxu3 %vm1323_vm4, %v3576_v62  ;;  %1606 = vmatpush.msrb.mxu1 %v3506_v10 }
 0x3c1   : > { %1752 = vmatpush.msrb.mxu0 %v3506_v10  ;;  %1884 = vmatpush.msra.mxu3 %v3514_v31 }
 0x3c2   : > { %1607 = vmatpush.msrb.mxu1 %v2758_v54  ;;  %1470 = vmatmul.f32.vlgmr.msra.gmra.mxu2 %v3623_v47 }
 0x3c3   : > { %1753 = vmatpush.msrb.mxu0 %v2758_v54  ;;  %1885 = vmatpush.msra.mxu3 %v3514_v31 }
 0x3c4   : > { %1608 = vmatpush.msrb.mxu1 %v2759_v37 }
 0x3c5   : > { %1754 = vmatpush.msrb.mxu0 %v2759_v37  ;;  %1886 = vmatpush.msra.mxu3 %v2749_v18  ;;  %v1218_v18 = vld [vmem:[%s4202_s6 + $0x8] sm:$0xff] }
 0x3c6   : > { %2585 = vmatmul.msk.f32.gmra.mxu1 %vm1323_vm4, %v3588_v34 }
 0x3c7   : > { %1609 = vmatpush.msrb.mxu1 %v3527_v59  ;;  %1755 = vmatpush.msrb.mxu0 %v3527_v59 }
 0x3c8   : > { %1887 = vmatpush.msra.mxu3 %v1318_v13  ;;  %v1221_v13 = vld [vmem:[%s4202_s6 + $0x20] sm:$0xff] }
 0x3c9   : > { %2594 = vmatmul.msk.f32.gmra.mxu3 %vm1323_vm4, %v3592_v32  ;;  %1610 = vmatpush.msrb.mxu1 %v3527_v59 }
 0x3ca   : > { %1756 = vmatpush.msrb.mxu0 %v3527_v59  ;;  %1473 = vmatmul.f32.gmra.mxu2 %v3638_v38 }
 0x3cb   : > { %1611 = vmatpush.msrb.mxu1 %v2763_v1 }
 0x3cc   : > { %1757 = vmatpush.msrb.mxu0 %v2763_v1 }
 0x3cd   : > { %1612 = vmatpush.msrb.mxu1 %v2764_v16 }
 0x3ce   : > { %1758 = vmatpush.msrb.mxu0 %v2764_v16  ;;  %2586 = vmatmul.msk.f32.gmra.mxu1 %vm1323_vm4, %v3600_v45  ;;  %v3801_v16 = vld [vmem:[#allocation2 + $0x70] sm:$0xff] }
 0x3cf   : > { %1613 = vmatpush.msrb.mxu1 %v3542_v4 }
 0x3d0   : > { %1759 = vmatpush.msrb.mxu0 %v3542_v4 }
 0x3d1   : > { %2595 = vmatmul.msk.f32.gmra.mxu3 %vm1323_vm4, %v3604_v43  ;;  %1614 = vmatpush.msrb.mxu1 %v3542_v4 }
 0x3d2   : > { %1760 = vmatpush.msrb.mxu0 %v3542_v4  ;;  %1476 = vmatmul.f32.gmra.mxu2 %v3657_v21 }
 0x3d3   : > { %1615 = vmatpush.msrb.mxu1 %v3492_v14 }
 0x3d4   : > { %1761 = vmatpush.msrb.mxu0 %v3492_v14  ;;  %v3630_v14 = vld [vmem:[#allocation2 + $0x80] sm:$0xff] }
 0x3d5   : > { %1616 = vmatpush.msrb.mxu1 %v3488_v56  ;;  %1364 = vmatmul.f32.vlgmr.msra.gmra.mxu0 %v3630_v14 }
 0x3d6   : > { %1762 = vmatpush.msrb.mxu0 %v3488_v56  ;;  %2587 = vmatmul.msk.f32.gmra.mxu1 %vm1323_vm4, %v3613_v39  ;;  %v3636_v56 = vld [vmem:[#allocation2 + $0xc8] sm:$0xff] }
 0x3d7   : > { %1617 = vmatpush.msrb.mxu1 %v4219_v51 }
 0x3d8   : > { %1763 = vmatpush.msrb.mxu0 %v4219_v51 }
 0x3d9   : > { %2596 = vmatmul.msk.f32.gmra.mxu3 %vm1323_vm4, %v3620_v42  ;;  %1618 = vmatpush.msrb.mxu1 %v4219_v51 }
 0x3da   : > { %1764 = vmatpush.msrb.mxu0 %v4219_v51  ;;  %1479 = vmatmul.f32.gmra.mxu2 %v3676_v40 }
 0x3db   : > { %1831 = vmatpush.msra.mxu1 %v3506_v10 }
 0x3dd   : > { %1832 = vmatpush.msra.mxu1 %v3506_v10  ;;  %1367 = vmatmul.f32.gmra.mxu0 %v3650_v6 }
 0x3de   : > { %2588 = vmatmul.msk.f32.gmra.mxu1 %vm1323_vm4, %v3636_v56 }
 0x3df   : > { %1833 = vmatpush.msra.mxu1 %v2734_v44  ;;  %v3724_v44 = vld [vmem:[#allocation2 + $0x60] sm:$0xff] }
 0x3e1   : > { %1834 = vmatpush.msra.mxu1 %v3512_v41  ;;  %2597 = vmatmul.msk.f32.gmra.mxu3 %vm1323_vm4, %v3642_v23  ;;  %v3688_v41 = vld [vmem:[#allocation2 + $0xb0] sm:$0xff] }
 0x3e2   : > { %1482 = vmatmul.f32.gmra.mxu2 %v3695_v30 }
 0x3e3   : > { %1835 = vmatpush.msra.mxu1 %v3527_v59 }
 0x3e5   : > { %1836 = vmatpush.msra.mxu1 %v3527_v59  ;;  %1370 = vmatmul.f32.gmra.mxu0 %v3669_v27 }
 0x3e6   : > { %2589 = vmatmul.msk.f32.gmra.mxu1 %vm1323_vm4, %v3655_v46 }
 0x3e7   : > { %1837 = vmatpush.msra.mxu1 %v2739_v8  ;;  %v3737_v8 = vld [vmem:[#allocation2 + $0x138] sm:$0xff] }
 0x3e9   : > { %1838 = vmatpush.msra.mxu1 %v3521_v29  ;;  %2598 = vmatmul.msk.f32.gmra.mxu3 %vm1323_vm4, %v3661_v63  ;;  %v3711_v29 = vld [vmem:[#allocation2 + $0x50] sm:$0xff] }
 0x3ea   : > { %1485 = vmatmul.f32.gmra.mxu2 %v3711_v29 }
 0x3eb   : > { %1839 = vmatpush.msra.mxu1 %v3542_v4 }
 0x3ed   : > { %1840 = vmatpush.msra.mxu1 %v3542_v4  ;;  %1373 = vmatmul.f32.gmra.mxu0 %v3688_v41 }
 0x3ee   : > { %2590 = vmatmul.msk.f32.gmra.mxu1 %vm1323_vm4, %v3674_v24 }
 0x3ef   : > { %1841 = vmatpush.msra.mxu1 %v2744_v0 }
 0x3f1   : > { %1842 = vmatpush.msra.mxu1 %v3540_v58  ;;  %2599 = vmatmul.msk.f32.gmra.mxu3 %vm1323_vm4, %v3680_v15  ;;  %v3744_v58 = vld [vmem:[#allocation2 + $0x130] sm:$0xff] }
 0x3f2   : > { %1488 = vmatmul.f32.gmra.mxu2 %v3724_v44 }
 0x3f3   : > { %1843 = vmatpush.msra.mxu1 %v4219_v51 }
 0x3f5   : > { %1844 = vmatpush.msra.mxu1 %v4219_v51  ;;  %1376 = vmatmul.f32.gmra.mxu0 %v3706_v33 }
 0x3f6   : > { %2591 = vmatmul.msk.f32.gmra.mxu1 %vm1323_vm4, %v3693_v7 }
 0x3f7   : > { %1845 = vmatpush.msra.mxu1 %v3480_v9  ;;  %v3713_v9 = vld [vmem:[#allocation2 + $0x118] sm:$0xff] }
 0x3f9   : > { %1846 = vmatpush.msra.mxu1 %v3470_v22  ;;  %2600 = vmatmul.msk.f32.vlgmr.msrb.gmra.mxu3 %vm1323_vm4, %v3698_v36  ;;  %v3719_v22 = vld [vmem:[#allocation2 + $0xd0] sm:$0xff] }
 0x3fa   : > { %1491 = vmatmul.f32.gmra.mxu2 %v3801_v16 }
 0x3fd   : > { %1379 = vmatmul.f32.gmra.mxu0 %v3719_v22 }
 0x3fe   : > { %1619 = vmatmul.f32.vlgmr.msrb.gmra.mxu1 %v3709_v17 }
 0x400   : > { %v3742_v12 = vpop.f32.mrf.mxu2 }
 0x401   : > { %2601 = vmatmul.msk.f32.gmra.mxu3 %vm1323_vm4, %v3713_v9 }
 0x402   : > { %2608 = vmatmul.msk.f32.vlgmr.msrb.gmra.mxu2 %vm1323_vm4, %v3570_v50 }
 0x405   : > { %1382 = vmatmul.f32.gmra.mxu0 %v3732_v5 }
 0x406   : > { %1622 = vmatmul.f32.gmra.mxu1 %v3722_v2 }
 0x409   : > { %2602 = vmatmul.msk.f32.gmra.mxu3 %vm1323_vm4, %v3726_v3 }
 0x40a   : > { %2609 = vmatmul.msk.f32.gmra.mxu2 %vm1323_vm4, %v3588_v34 }
 0x40e   : > { %1625 = vmatmul.f32.gmra.mxu1 %v3735_v28 }
 0x411   : > { %2603 = vmatmul.msk.f32.gmra.mxu3 %vm1323_vm4, %v3737_v8 }
 0x412   : > { %2610 = vmatmul.msk.f32.gmra.mxu2 %vm1323_vm4, %v3600_v45 }
 0x416   : > { %1628 = vmatmul.f32.gmra.mxu1 %v3744_v58 }
 0x419   : > { %2604 = vmatmul.msk.f32.gmra.mxu3 %vm1323_vm4, %v3746_v48 }
 0x41a   : > { %v3751_v52 = vpop.f32.mrf.mxu2  ;;  %2611 = vmatmul.msk.f32.gmra.mxu2 %vm1323_vm4, %v3613_v39 }
 0x41b   : > { %v2775_v0 = vpack.i.bf16 %v3742_v12, %v3751_v52 }
 0x41d   : > { %2776 = vrot.lane.b32.xlu2 %v2775_v0, %s2845_s22  ;;  %2781 = vrot.lane.b32.xlu0 %v2775_v0, %s2844_s21 }
 0x41e   : > { %2771 = vrot.lane.b32.xlu1 %v2775_v0, %s2848_s27  ;;  %1631 = vmatmul.f32.gmra.mxu1 %v3755_v20 }
 0x421   : > { %2605 = vmatmul.msk.f32.gmra.mxu3 %vm1323_vm4, %v3760_v61 }
 0x422   : > { %2612 = vmatmul.msk.f32.gmra.mxu2 %vm1323_vm4, %v3636_v56 }
 0x425   : > { %1695 = vperm.xlu2 %2708, %v1217_v57   ;;  %1700 = vperm.xlu0 %2704, %v1218_v18   ;;  %v3807_v57 = vld [vmem:[#allocation2 + $0x178] sm:$0xff] }
 0x426   : > { %2786 = vrot.lane.b32.xlu1 %v2775_v0, %s2849_s20  ;;  %1634 = vmatmul.f32.gmra.mxu1 %v3771_v35  ;;  %v3803_v0 = vld [vmem:[#allocation2 + $0xf0] sm:$0xff] }
 0x427   : > { %1385 = vmatmul.f32.gmra.mxu0 %v3803_v0 }
 0x429   : > { %2606 = vmatmul.msk.f32.gmra.mxu3 %vm1323_vm4, %v3774_v53 }
 0x42a   : > { %2613 = vmatmul.msk.f32.gmra.mxu2 %vm1323_vm4, %v3655_v46 }
 0x42d   : > { %1710 = vperm.xlu2 %2708, %v1220_v55   ;;  %1715 = vperm.xlu0 %2704, %v1221_v13   ;;  %v3813_v13 = vld [vmem:[#allocation2 + $0x170] sm:$0xff] }
 0x42e   : > { %1705 = vperm.xlu1 %2709, %v1219_v60   ;;  %1637 = vmatmul.f32.gmra.mxu1 %v3788_v11  ;;  %4238 = vst [vmem:[#allocation12_spill] sm:$0xff] %v3813_v13 }
 0x42f   : > { %1765 = vmatmul.f32.vlgmr.msrb.gmra.mxu0 %v3630_v14 }
 0x431   : > { %2607 = vmatmul.msk.f32.gmra.mxu3 %vm1323_vm4, %v3807_v57 }
 0x432   : > { %2614 = vmatmul.msk.f32.gmra.mxu2 %vm1323_vm4, %v3674_v24 }
 0x435   : > { %1725 = vperm.xlu0 %2704, %v1223_v25  }
 0x436   : > { %1720 = vperm.xlu1 %2709, %v1222_v26   ;;  %1640 = vmatmul.f32.gmra.mxu1 %v3813_v13 }
 0x437   : > { %1768 = vmatmul.f32.gmra.mxu0 %v3650_v6 }
 0x439   : > { %2616 = vmatmul.msk.f32.vlgmr.msra.gmra.mxu3 %vm1323_vm4, %v3563_v19 }
 0x43a   : > { %v1406_v54 = vpop.f32.mrf.mxu1  ;;  %v3797_v37 = vpop.f32.mrf.mxu3  ;;  %2615 = vmatmul.msk.f32.gmra.mxu2 %vm1323_vm4, %v3693_v7 }
 0x43e   : > { %1847 = vmatmul.f32.vlgmr.msra.gmra.mxu1 %v3623_v47 }
 0x43f   : > { %1771 = vmatmul.f32.gmra.mxu0 %v3669_v27 }
 0x441   : > { %2617 = vmatmul.msk.f32.gmra.mxu3 %vm1323_vm4, %v3576_v62 }
 0x443   : > { %v1409_v49 = vpop.f32.mrf.mxu1  ;;  %v3799_v1 = vpop.f32.mrf.mxu3 }
 0x445   : > { %v1471_v14 = vpop.f32.mrf.mxu2 }
 0x446   : > { %1850 = vmatmul.f32.gmra.mxu1 %v3638_v38 }
 0x447   : > { %1774 = vmatmul.f32.gmra.mxu0 %v3688_v41 }
 0x449   : > { %2618 = vmatmul.msk.f32.gmra.mxu3 %vm1323_vm4, %v3592_v32 }
 0x44b   : > { %v1412_v18 = vpop.f32.mrf.mxu1 }
 0x44c   : > { %v3811_v55 = vpop.f32.mrf.mxu3 }
 0x44d   : > { %v1474_v6 = vpop.f32.mrf.mxu2 }
 0x44e   : > { %1853 = vmatmul.f32.gmra.mxu1 %v3657_v21 }
 0x44f   : > { %1777 = vmatmul.f32.gmra.mxu0 %v3706_v33 }
 0x451   : > { %2619 = vmatmul.msk.f32.gmra.mxu3 %vm1323_vm4, %v3604_v43 }
 0x452   : > { %v1365_v26 = vpop.f32.mrf.mxu0 }
 0x453   : > { %v1415_v60 = vpop.f32.mrf.mxu1  ;;  %v1407_v50 = vadd.f32 %v1406_v54, %v1365_v26 }
 0x454   : > { %v3821_v25 = vpop.f32.mrf.mxu3 }
 0x455   : > { %v1472_v19 = vadd.f32 %v1471_v14, %v1407_v50  ;;  %v1477_v27 = vpop.f32.mrf.mxu2 }
 0x456   : > { %1856 = vmatmul.f32.gmra.mxu1 %v3676_v40 }
 0x457   : > { %1780 = vmatmul.f32.gmra.mxu0 %v3719_v22 }
 0x459   : > { %2620 = vmatmul.msk.f32.gmra.mxu3 %vm1323_vm4, %v3620_v42  ;;  %v1513_v42 = vadd.f32 %v3797_v37, %v1472_v19 }
 0x45a   : > { %v1368_v34 = vpop.f32.mrf.mxu0 }
 0x45b   : > { %v1418_v51 = vpop.f32.mrf.mxu1  ;;  %v1410_v47 = vadd.f32 %v1409_v49, %v1368_v34 }
 0x45c   : > { %v3829_v13 = vpop.f32.mrf.mxu3 }
 0x45d   : > { %v1475_v26 = vadd.f32 %v1474_v6, %v1410_v47  ;;  %v1480_v41 = vpop.f32.mrf.mxu2 }
 0x45e   : > { %1859 = vmatmul.f32.gmra.mxu1 %v3695_v30 }
 0x45f   : > { %1783 = vmatmul.f32.gmra.mxu0 %v3732_v5  ;;  %v1516_v37 = vadd.f32 %v3799_v1, %v1475_v26 }
 0x461   : > { %2621 = vmatmul.msk.f32.gmra.mxu3 %vm1323_vm4, %v3642_v23 }
 0x462   : > { %v1371_v45 = vpop.f32.mrf.mxu0 }
 0x463   : > { %v1421_v62 = vpop.f32.mrf.mxu1  ;;  %v1413_v38 = vadd.f32 %v1412_v18, %v1371_v45 }
 0x464   : > { %v3837_v54 = vpop.f32.mrf.mxu3 }
 0x465   : > { %v1478_v50 = vadd.f32 %v1477_v27, %v1413_v38  ;;  %v1483_v40 = vpop.f32.mrf.mxu2 }
 0x466   : > { %1862 = vmatmul.f32.gmra.mxu1 %v3711_v29 }
 0x467   : > { %1786 = vmatmul.f32.gmra.mxu0 %v3803_v0  ;;  %v1519_v5 = vadd.f32 %v3811_v55, %v1478_v50 }
 0x469   : > { %2622 = vmatmul.msk.f32.gmra.mxu3 %vm1323_vm4, %v3661_v63 }
 0x46a   : > { %v1374_v39 = vpop.f32.mrf.mxu0 }
 0x46b   : > { %v1424_v32 = vpop.f32.mrf.mxu1  ;;  %v1416_v21 = vadd.f32 %v1415_v60, %v1374_v39 }
 0x46c   : > { %v3845_v49 = vpop.f32.mrf.mxu3 }
 0x46d   : > { %v1481_v14 = vadd.f32 %v1480_v41, %v1416_v21  ;;  %v1486_v19 = vpop.f32.mrf.mxu2 }
 0x46e   : > { %1865 = vmatmul.f32.gmra.mxu1 %v3724_v44 }
 0x46f   : > { %v1522_v41 = vadd.f32 %v3821_v25, %v1481_v14 }
 0x471   : > { %2623 = vmatmul.msk.f32.gmra.mxu3 %vm1323_vm4, %v3680_v15 }
 0x472   : > { %v1377_v56 = vpop.f32.mrf.mxu0 }
 0x473   : > { %v3853_v43 = vpop.f32.mrf.mxu1  ;;  %v1419_v34 = vadd.f32 %v1418_v51, %v1377_v56 }
 0x474   : > { %v3855_v18 = vpop.f32.mrf.mxu3 }
 0x475   : > { %v1484_v46 = vadd.f32 %v1483_v40, %v1419_v34  ;;  %v1489_v1 = vpop.f32.mrf.mxu2 }
 0x476   : > { %1868 = vmatmul.f32.gmra.mxu1 %v3801_v16 }
 0x477   : > { %v2777_v55 = vpop.permute.xlu2 %2776  ;;  %v1525_v34 = vadd.f32 %v3829_v13, %v1484_v46 }
 0x478   : > { %v2778_v40 = vunpack.i.l.bf16 %v2777_v55 }
 0x47a   : > { %v1380_v23 = vpop.f32.mrf.mxu0 }
 0x47b   : > { %v1620_v33 = vpop.f32.mrf.mxu1  ;;  %v1422_v22 = vadd.f32 %v1421_v62, %v1380_v23 }
 0x47c   : > { %v1661_v60 = vpop.f32.mrf.mxu3 }
 0x47d   : > { %v1662_v47 = vadd.f32 %v1661_v60, %v1620_v33  ;;  %v1487_v38 = vadd.f32 %v1486_v19, %v1422_v22  ;;  %v2779_v33 = vunpack.i.h.bf16 %v2777_v55 }
 0x47f   : > { %v3868_v30 = vadd.f32 %v1662_v47, %v1513_v42  ;;  %v1528_v13 = vadd.f32 %v3837_v54, %v1487_v38  ;;  %v4239_v38 = vmov 0.0  }
 0x482   : > { %v1383_v63 = vpop.f32.mrf.mxu0 }
 0x483   : > { %v1623_v51 = vpop.f32.mrf.mxu1  ;;  %v1425_v29 = vadd.f32 %v1424_v32, %v1383_v63 }
 0x484   : > { %v1664_v6 = vpop.f32.mrf.mxu3 }
 0x485   : > { %v1665_v45 = vadd.f32 %v1664_v6, %v1623_v51  ;;  %v1490_v27 = vadd.f32 %v1489_v1, %v1425_v29 }
 0x487   : > { %v3877_v24 = vadd.f32 %v1665_v45, %v1516_v37 }
 0x48b   : > { %v1626_v62 = vpop.f32.mrf.mxu1 }
 0x48c   : > { %v1667_v26 = vpop.f32.mrf.mxu3 }
 0x48d   : > { %v1668_v39 = vadd.f32 %v1667_v26, %v1626_v62 }
 0x48f   : > { %v3883_v7 = vadd.f32 %v1668_v39, %v1519_v5  ;;  %v2782_v23 = vpop.permute.xlu0 %2781  ;;  %v4240_v5 = vld [vmem:[#allocation12_spill] sm:$0xff] }
 0x490   : > { %v2772_v0 = vpop.permute.xlu1 %2771  ;;  %v2783_v37 = vunpack.i.l.bf16 %v2782_v23 }
 0x491   : > { %v2773_v44 = vunpack.i.l.bf16 %v2772_v0  ;;  %v2774_v21 = vunpack.i.h.bf16 %v2772_v0 }
 0x493   : > { %1939 = vmatpush.msra.mxu0 %v2773_v44  ;;  %v1629_v15 = vpop.f32.mrf.mxu1 }
 0x494   : > { %v1670_v56 = vpop.f32.mrf.mxu3 }
 0x495   : > { %v1671_v32 = vadd.f32 %v1670_v56, %v1629_v15  ;;  %1940 = vmatpush.msra.mxu0 %v2774_v21 }
 0x497   : > { %v3886_v50 = vadd.f32 %v1671_v32, %v1522_v41  ;;  %1941 = vmatpush.msra.mxu0 %v3506_v10 }
 0x498   : > { %v2787_v42 = vpop.permute.xlu1 %2786 }
 0x499   : > { %v2788_v16 = vunpack.i.l.bf16 %v2787_v42  ;;  %1942 = vmatpush.msra.mxu0 %v3506_v10  ;;  %v2789_v60 = vunpack.i.h.bf16 %v2787_v42  ;;  %v2784_v10 = vunpack.i.h.bf16 %v2782_v23 }
 0x49b   : > { %1943 = vmatpush.msra.mxu0 %v2778_v40  ;;  %1992 = vmatpush.msra.mxu2 %v2788_v16  ;;  %v1632_v25 = vpop.f32.mrf.mxu1 }
 0x49c   : > { %v1673_v14 = vpop.f32.mrf.mxu3 }
 0x49d   : > { %v1674_v47 = vadd.f32 %v1673_v14, %v1632_v25  ;;  %1944 = vmatpush.msra.mxu0 %v2779_v33  ;;  %1993 = vmatpush.msra.mxu2 %v2789_v60 }
 0x49f   : > { %v3891_v22 = vadd.f32 %v1674_v47, %v1525_v34  ;;  %1945 = vmatpush.msra.mxu0 %v3527_v59  ;;  %1994 = vmatpush.msra.mxu2 %v3514_v31  ;;  %v1696_v34 = vpop.permute.xlu2 %1695 }
 0x4a1   : > { %1946 = vmatpush.msra.mxu0 %v3527_v59  ;;  %1995 = vmatpush.msra.mxu2 %v3514_v31  ;;  %v1531_v31 = vadd.f32 %v3845_v49, %v1490_v27 }
 0x4a2   : > { %2624 = vmatmul.msk.f32.vlgmr.msra.gmra.mxu2 %vm1323_vm4, %v3698_v36 }
 0x4a3   : > { %1947 = vmatpush.msra.mxu0 %v2783_v37  ;;  %v1635_v46 = vpop.f32.mrf.mxu1 }
 0x4a4   : > { %v1676_v19 = vpop.f32.mrf.mxu3 }
 0x4a5   : > { %v1677_v51 = vadd.f32 %v1676_v19, %v1635_v46  ;;  %1948 = vmatpush.msra.mxu0 %v2784_v10 }
 0x4a7   : > { %v3900_v6 = vadd.f32 %v1677_v51, %v1528_v13  ;;  %1949 = vmatpush.msra.mxu0 %v3542_v4 }
 0x4a9   : > { %1950 = vmatpush.msra.mxu0 %v3542_v4  ;;  %v1386_v4 = vpop.f32.mrf.mxu0 }
 0x4aa   : > { %2625 = vmatmul.msk.f32.gmra.mxu2 %vm1323_vm4, %v3713_v9  ;;  %v1428_v9 = vadd.f32 %v3853_v43, %v1386_v4 }
 0x4ab   : > { %1951 = vmatpush.msra.mxu0 %v3751_v52  ;;  %v1638_v59 = vpop.f32.mrf.mxu1 }
 0x4ac   : > { %v1679_v36 = vpop.f32.mrf.mxu3 }
 0x4ad   : > { %v1680_v54 = vadd.f32 %v1679_v36, %v1638_v59  ;;  %1952 = vmatpush.msra.mxu0 %v3742_v12  ;;  %v1492_v12 = vpop.f32.mrf.mxu2  ;;  %v1701_v59 = vpop.permute.xlu0 %1700 }
 0x4ae   : > { %v1493_v52 = vadd.f32 %v1492_v12, %v1428_v9 }
 0x4af   : > { %v3909_v45 = vadd.f32 %v1680_v54, %v1531_v31  ;;  %1953 = vmatpush.msra.mxu0 %v4239_v38  ;;  %v1706_v54 = vpop.permute.xlu1 %1705 }
 0x4b1   : > { %1954 = vmatpush.msra.mxu0 %v4239_v38 }
 0x4b2   : > { %1955 = vmatmul.f32.vlgmr.msra.gmra.mxu0 %v3709_v17  ;;  %2626 = vmatmul.msk.f32.gmra.mxu2 %vm1323_vm4, %v3726_v3  ;;  %v1766_v17 = vpop.f32.mrf.mxu0  ;;  %v1534_v3 = vadd.f32 %v3855_v18, %v1493_v52  ;;  %v1735_v52 = vadd.f32 %v1706_v54, %v3883_v7 }
 0x4b5   : > { %v1807_v63 = vpop.f32.mrf.mxu2 }
 0x4b6   : > { %v1808_v41 = vadd.f32 %v1807_v63, %v1766_v17 }
 0x4ba   : > { %1958 = vmatmul.f32.gmra.mxu0 %v3722_v2  ;;  %2627 = vmatmul.msk.f32.gmra.mxu2 %vm1323_vm4, %v3737_v8  ;;  %v1682_v2 = vpop.f32.mrf.mxu3  ;;  %v1641_v8 = vpop.f32.mrf.mxu1 }
 0x4bb   : > { %v1683_v49 = vadd.f32 %v1682_v2, %v1641_v8  ;;  %v1224_v2 = vld [vmem:[%s4202_s6 + $0x38] sm:$0xff] }
 0x4bd   : > { %v1810_v43 = vpop.f32.mrf.mxu2 }
 0x4c2   : > { %1961 = vmatmul.f32.gmra.mxu0 %v3735_v28  ;;  %2628 = vmatmul.msk.f32.gmra.mxu2 %vm1323_vm4, %v3746_v48  ;;  %v3927_v28 = vadd.f32 %v1683_v49, %v1534_v3  ;;  %v1769_v48 = vpop.f32.mrf.mxu0  ;;  %v1889_v0 = vpop.f32.mrf.mxu3 }
 0x4c3   : > { %v1811_v42 = vadd.f32 %v1810_v43, %v1769_v48  ;;  %v1734_v43 = vadd.f32 %v1701_v59, %v3877_v24 }
 0x4c5   : > { %v1742_v7 = vmax.f32 %v1734_v43, 0.0 }
 0x4ca   : > { %1964 = vmatmul.f32.gmra.mxu0 %v3744_v58  ;;  %2629 = vmatmul.msk.f32.gmra.mxu2 %vm1323_vm4, %v3760_v61  ;;  %v1772_v58 = vpop.f32.mrf.mxu0  ;;  %v1813_v61 = vpop.f32.mrf.mxu2 }
 0x4cb   : > { %v1892_v15 = vpop.f32.mrf.mxu3  ;;  %v1814_v13 = vadd.f32 %v1813_v61, %v1772_v58  ;;  %v1743_v61 = vmax.f32 %v1735_v52, 0.0 }
 0x4d2   : > { %1967 = vmatmul.f32.gmra.mxu0 %v3755_v20  ;;  %2630 = vmatmul.msk.f32.gmra.mxu2 %vm1323_vm4, %v3774_v53  ;;  %v1775_v18 = vpop.f32.mrf.mxu0  ;;  %v1816_v29 = vpop.f32.mrf.mxu2 }
 0x4d3   : > { %v1895_v47 = vpop.f32.mrf.mxu3  ;;  %v1817_v8 = vadd.f32 %v1816_v29, %v1775_v18 }
 0x4da   : > { %1970 = vmatmul.f32.gmra.mxu0 %v3771_v35  ;;  %2631 = vmatmul.msk.f32.gmra.mxu2 %vm1323_vm4, %v3807_v57  ;;  %v3937_v1 = vpop.f32.mrf.mxu0  ;;  %v3939_v20 = vpop.f32.mrf.mxu2 }
 0x4db   : > { %v1898_v9 = vpop.f32.mrf.mxu3  ;;  %v1820_v18 = vadd.f32 %v3939_v20, %v3937_v1 }
 0x4e2   : > { %1973 = vmatmul.f32.gmra.mxu0 %v3788_v11  ;;  %v3941_v53 = vpop.f32.mrf.mxu0  ;;  %v3943_v62 = vpop.f32.mrf.mxu2 }
 0x4e3   : > { %v1848_v11 = vpop.f32.mrf.mxu1 }
 0x4e4   : > { %v1849_v56 = vadd.f32 %v1848_v11, %v1808_v41 }
 0x4e6   : > { %v1890_v40 = vadd.f32 %v1889_v0, %v1849_v56  ;;  %v1733_v0 = vadd.f32 %v1696_v34, %v3868_v30  ;;  %v1901_v56 = vpop.f32.mrf.mxu3 }
 0x4ea   : > { %1976 = vmatmul.f32.gmra.mxu0 %v4240_v5  ;;  %v3945_v35 = vpop.f32.mrf.mxu0  ;;  %v3947_v26 = vpop.f32.mrf.mxu2 }
 0x4eb   : > { %v1851_v21 = vpop.f32.mrf.mxu1 }
 0x4ec   : > { %v1852_v25 = vadd.f32 %v1851_v21, %v1811_v42  ;;  %v1741_v42 = vmax.f32 %v1733_v0, 0.0 }
 0x4ee   : > { %v1893_v46 = vadd.f32 %v1892_v15, %v1852_v25  ;;  %v2046_v15 = vmax.f32 %v1742_v7, 0.0  ;;  %v2045_v20 = vmax.f32 %v1741_v42, 0.0 }
 0x4f2   : > { %v1787_v57 = vpop.f32.mrf.mxu0  ;;  %v1828_v27 = vpop.f32.mrf.mxu2 }
 0x4f3   : > { %v3949_v39 = vadd.f32 %v1828_v27, %v1787_v57  ;;  %v1854_v33 = vpop.f32.mrf.mxu1 }
 0x4f4   : > { %v1855_v38 = vadd.f32 %v1854_v33, %v1814_v13 }
 0x4f6   : > { %v1896_v49 = vadd.f32 %v1895_v47, %v1855_v38 }
 0x4fb   : > { %v1857_v36 = vpop.f32.mrf.mxu1 }
 0x4fc   : > { %v1858_v5 = vadd.f32 %v1857_v36, %v1817_v8 }
 0x4fe   : > { %v1899_v29 = vadd.f32 %v1898_v9, %v1858_v5 }
 0x503   : > { %v1860_v27 = vpop.f32.mrf.mxu1 }
 0x504   : > { %v1861_v30 = vadd.f32 %v1860_v27, %v1820_v18 }
 0x506   : > { %v1902_v25 = vadd.f32 %v1901_v56, %v1861_v30 }
 0x50b   : > { %v1863_v33 = vpop.f32.mrf.mxu1 }
 0x525   : > { %v1997_v44 = vpop.f32.mrf.mxu2 }
 0x52d   : > { %v2000_v32 = vpop.f32.mrf.mxu2 }
 0x52f   : > { %v1956_v55 = vpop.f32.mrf.mxu0 }
 0x530   : > { %v1998_v16 = vadd.f32 %v1997_v44, %v1956_v55  ;;  %v2047_v44 = vmax.f32 %v1743_v61, 0.0 }
 0x532   : > { %v2021_v60 = vadd.f32 %v1998_v16, %v1890_v40  ;;  %v3963_v40 = vpop.permute.xlu2 %1710 }
 0x534   : > { %v2029_v14 = vadd.f32 %v2021_v60, %v1696_v34  ;;  %v1823_v34 = vadd.f32 %v3943_v62, %v3941_v53 }
 0x535   : > { %v2003_v23 = vpop.f32.mrf.mxu2 }
 0x536   : > { %v2037_v37 = vmax.f32 %v2029_v14, 0.0 }
 0x537   : > { %v1959_v10 = vpop.f32.mrf.mxu0 }
 0x538   : > { %v2001_v19 = vadd.f32 %v2000_v32, %v1959_v10  ;;  %v2244_v51 = vmax.f32 %v2037_v37, 0.0  ;;  %v1904_v10 = vpop.f32.mrf.mxu3 }
 0x53a   : > { %v2022_v31 = vadd.f32 %v2001_v19, %v1893_v46  ;;  %2260 = vrot.lane.b32.xlu2 %v2244_v51, %s2846_s17  ;;  %v1864_v46 = vadd.f32 %v1863_v33, %v1823_v34 }
 0x53c   : > { %v2030_v4 = vadd.f32 %v2022_v31, %v1701_v59  ;;  %v1826_v59 = vadd.f32 %v3947_v26, %v3945_v35  ;;  %v1905_v36 = vadd.f32 %v1904_v10, %v1864_v46 }
 0x53d   : > { %v2006_v3 = vpop.f32.mrf.mxu2 }
 0x53e   : > { %v2038_v12 = vmax.f32 %v2030_v4, 0.0  ;;  %v1721_v4 = vpop.permute.xlu1 %1720 }
 0x53f   : > { %v1962_v17 = vpop.f32.mrf.mxu0 }
 0x540   : > { %v2004_v63 = vadd.f32 %v2003_v23, %v1962_v17  ;;  %v2245_v48 = vmax.f32 %v2038_v12, 0.0  ;;  %v1716_v23 = vpop.permute.xlu0 %1715  ;;  %v1907_v52 = vpop.f32.mrf.mxu3 }
 0x542   : > { %v2023_v58 = vadd.f32 %v2004_v63, %v1896_v49  ;;  %2262 = vrot.lane.b32.xlu1 %v2245_v48, %s2846_s17  ;;  %1730 = vperm.xlu2 %2708, %v1224_v2  }
 0x544   : > { %v2031_v57 = vadd.f32 %v2023_v58, %v1706_v54  ;;  %v1866_v54 = vpop.f32.mrf.mxu1 }
 0x545   : > { %v2009_v32 = vpop.f32.mrf.mxu2  ;;  %v1867_v9 = vadd.f32 %v1866_v54, %v1826_v59 }
 0x546   : > { %v2039_v11 = vmax.f32 %v2031_v57, 0.0 }
 0x547   : > { %v1965_v21 = vpop.f32.mrf.mxu0  ;;  %v1908_v8 = vadd.f32 %v1907_v52, %v1867_v9 }
 0x548   : > { %v2007_v41 = vadd.f32 %v2006_v3, %v1965_v21  ;;  %v2246_v24 = vmax.f32 %v2039_v11, 0.0  ;;  %v3975_v35 = vpop.permute.xlu0 %1725  ;;  %v1910_v0 = vpop.f32.mrf.mxu3 }
 0x549   : > { %v1739_v9 = vadd.f32 %v3975_v35, %v3909_v45  ;;  %v356_v45 = vld [vmem:[%s4204_s8 + $0x8] sm:$0xff] }
 0x54a   : > { %v2024_v55 = vadd.f32 %v2007_v41, %v1899_v29  ;;  %2264 = vrot.lane.b32.xlu0 %v2246_v24, %s2846_s17  ;;  %2065 = vrot.lane.b32.xlu2 %v2047_v44, %s2846_s17 }
 0x54b   : > { %2063 = vrot.lane.b32.xlu1 %v2046_v15, %s2846_s17  ;;  %v1747_v52 = vmax.f32 %v1739_v9, 0.0 }
 0x54c   : > { %v2032_v16 = vadd.f32 %v2024_v55, %v3963_v40  ;;  %v1869_v61 = vpop.f32.mrf.mxu1  ;;  %v1736_v55 = vadd.f32 %v3963_v40, %v3886_v50  ;;  %v1738_v50 = vadd.f32 %v1721_v4, %v3900_v6 }
 0x54d   : > { %v2012_v13 = vpop.f32.mrf.mxu2  ;;  %v1870_v27 = vadd.f32 %v1869_v61, %v3949_v39 }
 0x54e   : > { %v2040_v1 = vmax.f32 %v2032_v16, 0.0 }
 0x54f   : > { %v1968_v60 = vpop.f32.mrf.mxu0  ;;  %v1911_v18 = vadd.f32 %v1910_v0, %v1870_v27 }
 0x550   : > { %v2247_v14 = vmax.f32 %v2040_v1, 0.0  ;;  %v2010_v47 = vadd.f32 %v2009_v32, %v1968_v60 }
 0x552   : > { %v2025_v37 = vadd.f32 %v2010_v47, %v1902_v25  ;;  %2061 = vrot.lane.b32.xlu0 %v2045_v20, %s2846_s17  ;;  %v1737_v20 = vadd.f32 %v1716_v23, %v3891_v22  ;;  %v1746_v22 = vmax.f32 %v1738_v50, 0.0 }
 0x553   : > { %2266 = vrot.lane.b32.xlu1 %v2247_v14, %s2846_s17 }
 0x554   : > { %v2033_v19 = vadd.f32 %v2025_v37, %v1716_v23  ;;  %v1745_v33 = vmax.f32 %v1737_v20, 0.0  ;;  %v2050_v23 = vmax.f32 %v1746_v22, 0.0 }
 0x555   : > { %v2015_v17 = vpop.f32.mrf.mxu2 }
 0x556   : > { %v2041_v51 = vmax.f32 %v2033_v19, 0.0  ;;  %v2049_v34 = vmax.f32 %v1745_v33, 0.0 }
 0x557   : > { %v1971_v31 = vpop.f32.mrf.mxu0 }
 0x558   : > { %v2248_v53 = vmax.f32 %v2041_v51, 0.0  ;;  %v2013_v62 = vadd.f32 %v2012_v13, %v1971_v31 }
 0x55a   : > { %v2026_v38 = vadd.f32 %v2013_v62, %v1905_v36  ;;  %2268 = vrot.lane.b32.xlu2 %v2248_v53, %s2846_s17 }
 0x55c   : > { %v2034_v12 = vadd.f32 %v2026_v38, %v1721_v4 }
 0x55d   : > { %v2018_v5 = vpop.f32.mrf.mxu2 }
 0x55e   : > { %v2042_v2 = vmax.f32 %v2034_v12, 0.0 }
 0x55f   : > { %v1974_v3 = vpop.f32.mrf.mxu0 }
 0x560   : > { %v2016_v49 = vadd.f32 %v2015_v17, %v1974_v3  ;;  %v2249_v63 = vmax.f32 %v2042_v2, 0.0  ;;  %v357_v17 = vld [vmem:[%s4204_s8 + $0x10] sm:$0x3]  ;;  %v355_v2 = vld [vmem:[%s4204_s8] sm:$0xff]  ;;  %v2051_v3 = vmax.f32 %v1747_v52, 0.0 }
 0x561   : > { %2641 = vmatpush.msk.msrb.mxu3 %vm2199_vm6, %v357_v17  ;;  %2632 = vmatpush.msk.msrb.mxu1 %vm2199_vm6, %v357_v17 }
 0x562   : > { %v2027_v48 = vadd.f32 %v2016_v49, %v1908_v8  ;;  %2270 = vrot.lane.b32.xlu0 %v2249_v63, %s2846_s17 }
 0x563   : > { %2410 = vmatpush.msrb.mxu3 %v356_v45  ;;  %2217 = vmatpush.msrb.mxu1 %v356_v45 }
 0x564   : > { %v2035_v26 = vadd.f32 %v2027_v48, %v3975_v35 }
 0x565   : > { %2411 = vmatpush.msrb.mxu3 %v355_v2  ;;  %2218 = vmatpush.msrb.mxu1 %v355_v2 }
 0x566   : > { %v2043_v43 = vmax.f32 %v2035_v26, 0.0 }
 0x567   : > { %v1977_v57 = vpop.f32.mrf.mxu0 }
 0x568   : > { %v2250_v58 = vmax.f32 %v2043_v43, 0.0  ;;  %v2019_v21 = vadd.f32 %v2018_v5, %v1977_v57 }
 0x56a   : > { %2272 = vrot.lane.b32.xlu1 %v2250_v58, %s2846_s17  ;;  %v2028_v29 = vadd.f32 %v2019_v21, %v1911_v18 }
 0x594   : > { %v2261_v7 = vpop.permute.xlu2 %2260 }
 0x595   : > { %v2284_v11 = vsel %vm675_vm0, 0.0, %v2261_v7 }
 0x596   : > { %v3982_v44 = vsel %vm2093_vm5, %v2284_v11, 0.0 }
 0x597   : > { %2308 = vrot.lane.b32.xlu1 %v3982_v44, %s2844_s21 }
 0x59c   : > { %v1731_v41 = vpop.permute.xlu2 %1730 }
 0x59d   : > { %v3987_v24 = vadd.f32 %v1731_v41, %v3927_v28  ;;  %v2036_v15 = vadd.f32 %v2028_v29, %v1731_v41  ;;  %v1744_v28 = vmax.f32 %v1736_v55, 0.0 }
 0x59f   : > { %v2044_v56 = vmax.f32 %v2036_v15, 0.0  ;;  %v2048_v1 = vmax.f32 %v1744_v28, 0.0  ;;  %v1748_v48 = vmax.f32 %v3987_v24, 0.0 }
 0x5a1   : > { %v2251_v32 = vmax.f32 %v2044_v56, 0.0  ;;  %v2052_v26 = vmax.f32 %v1748_v48, 0.0 }
 0x5a3   : > { %2274 = vrot.lane.b32.xlu2 %v2251_v32, %s2846_s17 }
 0x5a4   : > { %v2066_v37 = vpop.permute.xlu2 %2065 }
 0x5a5   : > { %v2087_v35 = vsel %vm675_vm0, 0.0, %v2066_v37 }
 0x5a6   : > { %v4086_v43 = vsel %vm2093_vm5, %v2087_v35, 0.0 }
 0x5ab   : > { %2340 = vrot.lane.b32.xlu2 %v3982_v44, %s2845_s22 }
 0x5b4   : > { %v2263_v39 = vpop.permute.xlu1 %2262  ;;  %v2269_v31 = vpop.permute.xlu2 %2268 }
 0x5b5   : > { %v2285_v42 = vsel %vm675_vm0, 0.0, %v2263_v39  ;;  %v2288_v59 = vsel %vm675_vm0, 0.0, %v2269_v31 }
 0x5b6   : > { %v3996_v30 = vsel %vm2093_vm5, %v2285_v42, 0.0  ;;  %v4038_v62 = vsel %vm2093_vm5, %v2288_v59, 0.0 }
 0x5b7   : > { %2310 = vrot.lane.b32.xlu2 %v3996_v30, %s2844_s21 }
 0x5bc   : > { %v2265_v16 = vpop.permute.xlu0 %2264 }
 0x5bd   : > { %v2064_v25 = vpop.permute.xlu1 %2063  ;;  %v2286_v47 = vsel %vm675_vm0, 0.0, %v2265_v16 }
 0x5be   : > { %v4014_v6 = vsel %vm2093_vm5, %v2286_v47, 0.0  ;;  %v2086_v13 = vsel %vm675_vm0, 0.0, %v2064_v25 }
 0x5bf   : > { %2067 = vrot.lane.b32.xlu2 %v2048_v1, %s2846_s17  ;;  %v4024_v19 = vsel %vm2093_vm5, %v2086_v13, 0.0 }
 0x5c4   : > { %v2062_v60 = vpop.permute.xlu0 %2061 }
 0x5c5   : > { %v2085_v40 = vsel %vm675_vm0, 0.0, %v2062_v60  ;;  %v2267_v10 = vpop.permute.xlu1 %2266 }
 0x5c6   : > { %v4005_v14 = vsel %vm2093_vm5, %v2085_v40, 0.0  ;;  %v2287_v46 = vsel %vm675_vm0, 0.0, %v2267_v10 }
 0x5c7   : > { %2069 = vrot.lane.b32.xlu2 %v2049_v34, %s2846_s17  ;;  %2142 = vrot.lane.b32.xlu1 %v4005_v14, %s2845_s22  ;;  %v4027_v51 = vsel %vm2093_vm5, %v2287_v46, 0.0 }
 0x5c8   : > { %2110 = vrot.lane.b32.xlu0 %v4005_v14, %s2844_s21 }
 0x5cf   : > { %2071 = vrot.lane.b32.xlu2 %v2050_v23, %s2846_s17  ;;  %2344 = vrot.lane.b32.xlu1 %v4014_v6, %s2845_s22 }
 0x5d0   : > { %2342 = vrot.lane.b32.xlu0 %v3996_v30, %s2845_s22 }
 0x5d4   : > { %v2271_v38 = vpop.permute.xlu0 %2270 }
 0x5d5   : > { %v2289_v4 = vsel %vm675_vm0, 0.0, %v2271_v38 }
 0x5d6   : > { %v4053_v12 = vsel %vm2093_vm5, %v2289_v4, 0.0 }
 0x5d7   : > { %2112 = vrot.lane.b32.xlu2 %v4024_v19, %s2844_s21  ;;  %2346 = vrot.lane.b32.xlu1 %v4027_v51, %s2845_s22 }
 0x5d8   : > { %2312 = vrot.lane.b32.xlu0 %v4014_v6, %s2844_s21 }
 0x5dc   : > { %v2273_v36 = vpop.permute.xlu1 %2272 }
 0x5dd   : > { %v2290_v53 = vsel %vm675_vm0, 0.0, %v2273_v36 }
 0x5de   : > { %v4041_v54 = vsel %vm2093_vm5, %v2290_v53, 0.0 }
 0x5df   : > { %2320 = vrot.lane.b32.xlu2 %v4041_v54, %s2844_s21  ;;  %2348 = vrot.lane.b32.xlu1 %v4038_v62, %s2845_s22 }
 0x5e0   : > { %2314 = vrot.lane.b32.xlu0 %v4027_v51, %s2844_s21 }
 0x5e7   : > { %2350 = vrot.lane.b32.xlu1 %v4053_v12, %s2845_s22 }
 0x5e8   : > { %2316 = vrot.lane.b32.xlu0 %v4038_v62, %s2844_s21 }
 0x5ef   : > { %2073 = vrot.lane.b32.xlu1 %v2051_v3, %s2846_s17 }
 0x5f0   : > { %2318 = vrot.lane.b32.xlu0 %v4053_v12, %s2844_s21 }
 0x5f8   : > { %2352 = vrot.lane.b32.xlu0 %v4041_v54, %s2845_s22 }
 0x5fd   : > { %v2275_v8 = vpop.permute.xlu2 %2274 }
 0x5fe   : > { %v2291_v49 = vsel %vm675_vm0, 0.0, %v2275_v8 }
 0x5ff   : > { %v4075_v63 = vsel %vm2093_vm5, %v2291_v49, 0.0 }
 0x600   : > { %2144 = vrot.lane.b32.xlu0 %v4024_v19, %s2845_s22  ;;  %2354 = vrot.lane.b32.xlu2 %v4075_v63, %s2845_s22 }
 0x601   : > { %2322 = vrot.lane.b32.xlu1 %v4075_v63, %s2844_s21 }
 0x605   : > { %v2341_v58 = vpop.permute.xlu2 %2340 }
 0x608   : > { %2075 = vrot.lane.b32.xlu0 %v2052_v26, %s2846_s17  ;;  %2146 = vrot.lane.b32.xlu2 %v4086_v43, %s2845_s22  ;;  %s2850_s17 = smov 6  }
 0x609   : > { %2114 = vrot.lane.b32.xlu1 %v4086_v43, %s2844_s21  ;;  %v2309_v61 = vpop.permute.xlu1 %2308 }
 0x60a   : > { %v2332_v5 = vmax.f32 %v3982_v44, %v2309_v61 }
 0x60c   : > { %v2364_v57 = vmax.f32 %v2332_v5, %v2341_v58 }
 0x60e   : > { %2642 = vmatmul.msk.f32.vlgmr.msrb.gmra.mxu3 %vm2174_vm7, %v2364_v57 }
 0x611   : > { %v2311_v7 = vpop.permute.xlu2 %2310 }
 0x612   : > { %v2333_v55 = vmax.f32 %v3996_v30, %v2311_v7 }
 0x619   : > { %v2068_v27 = vpop.permute.xlu2 %2067 }
 0x61a   : > { %v2088_v11 = vsel %vm675_vm0, 0.0, %v2068_v27 }
 0x61b   : > { %v4097_v0 = vsel %vm2093_vm5, %v2088_v11, 0.0 }
 0x61c   : > { %2148 = vrot.lane.b32.xlu1 %v4097_v0, %s2845_s22  ;;  %2116 = vrot.lane.b32.xlu0 %v4097_v0, %s2844_s21 }
 0x621   : > { %v2070_v21 = vpop.permute.xlu2 %2069 }
 0x622   : > { %v2089_v44 = vsel %vm675_vm0, 0.0, %v2070_v21 }
 0x623   : > { %v4105_v18 = vsel %vm2093_vm5, %v2089_v44, 0.0 }
 0x624   : > { %2118 = vrot.lane.b32.xlu2 %v4105_v18, %s2844_s21  ;;  %2150 = vrot.lane.b32.xlu0 %v4105_v18, %s2845_s22 }
 0x629   : > { %v2072_v29 = vpop.permute.xlu2 %2071 }
 0x62a   : > { %v2090_v41 = vsel %vm675_vm0, 0.0, %v2072_v29 }
 0x62b   : > { %v4113_v24 = vsel %vm2093_vm5, %v2090_v41, 0.0 }
 0x62c   : > { %2152 = vrot.lane.b32.xlu2 %v4113_v24, %s2845_s22  ;;  %2120 = vrot.lane.b32.xlu1 %v4113_v24, %s2844_s21 }
 0x631   : > { %v2113_v23 = vpop.permute.xlu2 %2112 }
 0x639   : > { %v2143_v15 = vpop.permute.xlu1 %2142  ;;  %v2321_v31 = vpop.permute.xlu2 %2320 }
 0x63a   : > { %v2111_v56 = vpop.permute.xlu0 %2110  ;;  %v2338_v36 = vmax.f32 %v4041_v54, %v2321_v31 }
 0x63b   : > { %v2134_v32 = vmax.f32 %v4005_v14, %v2111_v56 }
 0x63d   : > { %v2166_v39 = vmax.f32 %v2134_v32, %v2143_v15 }
 0x63f   : > { %2633 = vmatmul.msk.f32.vlgmr.msrb.gmra.mxu1 %vm2174_vm7, %v2166_v39 }
 0x641   : > { %v2345_v42 = vpop.permute.xlu1 %2344 }
 0x642   : > { %v2343_v28 = vpop.permute.xlu0 %2342 }
 0x643   : > { %v2365_v16 = vmax.f32 %v2333_v55, %v2343_v28 }
 0x645   : > { %2643 = vmatmul.msk.f32.gmra.mxu3 %vm2174_vm7, %v2365_v16 }
 0x649   : > { %v2347_v1 = vpop.permute.xlu1 %2346 }
 0x64a   : > { %v2313_v20 = vpop.permute.xlu0 %2312 }
 0x64b   : > { %v2334_v33 = vmax.f32 %v4014_v6, %v2313_v20 }
 0x64d   : > { %v2366_v60 = vmax.f32 %v2334_v33, %v2345_v42 }
 0x64f   : > { %2644 = vmatmul.msk.f32.gmra.mxu3 %vm2174_vm7, %v2366_v60 }
 0x651   : > { %v2349_v34 = vpop.permute.xlu1 %2348 }
 0x652   : > { %v2315_v50 = vpop.permute.xlu0 %2314 }
 0x653   : > { %v2335_v40 = vmax.f32 %v4027_v51, %v2315_v50 }
 0x655   : > { %v2367_v25 = vmax.f32 %v2335_v40, %v2347_v1 }
 0x657   : > { %2645 = vmatmul.msk.f32.gmra.mxu3 %vm2174_vm7, %v2367_v25 }
 0x659   : > { %v2351_v30 = vpop.permute.xlu1 %2350 }
 0x65a   : > { %v2317_v14 = vpop.permute.xlu0 %2316  ;;  %v2355_v4 = vpop.permute.xlu2 %2354 }
 0x65b   : > { %v2336_v22 = vmax.f32 %v4038_v62, %v2317_v14  ;;  %v2135_v62 = vmax.f32 %v4024_v19, %v2113_v23 }
 0x65d   : > { %v2368_v47 = vmax.f32 %v2336_v22, %v2349_v34 }
 0x65f   : > { %2646 = vmatmul.msk.f32.gmra.mxu3 %vm2174_vm7, %v2368_v47 }
 0x661   : > { %v2074_v37 = vpop.permute.xlu1 %2073 }
 0x662   : > { %v2091_v6 = vsel %vm675_vm0, 0.0, %v2074_v37  ;;  %v2319_v10 = vpop.permute.xlu0 %2318  ;;  %v2147_v19 = vpop.permute.xlu2 %2146 }
 0x663   : > { %v2100_v13 = vsel %vm2093_vm5, %v2091_v6, 0.0  ;;  %v2337_v46 = vmax.f32 %v4053_v12, %v2319_v10 }
 0x664   : > { %2154 = vrot.lane.b32.xlu1 %v2100_v13, %s2845_s22  ;;  %2122 = vrot.lane.b32.xlu0 %v2100_v13, %s2844_s21 }
 0x665   : > { %v2369_v51 = vmax.f32 %v2337_v46, %v2351_v30 }
 0x667   : > { %2647 = vmatmul.msk.f32.gmra.mxu3 %vm2174_vm7, %v2369_v51 }
 0x66a   : > { %v2353_v59 = vpop.permute.xlu0 %2352 }
 0x66b   : > { %v2370_v53 = vmax.f32 %v2338_v36, %v2353_v59 }
 0x66f   : > { %2648 = vmatmul.msk.f32.gmra.mxu3 %vm2174_vm7, %v2370_v53 }
 0x672   : > { %v2145_v38 = vpop.permute.xlu0 %2144 }
 0x673   : > { %v2167_v9 = vmax.f32 %v2135_v62, %v2145_v38  ;;  %v2323_v12 = vpop.permute.xlu1 %2322 }
 0x674   : > { %v2339_v52 = vmax.f32 %v4075_v63, %v2323_v12 }
 0x675   : > { %2634 = vmatmul.msk.f32.gmra.mxu1 %vm2174_vm7, %v2167_v9 }
 0x676   : > { %v2371_v17 = vmax.f32 %v2339_v52, %v2355_v4 }
 0x678   : > { %2649 = vmatmul.msk.f32.gmra.mxu3 %vm2174_vm7, %v2371_v17 }
 0x67a   : > { %v2076_v45 = vpop.permute.xlu0 %2075 }
 0x67b   : > { %v2092_v2 = vsel %vm675_vm0, 0.0, %v2076_v45  ;;  %v2115_v54 = vpop.permute.xlu1 %2114 }
 0x67c   : > { %v2101_v3 = vsel %vm2093_vm5, %v2092_v2, 0.0  ;;  %v2136_v8 = vmax.f32 %v4086_v43, %v2115_v54 }
 0x67d   : > { %2156 = vrot.lane.b32.xlu0 %v2101_v3, %s2845_s22  ;;  %2124 = vrot.lane.b32.xlu2 %v2101_v3, %s2844_s21  ;;  %s2652_s21 = sshll.u32 %s4242_s13, 6 }
 0x67e   : > { %v2168_v49 = vmax.f32 %v2136_v8, %v2147_v19  ;;  %v2119_v43 = vpop.permute.xlu2 %2118  ;;  %s4167_s11 = scalar_lea.vmem %s4205_s9, %s2652_s21 }
 0x67f   : > { %v2138_v5 = vmax.f32 %v4105_v18, %v2119_v43 }
 0x680   : > { %2635 = vmatmul.msk.f32.gmra.mxu1 %vm2174_vm7, %v2168_v49 }
 0x686   : > { %v2153_v11 = vpop.permute.xlu2 %2152 }
 0x68e   : > { %v2117_v63 = vpop.permute.xlu0 %2116  ;;  %v2149_v35 = vpop.permute.xlu1 %2148 }
 0x68f   : > { %v2137_v48 = vmax.f32 %v4097_v0, %v2117_v63 }
 0x691   : > { %v2169_v26 = vmax.f32 %v2137_v48, %v2149_v35  ;;  %v2413_v58 = vpop.f32.mrf.mxu3 }
 0x692   : > { %2445 = vrot.lane.b32.xlu1 %v2413_v58, %s2850_s17 }
 0x693   : > { %2636 = vmatmul.msk.f32.gmra.mxu1 %vm2174_vm7, %v2169_v26 }
 0x696   : > { %v2151_v61 = vpop.permute.xlu0 %2150 }
 0x697   : > { %v2170_v57 = vmax.f32 %v2138_v5, %v2151_v61 }
 0x69b   : > { %2637 = vmatmul.msk.f32.gmra.mxu1 %vm2174_vm7, %v2170_v57 }
 0x69e   : > { %v2121_v7 = vpop.permute.xlu1 %2120 }
 0x69f   : > { %v2139_v27 = vmax.f32 %v4113_v24, %v2121_v7 }
 0x6a1   : > { %v2171_v0 = vmax.f32 %v2139_v27, %v2153_v11 }
 0x6a3   : > { %2638 = vmatmul.msk.f32.gmra.mxu1 %vm2174_vm7, %v2171_v0 }
 0x6bc   : > { %v2220_v20 = vpop.f32.mrf.mxu1 }
 0x6c8   : > { %v2416_v21 = vpop.f32.mrf.mxu3 }
 0x6c9   : > { %2447 = vrot.lane.b32.xlu2 %v2416_v21, %s2850_s17 }
 0x6d2   : > { %v2419_v44 = vpop.f32.mrf.mxu3 }
 0x6d3   : > { %2449 = vrot.lane.b32.xlu0 %v2419_v44, %s2850_s17 }
 0x6d6   : > { %v2123_v29 = vpop.permute.xlu0 %2122  ;;  %v2155_v15 = vpop.permute.xlu1 %2154 }
 0x6d7   : > { %v2140_v41 = vmax.f32 %v2100_v13, %v2123_v29  ;;  %v2125_v39 = vpop.permute.xlu2 %2124 }
 0x6d8   : > { %v2141_v55 = vmax.f32 %v2101_v3, %v2125_v39 }
 0x6d9   : > { %v2172_v18 = vmax.f32 %v2140_v41, %v2155_v15 }
 0x6da   : > { %v2422_v56 = vpop.f32.mrf.mxu3 }
 0x6db   : > { %2451 = vrot.lane.b32.xlu1 %v2422_v56, %s2850_s17  ;;  %2639 = vmatmul.msk.f32.gmra.mxu1 %vm2174_vm7, %v2172_v18 }
 0x6e2   : > { %v2425_v24 = vpop.f32.mrf.mxu3 }
 0x6e3   : > { %2453 = vrot.lane.b32.xlu2 %v2425_v24, %s2850_s17 }
 0x6ea   : > { %v2428_v32 = vpop.f32.mrf.mxu3 }
 0x6eb   : > { %2455 = vrot.lane.b32.xlu0 %v2428_v32, %s2850_s17 }
 0x6ef   : > { %v2157_v42 = vpop.permute.xlu0 %2156 }
 0x6f0   : > { %v2173_v28 = vmax.f32 %v2141_v55, %v2157_v42 }
 0x6f2   : > { %2640 = vmatmul.msk.f32.gmra.mxu1 %vm2174_vm7, %v2173_v28  ;;  %v2431_v16 = vpop.f32.mrf.mxu3  ;;  %v2223_v34 = vpop.f32.mrf.mxu1 }
 0x6f3   : > { %2457 = vrot.lane.b32.xlu1 %v2431_v16, %s2850_s17 }
 0x6fb   : > { %v2434_v1 = vpop.f32.mrf.mxu3 }
 0x6fc   : > { %2459 = vrot.lane.b32.xlu2 %v2434_v1, %s2850_s17 }
 0x6fd   : > { %v2226_v25 = vpop.f32.mrf.mxu1 }
 0x704   : > { %v2446_v33 = vpop.permute.xlu1 %2445 }
 0x705   : > { %v2470_v60 = vsel %vm2469_vm8, %v2220_v20, %v2446_v33 }
 0x706   : > { %2479 = vst.msk [vmem:[%s4167_s11] sm:$0xff] %vm2478_vm9, %v2470_v60 }
 0x710   : > { %v2229_v30 = vpop.f32.mrf.mxu1 }
 0x718   : > { %v2232_v14 = vpop.f32.mrf.mxu1 }
 0x720   : > { %v2235_v13 = vpop.f32.mrf.mxu1 }
 0x723   : > { %v2448_v50 = vpop.permute.xlu2 %2447 }
 0x724   : > { %v2471_v40 = vsel %vm2469_vm8, %v2223_v34, %v2448_v50 }
 0x725   : > { %2480 = vst.msk [vmem:[%s4167_s11 + $0x8] sm:$0xff] %vm2478_vm9, %v2471_v40 }
 0x73d   : > { %v2454_v22 = vpop.permute.xlu2 %2453 }
 0x73e   : > { %v2474_v47 = vsel %vm2469_vm8, %v2232_v14, %v2454_v22 }
 0x73f   : > { %2483 = vst.msk [vmem:[%s4167_s11 + $0x20] sm:$0xff] %vm2478_vm9, %v2474_v47 }
 0x745   : > { %v2450_v23 = vpop.permute.xlu0 %2449 }
 0x746   : > { %v2472_v37 = vsel %vm2469_vm8, %v2226_v25, %v2450_v23 }
 0x747   : > { %2481 = vst.msk [vmem:[%s4167_s11 + $0x10] sm:$0xff] %vm2478_vm9, %v2472_v37 }
 0x74d   : > { %v2452_v6 = vpop.permute.xlu1 %2451 }
 0x74e   : > { %v2473_v10 = vsel %vm2469_vm8, %v2229_v30, %v2452_v6 }
 0x74f   : > { %2482 = vst.msk [vmem:[%s4167_s11 + $0x18] sm:$0xff] %vm2478_vm9, %v2473_v10 }
 0x756   : > { %v2460_v53 = vpop.permute.xlu2 %2459 }
 0x758   : > { %v2238_v31 = vpop.f32.mrf.mxu1 }
 0x75d   : > { %v2456_v46 = vpop.permute.xlu0 %2455 }
 0x75e   : > { %v2475_v51 = vsel %vm2469_vm8, %v2235_v13, %v2456_v46 }
 0x75f   : > { %2484 = vst.msk [vmem:[%s4167_s11 + $0x28] sm:$0xff] %vm2478_vm9, %v2475_v51 }
 0x765   : > { %v2458_v59 = vpop.permute.xlu1 %2457 }
 0x766   : > { %v2476_v36 = vsel %vm2469_vm8, %v2238_v31, %v2458_v59 }
 0x767   : > { %2485 = vst.msk [vmem:[%s4167_s11 + $0x30] sm:$0xff] %vm2478_vm9, %v2476_v36 }
 0x76f   : > { %v2241_v62 = vpop.f32.mrf.mxu1 }
 0x770   : > { %v2477_v38 = vsel %vm2469_vm8, %v2241_v62, %v2460_v53 }
 0x771   : > { %2486 = vst.msk [vmem:[%s4167_s11 + $0x38] sm:$0xff] %vm2478_vm9, %v2477_v38 }
 0x772 PF: > { %s20_s30 = sadd.s32 1, %s2836_s30  }
 0x773   : > { %p17_p7 = scmp.ge.s32.totalorder %s20_s30, 4  }
 0x775   :  { %19 = sbr.rel (!%p17_p7) target bundleno = 1 (0x1), region = 97 }
 0x77a   :  { %2508 = vsyncpa [#allocation3], 1 }
 0x77b   :  { %2510 = vsyncpa [#allocation3 + $0x1], 1 }

</bundles_post_ra>
